<compile_context>
chip_gen: v5e
topology: v5e:2x2
jax: 0.10.0
libtpu: 0.0.40
codegen_flags: <defaults>
</compile_context>

<pallas_src>
import functools

import jax
import jax.numpy as jnp
from jax.experimental import pallas as pl
from jax.experimental.pallas import tpu as pltpu


def skconv_kernel(x_ref, wconv_ref, bns_ref, bnb_ref,
                  wfc_ref, fcscale_ref, fcbias_ref, wfcs_ref,
                  o_ref, u_scratch, *, H, W, branches, pad):
    # x_ref:      (Hp, Wp, C)        padded NHWC input for one batch element
    # wconv_ref:  (branches*9, C, C) conv taps, (in, out) oriented
    # bns/bnb:    (branches, 1, C)   folded conv-BN scale / bias
    # wfc_ref:    (C, L)             fc 1x1 conv weight (transposed)
    # fcscale/fcbias: (1, L)         folded fc-BN scale / bias
    # wfcs_ref:   (branches, L, C)   per-branch 1x1 conv weights (transposed)
    # o_ref:      (H*W, C)           output (NHWC, spatial flattened)
    # u_scratch:  (branches, H*W, C) VMEM scratch for branch features
    HW = H * W
    C = x_ref.shape[2]
    inv_hw = 1.0 / float(HW)

    pooled = jnp.zeros((1, C), jnp.float32)
    for br in range(branches):
        d = br + 1                                   # dilation of this branch
        acc = jnp.zeros((HW, C), jnp.float32)
        for ky in range(3):
            for kx in range(3):
                oy = pad + (ky - 1) * d
                ox = pad + (kx - 1) * d
                tap = x_ref[oy:oy + H, ox:ox + W, :].reshape(HW, C)
                acc = acc + jnp.dot(
                    tap, wconv_ref[br * 9 + ky * 3 + kx],
                    preferred_element_type=jnp.float32)
        # folded BatchNorm + ReLU
        u = jnp.maximum(acc * bns_ref[br] + bnb_ref[br], 0.0)   # (HW, C)
        u_scratch[br] = u
        pooled = pooled + jnp.sum(u, axis=0, keepdims=True)

    # global average pool of the branch sum (multiply by 1/HW constant)
    pooled = pooled * inv_hw                                     # (1, C)

    # excitation MLP: fc (C -> L) + folded BN + ReLU
    z = jnp.dot(pooled, wfc_ref[...], preferred_element_type=jnp.float32)
    z = jnp.maximum(z * fcscale_ref[...] + fcbias_ref[...], 0.0)  # (1, L)

    # per-branch logits and softmax over the branch dim (per channel)
    logits = [jnp.dot(z, wfcs_ref[br], preferred_element_type=jnp.float32)
              for br in range(branches)]                          # each (1, C)
    m = logits[0]
    for br in range(1, branches):
        m = jnp.maximum(m, logits[br])
    exps = [jnp.exp(l - m) for l in logits]
    denom = exps[0]
    for e in exps[1:]:
        denom = denom + e
    inv_denom = 1.0 / denom                                       # (1, C)

    # attention-weighted sum of branch features
    out = u_scratch[0] * (exps[0] * inv_denom)
    for br in range(1, branches):
        out = out + u_scratch[br] * (exps[br] * inv_denom)
    o_ref[...] = out.astype(o_ref.dtype)


def skconv_forward(x, conv_w, conv_bn, fc_w, fc_bn, fcs_w, *, eps=1e-5):
    """SKConv forward (eval-mode BN).

    x:       (B, C, H, W) float32
    conv_w:  (branches, C, C, 3, 3)  per-branch OIHW conv weights
    conv_bn: (gamma, beta, mean, var), each (branches, C)
    fc_w:    (L, C)                   1x1 conv weight of self.fc
    fc_bn:   (gamma, beta, mean, var), each (L,)
    fcs_w:   (branches, C, L)         per-branch 1x1 conv weights of self.fcs
    """
    B, C, H, W = x.shape
    branches = conv_w.shape[0]
    L = fc_w.shape[0]
    assert W % 8 == 0, "W should be a multiple of 8 for a cheap (H,W,C)->(HW,C) reshape"
    pad = branches                      # max dilation == branches
    Hp, Wp = H + 2 * pad, W + 2 * pad
    HW = H * W

    # NHWC, padded once with the max padding; per-branch offsets handled in-kernel.
    x_nhwc = jnp.transpose(x, (0, 2, 3, 1))
    x_pad = jnp.pad(x_nhwc, ((0, 0), (pad, pad), (pad, pad), (0, 0)))

    # conv weights: (br, O, I, 3, 3) -> (br*9, I, O) so the kernel does (HW,I)@(I,O)
    wconv = jnp.transpose(conv_w, (0, 3, 4, 2, 1)).reshape(branches * 9, C, C)

    # fold conv BNs (eval mode) into per-channel scale/bias rows
    g, b_, mu, var = conv_bn
    sc = g / jnp.sqrt(var + eps)                      # (branches, C)
    bn_scale = sc.reshape(branches, 1, C)
    bn_bias = (b_ - mu * sc).reshape(branches, 1, C)

    # fold fc BN
    gf, bf, mf, vf = fc_bn
    scf = gf / jnp.sqrt(vf + eps)                     # (L,)
    fc_scale = scf.reshape(1, L)
    fc_bias = (bf - mf * scf).reshape(1, L)

    wfc_t = fc_w.T                                    # (C, L)
    wfcs_t = jnp.transpose(fcs_w, (0, 2, 1))          # (branches, L, C)

    kernel = functools.partial(skconv_kernel, H=H, W=W, branches=branches, pad=pad)

    out_flat = pl.pallas_call(
        kernel,
        out_shape=jax.ShapeDtypeStruct((B, HW, C), x.dtype),
        grid_spec=pltpu.PrefetchScalarGridSpec(
            num_scalar_prefetch=0,
            grid=(B,),
            in_specs=[
                pl.BlockSpec((None, Hp, Wp, C), lambda b: (b, 0, 0, 0)),
                pl.BlockSpec((branches * 9, C, C), lambda b: (0, 0, 0)),
                pl.BlockSpec((branches, 1, C), lambda b: (0, 0, 0)),
                pl.BlockSpec((branches, 1, C), lambda b: (0, 0, 0)),
                pl.BlockSpec((C, L), lambda b: (0, 0)),
                pl.BlockSpec((1, L), lambda b: (0, 0)),
                pl.BlockSpec((1, L), lambda b: (0, 0)),
                pl.BlockSpec((branches, L, C), lambda b: (0, 0, 0)),
            ],
            out_specs=pl.BlockSpec((None, HW, C), lambda b: (b, 0, 0)),
            scratch_shapes=[pltpu.VMEM((branches, HW, C), jnp.float32)],
        ),
        compiler_params=pltpu.CompilerParams(
            dimension_semantics=("parallel",)),
    )(x_pad, wconv, bn_scale, bn_bias, wfc_t, fc_scale, fc_bias, wfcs_t)

    # (B, HW, C) -> (B, C, H, W)
    return jnp.transpose(out_flat.reshape(B, H, W, C), (0, 3, 1, 2))


def skconv_reference(x, conv_w, conv_bn, fc_w, fc_bn, fcs_w, *, eps=1e-5):
    """Pure-JAX reference, mirrors the PyTorch forward (eval-mode BN)."""
    branches = conv_w.shape[0]
    g, b_, mu, var = conv_bn
    feats = []
    for br in range(branches):
        d = br + 1
        y = jax.lax.conv_general_dilated(
            x, conv_w[br], window_strides=(1, 1),
            padding=((d, d), (d, d)), rhs_dilation=(d, d),
            dimension_numbers=("NCHW", "OIHW", "NCHW"),
            precision=jax.lax.Precision.HIGHEST)
        y = (y - mu[br][None, :, None, None]) / jnp.sqrt(var[br][None, :, None, None] + eps)
        y = y * g[br][None, :, None, None] + b_[br][None, :, None, None]
        feats.append(jnp.maximum(y, 0.0))
    xs = jnp.stack(feats, axis=1)                      # (B, br, C, H, W)
    a = jnp.mean(jnp.sum(xs, axis=1), axis=(2, 3))     # (B, C)
    gf, bf, mf, vf = fc_bn
    z = jnp.matmul(a, fc_w.T, precision=jax.lax.Precision.HIGHEST)
    z = (z - mf) / jnp.sqrt(vf + eps) * gf + bf
    z = jnp.maximum(z, 0.0)                            # (B, L)
    logits = jnp.stack(
        [jnp.matmul(z, fcs_w[i].T, precision=jax.lax.Precision.HIGHEST)
         for i in range(branches)], axis=1)            # (B, br, C)
    att = jax.nn.softmax(logits, axis=1)
    return jnp.sum(xs * att[:, :, :, None, None], axis=1)


if __name__ == "__main__":
    # Small shapes consistent with the module: channels=32, branches=2, reduce=2
    # -> len = max(32 // 2, 32) = 32.
    B, C, H, W = 2, 32, 16, 16
    BR, REDUCE = 2, 2
    L = max(C // REDUCE, 32)
    EPS = 1e-5

    keys = jax.random.split(jax.random.PRNGKey(0), 12)
    x = jax.random.normal(keys[0], (B, C, H, W), dtype=jnp.float32)

    conv_w = jax.random.normal(keys[1], (BR, C, C, 3, 3), dtype=jnp.float32) * 0.1
    g_conv = 1.0 + 0.1 * jax.random.normal(keys[2], (BR, C), dtype=jnp.float32)
    b_conv = 0.1 * jax.random.normal(keys[3], (BR, C), dtype=jnp.float32)
    mu_conv = 0.1 * jax.random.normal(keys[4], (BR, C), dtype=jnp.float32)
    var_conv = 1.0 + 0.1 * jax.random.uniform(keys[5], (BR, C), dtype=jnp.float32)

    fc_w = jax.random.normal(keys[6], (L, C), dtype=jnp.float32) * 0.1
    g_fc = 1.0 + 0.1 * jax.random.normal(keys[7], (L,), dtype=jnp.float32)
    b_fc = 0.1 * jax.random.normal(keys[8], (L,), dtype=jnp.float32)
    mu_fc = 0.1 * jax.random.normal(keys[9], (L,), dtype=jnp.float32)
    var_fc = 1.0 + 0.1 * jax.random.uniform(keys[10], (L,), dtype=jnp.float32)

    fcs_w = jax.random.normal(keys[11], (BR, C, L), dtype=jnp.float32) * 0.1

    conv_bn = (g_conv, b_conv, mu_conv, var_conv)
    fc_bn = (g_fc, b_fc, mu_fc, var_fc)

    out = skconv_forward(x, conv_w, conv_bn, fc_w, fc_bn, fcs_w, eps=EPS)
    out = jax.block_until_ready(out)

    ref = skconv_reference(x, conv_w, conv_bn, fc_w, fc_bn, fcs_w, eps=EPS)
    ref = jax.block_until_ready(ref)

    assert out.shape == (B, C, H, W)
    assert jnp.allclose(out, ref, atol=2e-4, rtol=2e-4), "mismatch vs reference"

    print("KERNEL_OK")
</pallas_src>

<mosaic_0001>
module attributes {stable_mosaic.version = 11 : i64} {
  func.func @skconv_kernel(%arg0: i32, %arg1: memref<1x20x20x32xf32, #tpu.memory_space<vmem>>, %arg2: memref<18x32x32xf32, #tpu.memory_space<vmem>>, %arg3: memref<2x1x32xf32, #tpu.memory_space<vmem>>, %arg4: memref<2x1x32xf32, #tpu.memory_space<vmem>>, %arg5: memref<32x32xf32, #tpu.memory_space<vmem>>, %arg6: memref<1x32xf32, #tpu.memory_space<vmem>>, %arg7: memref<1x32xf32, #tpu.memory_space<vmem>>, %arg8: memref<2x32x32xf32, #tpu.memory_space<vmem>>, %arg9: memref<1x256x32xf32, #tpu.memory_space<vmem>>, %arg10: memref<2x256x32xf32, #tpu.memory_space<vmem>>) attributes {dimension_semantics = [#tpu.dimension_semantics<parallel>], iteration_bounds = array<i64: 2>, scalar_prefetch = 0 : i64, scratch_operands = 1 : i64, tpu.core_type = #tpu.core_type<tc>, window_params = [{transform_indices = @transform_0, window_bounds = array<i64: 1, 20, 20, 32>}, {pipeline_mode = #tpu.pipeline_mode<synchronous>, transform_indices = @transform_1, window_bounds = array<i64: 18, 32, 32>}, {pipeline_mode = #tpu.pipeline_mode<synchronous>, transform_indices = @transform_2, window_bounds = array<i64: 2, 1, 32>}, {pipeline_mode = #tpu.pipeline_mode<synchronous>, transform_indices = @transform_3, window_bounds = array<i64: 2, 1, 32>}, {pipeline_mode = #tpu.pipeline_mode<synchronous>, transform_indices = @transform_4, window_bounds = array<i64: 32, 32>}, {pipeline_mode = #tpu.pipeline_mode<synchronous>, transform_indices = @transform_5, window_bounds = array<i64: 1, 32>}, {pipeline_mode = #tpu.pipeline_mode<synchronous>, transform_indices = @transform_6, window_bounds = array<i64: 1, 32>}, {pipeline_mode = #tpu.pipeline_mode<synchronous>, transform_indices = @transform_7, window_bounds = array<i64: 2, 32, 32>}, {transform_indices = @transform_8, window_bounds = array<i64: 1, 256, 32>}]} {
    %cst = arith.constant 0.000000e+00 : f32
    %0 = vector.broadcast %cst : f32 to vector<1x32xf32>
    %cst_0 = arith.constant 0.000000e+00 : f32
    %1 = vector.broadcast %cst_0 : f32 to vector<256x32xf32>
    %c0 = arith.constant 0 : index
    %c1 = arith.constant 1 : index
    %c1_1 = arith.constant 1 : index
    %c0_2 = arith.constant 0 : index
    %2 = vector.load %arg1[%c0, %c1, %c1_1, %c0_2] : memref<1x20x20x32xf32, #tpu.memory_space<vmem>>, vector<1x16x16x32xf32>
    %3 = vector.shape_cast %2 : vector<1x16x16x32xf32> to vector<16x16x32xf32>
    %4 = vector.shape_cast %3 : vector<16x16x32xf32> to vector<256x32xf32>
    %c0_3 = arith.constant 0 : index
    %c0_4 = arith.constant 0 : index
    %c0_5 = arith.constant 0 : index
    %5 = vector.load %arg2[%c0_3, %c0_4, %c0_5] : memref<18x32x32xf32, #tpu.memory_space<vmem>>, vector<1x32x32xf32>
    %6 = vector.shape_cast %5 : vector<1x32x32xf32> to vector<32x32xf32>
    %cst_6 = arith.constant dense<0.000000e+00> : vector<256x32xf32>
    %7 = tpu.matmul %4, %6, %cst_6 {dimension_numbers = #tpu.dot_dimension_numbers<[1], [0], [0], [1], [0, 0, 1, 1], [], []>} : vector<256x32xf32>, vector<32x32xf32>, vector<256x32xf32> -> vector<256x32xf32>
    %8 = arith.addf %1, %7 : vector<256x32xf32>
    %c0_7 = arith.constant 0 : index
    %c1_8 = arith.constant 1 : index
    %c2 = arith.constant 2 : index
    %c0_9 = arith.constant 0 : index
    %9 = vector.load %arg1[%c0_7, %c1_8, %c2, %c0_9] : memref<1x20x20x32xf32, #tpu.memory_space<vmem>>, vector<1x16x16x32xf32>
    %10 = vector.shape_cast %9 : vector<1x16x16x32xf32> to vector<16x16x32xf32>
    %11 = vector.shape_cast %10 : vector<16x16x32xf32> to vector<256x32xf32>
    %c1_10 = arith.constant 1 : index
    %c0_11 = arith.constant 0 : index
    %c0_12 = arith.constant 0 : index
    %12 = vector.load %arg2[%c1_10, %c0_11, %c0_12] : memref<18x32x32xf32, #tpu.memory_space<vmem>>, vector<1x32x32xf32>
    %13 = vector.shape_cast %12 : vector<1x32x32xf32> to vector<32x32xf32>
    %cst_13 = arith.constant dense<0.000000e+00> : vector<256x32xf32>
    %14 = tpu.matmul %11, %13, %cst_13 {dimension_numbers = #tpu.dot_dimension_numbers<[1], [0], [0], [1], [0, 0, 1, 1], [], []>} : vector<256x32xf32>, vector<32x32xf32>, vector<256x32xf32> -> vector<256x32xf32>
    %15 = arith.addf %8, %14 : vector<256x32xf32>
    %c0_14 = arith.constant 0 : index
    %c1_15 = arith.constant 1 : index
    %c3 = arith.constant 3 : index
    %c0_16 = arith.constant 0 : index
    %16 = vector.load %arg1[%c0_14, %c1_15, %c3, %c0_16] : memref<1x20x20x32xf32, #tpu.memory_space<vmem>>, vector<1x16x16x32xf32>
    %17 = vector.shape_cast %16 : vector<1x16x16x32xf32> to vector<16x16x32xf32>
    %18 = vector.shape_cast %17 : vector<16x16x32xf32> to vector<256x32xf32>
    %c2_17 = arith.constant 2 : index
    %c0_18 = arith.constant 0 : index
    %c0_19 = arith.constant 0 : index
    %19 = vector.load %arg2[%c2_17, %c0_18, %c0_19] : memref<18x32x32xf32, #tpu.memory_space<vmem>>, vector<1x32x32xf32>
    %20 = vector.shape_cast %19 : vector<1x32x32xf32> to vector<32x32xf32>
    %cst_20 = arith.constant dense<0.000000e+00> : vector<256x32xf32>
    %21 = tpu.matmul %18, %20, %cst_20 {dimension_numbers = #tpu.dot_dimension_numbers<[1], [0], [0], [1], [0, 0, 1, 1], [], []>} : vector<256x32xf32>, vector<32x32xf32>, vector<256x32xf32> -> vector<256x32xf32>
    %22 = arith.addf %15, %21 : vector<256x32xf32>
    %c0_21 = arith.constant 0 : index
    %c2_22 = arith.constant 2 : index
    %c1_23 = arith.constant 1 : index
    %c0_24 = arith.constant 0 : index
    %23 = vector.load %arg1[%c0_21, %c2_22, %c1_23, %c0_24] : memref<1x20x20x32xf32, #tpu.memory_space<vmem>>, vector<1x16x16x32xf32>
    %24 = vector.shape_cast %23 : vector<1x16x16x32xf32> to vector<16x16x32xf32>
    %25 = vector.shape_cast %24 : vector<16x16x32xf32> to vector<256x32xf32>
    %c3_25 = arith.constant 3 : index
    %c0_26 = arith.constant 0 : index
    %c0_27 = arith.constant 0 : index
    %26 = vector.load %arg2[%c3_25, %c0_26, %c0_27] : memref<18x32x32xf32, #tpu.memory_space<vmem>>, vector<1x32x32xf32>
    %27 = vector.shape_cast %26 : vector<1x32x32xf32> to vector<32x32xf32>
    %cst_28 = arith.constant dense<0.000000e+00> : vector<256x32xf32>
    %28 = tpu.matmul %25, %27, %cst_28 {dimension_numbers = #tpu.dot_dimension_numbers<[1], [0], [0], [1], [0, 0, 1, 1], [], []>} : vector<256x32xf32>, vector<32x32xf32>, vector<256x32xf32> -> vector<256x32xf32>
    %29 = arith.addf %22, %28 : vector<256x32xf32>
    %c0_29 = arith.constant 0 : index
    %c2_30 = arith.constant 2 : index
    %c2_31 = arith.constant 2 : index
    %c0_32 = arith.constant 0 : index
    %30 = vector.load %arg1[%c0_29, %c2_30, %c2_31, %c0_32] : memref<1x20x20x32xf32, #tpu.memory_space<vmem>>, vector<1x16x16x32xf32>
    %31 = vector.shape_cast %30 : vector<1x16x16x32xf32> to vector<16x16x32xf32>
    %32 = vector.shape_cast %31 : vector<16x16x32xf32> to vector<256x32xf32>
    %c4 = arith.constant 4 : index
    %c0_33 = arith.constant 0 : index
    %c0_34 = arith.constant 0 : index
    %33 = vector.load %arg2[%c4, %c0_33, %c0_34] : memref<18x32x32xf32, #tpu.memory_space<vmem>>, vector<1x32x32xf32>
    %34 = vector.shape_cast %33 : vector<1x32x32xf32> to vector<32x32xf32>
    %cst_35 = arith.constant dense<0.000000e+00> : vector<256x32xf32>
    %35 = tpu.matmul %32, %34, %cst_35 {dimension_numbers = #tpu.dot_dimension_numbers<[1], [0], [0], [1], [0, 0, 1, 1], [], []>} : vector<256x32xf32>, vector<32x32xf32>, vector<256x32xf32> -> vector<256x32xf32>
    %36 = arith.addf %29, %35 : vector<256x32xf32>
    %c0_36 = arith.constant 0 : index
    %c2_37 = arith.constant 2 : index
    %c3_38 = arith.constant 3 : index
    %c0_39 = arith.constant 0 : index
    %37 = vector.load %arg1[%c0_36, %c2_37, %c3_38, %c0_39] : memref<1x20x20x32xf32, #tpu.memory_space<vmem>>, vector<1x16x16x32xf32>
    %38 = vector.shape_cast %37 : vector<1x16x16x32xf32> to vector<16x16x32xf32>
    %39 = vector.shape_cast %38 : vector<16x16x32xf32> to vector<256x32xf32>
    %c5 = arith.constant 5 : index
    %c0_40 = arith.constant 0 : index
    %c0_41 = arith.constant 0 : index
    %40 = vector.load %arg2[%c5, %c0_40, %c0_41] : memref<18x32x32xf32, #tpu.memory_space<vmem>>, vector<1x32x32xf32>
    %41 = vector.shape_cast %40 : vector<1x32x32xf32> to vector<32x32xf32>
    %cst_42 = arith.constant dense<0.000000e+00> : vector<256x32xf32>
    %42 = tpu.matmul %39, %41, %cst_42 {dimension_numbers = #tpu.dot_dimension_numbers<[1], [0], [0], [1], [0, 0, 1, 1], [], []>} : vector<256x32xf32>, vector<32x32xf32>, vector<256x32xf32> -> vector<256x32xf32>
    %43 = arith.addf %36, %42 : vector<256x32xf32>
    %c0_43 = arith.constant 0 : index
    %c3_44 = arith.constant 3 : index
    %c1_45 = arith.constant 1 : index
    %c0_46 = arith.constant 0 : index
    %44 = vector.load %arg1[%c0_43, %c3_44, %c1_45, %c0_46] : memref<1x20x20x32xf32, #tpu.memory_space<vmem>>, vector<1x16x16x32xf32>
    %45 = vector.shape_cast %44 : vector<1x16x16x32xf32> to vector<16x16x32xf32>
    %46 = vector.shape_cast %45 : vector<16x16x32xf32> to vector<256x32xf32>
    %c6 = arith.constant 6 : index
    %c0_47 = arith.constant 0 : index
    %c0_48 = arith.constant 0 : index
    %47 = vector.load %arg2[%c6, %c0_47, %c0_48] : memref<18x32x32xf32, #tpu.memory_space<vmem>>, vector<1x32x32xf32>
    %48 = vector.shape_cast %47 : vector<1x32x32xf32> to vector<32x32xf32>
    %cst_49 = arith.constant dense<0.000000e+00> : vector<256x32xf32>
    %49 = tpu.matmul %46, %48, %cst_49 {dimension_numbers = #tpu.dot_dimension_numbers<[1], [0], [0], [1], [0, 0, 1, 1], [], []>} : vector<256x32xf32>, vector<32x32xf32>, vector<256x32xf32> -> vector<256x32xf32>
    %50 = arith.addf %43, %49 : vector<256x32xf32>
    %c0_50 = arith.constant 0 : index
    %c3_51 = arith.constant 3 : index
    %c2_52 = arith.constant 2 : index
    %c0_53 = arith.constant 0 : index
    %51 = vector.load %arg1[%c0_50, %c3_51, %c2_52, %c0_53] : memref<1x20x20x32xf32, #tpu.memory_space<vmem>>, vector<1x16x16x32xf32>
    %52 = vector.shape_cast %51 : vector<1x16x16x32xf32> to vector<16x16x32xf32>
    %53 = vector.shape_cast %52 : vector<16x16x32xf32> to vector<256x32xf32>
    %c7 = arith.constant 7 : index
    %c0_54 = arith.constant 0 : index
    %c0_55 = arith.constant 0 : index
    %54 = vector.load %arg2[%c7, %c0_54, %c0_55] : memref<18x32x32xf32, #tpu.memory_space<vmem>>, vector<1x32x32xf32>
    %55 = vector.shape_cast %54 : vector<1x32x32xf32> to vector<32x32xf32>
    %cst_56 = arith.constant dense<0.000000e+00> : vector<256x32xf32>
    %56 = tpu.matmul %53, %55, %cst_56 {dimension_numbers = #tpu.dot_dimension_numbers<[1], [0], [0], [1], [0, 0, 1, 1], [], []>} : vector<256x32xf32>, vector<32x32xf32>, vector<256x32xf32> -> vector<256x32xf32>
    %57 = arith.addf %50, %56 : vector<256x32xf32>
    %c0_57 = arith.constant 0 : index
    %c3_58 = arith.constant 3 : index
    %c3_59 = arith.constant 3 : index
    %c0_60 = arith.constant 0 : index
    %58 = vector.load %arg1[%c0_57, %c3_58, %c3_59, %c0_60] : memref<1x20x20x32xf32, #tpu.memory_space<vmem>>, vector<1x16x16x32xf32>
    %59 = vector.shape_cast %58 : vector<1x16x16x32xf32> to vector<16x16x32xf32>
    %60 = vector.shape_cast %59 : vector<16x16x32xf32> to vector<256x32xf32>
    %c8 = arith.constant 8 : index
    %c0_61 = arith.constant 0 : index
    %c0_62 = arith.constant 0 : index
    %61 = vector.load %arg2[%c8, %c0_61, %c0_62] : memref<18x32x32xf32, #tpu.memory_space<vmem>>, vector<1x32x32xf32>
    %62 = vector.shape_cast %61 : vector<1x32x32xf32> to vector<32x32xf32>
    %cst_63 = arith.constant dense<0.000000e+00> : vector<256x32xf32>
    %63 = tpu.matmul %60, %62, %cst_63 {dimension_numbers = #tpu.dot_dimension_numbers<[1], [0], [0], [1], [0, 0, 1, 1], [], []>} : vector<256x32xf32>, vector<32x32xf32>, vector<256x32xf32> -> vector<256x32xf32>
    %64 = arith.addf %57, %63 : vector<256x32xf32>
    %c0_64 = arith.constant 0 : index
    %c0_65 = arith.constant 0 : index
    %c0_66 = arith.constant 0 : index
    %65 = vector.load %arg3[%c0_64, %c0_65, %c0_66] : memref<2x1x32xf32, #tpu.memory_space<vmem>>, vector<1x1x32xf32>
    %66 = vector.shape_cast %65 : vector<1x1x32xf32> to vector<1x32xf32>
    %67 = vector.broadcast %66 : vector<1x32xf32> to vector<256x32xf32>
    %68 = arith.mulf %64, %67 : vector<256x32xf32>
    %c0_67 = arith.constant 0 : index
    %c0_68 = arith.constant 0 : index
    %c0_69 = arith.constant 0 : index
    %69 = vector.load %arg4[%c0_67, %c0_68, %c0_69] : memref<2x1x32xf32, #tpu.memory_space<vmem>>, vector<1x1x32xf32>
    %70 = vector.shape_cast %69 : vector<1x1x32xf32> to vector<1x32xf32>
    %71 = vector.broadcast %70 : vector<1x32xf32> to vector<256x32xf32>
    %72 = arith.addf %68, %71 : vector<256x32xf32>
    %cst_70 = arith.constant 0.000000e+00 : f32
    %73 = vector.broadcast %cst_70 : f32 to vector<256x32xf32>
    %74 = arith.maximumf %72, %73 : vector<256x32xf32>
    %c0_71 = arith.constant 0 : index
    %c0_72 = arith.constant 0 : index
    %c0_73 = arith.constant 0 : index
    %75 = vector.load %arg10[%c0_71, %c0_72, %c0_73] : memref<2x256x32xf32, #tpu.memory_space<vmem>>, vector<1x256x32xf32>
    %76 = vector.shape_cast %75 : vector<1x256x32xf32> to vector<256x32xf32>
    %77 = vector.shape_cast %74 : vector<256x32xf32> to vector<1x256x32xf32>
    tpu.vector_store %arg10[%c0_71, %c0_72, %c0_73], %77 {strides = array<i32>} : memref<2x256x32xf32, #tpu.memory_space<vmem>>, vector<1x256x32xf32>,
    %cst_74 = arith.constant dense<0.000000e+00> : vector<32xf32>
    %78 = vector.multi_reduction <add>, %74, %cst_74 [0] : vector<256x32xf32> to vector<32xf32>
    %79 = vector.shape_cast %78 : vector<32xf32> to vector<1x32xf32>
    %80 = arith.addf %0, %79 : vector<1x32xf32>
    %cst_75 = arith.constant 0.000000e+00 : f32
    %81 = vector.broadcast %cst_75 : f32 to vector<256x32xf32>
    %c0_76 = arith.constant 0 : index
    %c0_77 = arith.constant 0 : index
    %c0_78 = arith.constant 0 : index
    %c0_79 = arith.constant 0 : index
    %82 = vector.load %arg1[%c0_76, %c0_77, %c0_78, %c0_79] : memref<1x20x20x32xf32, #tpu.memory_space<vmem>>, vector<1x16x16x32xf32>
    %83 = vector.shape_cast %82 : vector<1x16x16x32xf32> to vector<16x16x32xf32>
    %84 = vector.shape_cast %83 : vector<16x16x32xf32> to vector<256x32xf32>
    %c9 = arith.constant 9 : index
    %c0_80 = arith.constant 0 : index
    %c0_81 = arith.constant 0 : index
    %85 = vector.load %arg2[%c9, %c0_80, %c0_81] : memref<18x32x32xf32, #tpu.memory_space<vmem>>, vector<1x32x32xf32>
    %86 = vector.shape_cast %85 : vector<1x32x32xf32> to vector<32x32xf32>
    %cst_82 = arith.constant dense<0.000000e+00> : vector<256x32xf32>
    %87 = tpu.matmul %84, %86, %cst_82 {dimension_numbers = #tpu.dot_dimension_numbers<[1], [0], [0], [1], [0, 0, 1, 1], [], []>} : vector<256x32xf32>, vector<32x32xf32>, vector<256x32xf32> -> vector<256x32xf32>
    %88 = arith.addf %81, %87 : vector<256x32xf32>
    %c0_83 = arith.constant 0 : index
    %c0_84 = arith.constant 0 : index
    %c2_85 = arith.constant 2 : index
    %c0_86 = arith.constant 0 : index
    %89 = vector.load %arg1[%c0_83, %c0_84, %c2_85, %c0_86] : memref<1x20x20x32xf32, #tpu.memory_space<vmem>>, vector<1x16x16x32xf32>
    %90 = vector.shape_cast %89 : vector<1x16x16x32xf32> to vector<16x16x32xf32>
    %91 = vector.shape_cast %90 : vector<16x16x32xf32> to vector<256x32xf32>
    %c10 = arith.constant 10 : index
    %c0_87 = arith.constant 0 : index
    %c0_88 = arith.constant 0 : index
    %92 = vector.load %arg2[%c10, %c0_87, %c0_88] : memref<18x32x32xf32, #tpu.memory_space<vmem>>, vector<1x32x32xf32>
    %93 = vector.shape_cast %92 : vector<1x32x32xf32> to vector<32x32xf32>
    %cst_89 = arith.constant dense<0.000000e+00> : vector<256x32xf32>
    %94 = tpu.matmul %91, %93, %cst_89 {dimension_numbers = #tpu.dot_dimension_numbers<[1], [0], [0], [1], [0, 0, 1, 1], [], []>} : vector<256x32xf32>, vector<32x32xf32>, vector<256x32xf32> -> vector<256x32xf32>
    %95 = arith.addf %88, %94 : vector<256x32xf32>
    %c0_90 = arith.constant 0 : index
    %c0_91 = arith.constant 0 : index
    %c4_92 = arith.constant 4 : index
    %c0_93 = arith.constant 0 : index
    %96 = vector.load %arg1[%c0_90, %c0_91, %c4_92, %c0_93] : memref<1x20x20x32xf32, #tpu.memory_space<vmem>>, vector<1x16x16x32xf32>
    %97 = vector.shape_cast %96 : vector<1x16x16x32xf32> to vector<16x16x32xf32>
    %98 = vector.shape_cast %97 : vector<16x16x32xf32> to vector<256x32xf32>
    %c11 = arith.constant 11 : index
    %c0_94 = arith.constant 0 : index
    %c0_95 = arith.constant 0 : index
    %99 = vector.load %arg2[%c11, %c0_94, %c0_95] : memref<18x32x32xf32, #tpu.memory_space<vmem>>, vector<1x32x32xf32>
    %100 = vector.shape_cast %99 : vector<1x32x32xf32> to vector<32x32xf32>
    %cst_96 = arith.constant dense<0.000000e+00> : vector<256x32xf32>
    %101 = tpu.matmul %98, %100, %cst_96 {dimension_numbers = #tpu.dot_dimension_numbers<[1], [0], [0], [1], [0, 0, 1, 1], [], []>} : vector<256x32xf32>, vector<32x32xf32>, vector<256x32xf32> -> vector<256x32xf32>
    %102 = arith.addf %95, %101 : vector<256x32xf32>
    %c0_97 = arith.constant 0 : index
    %c2_98 = arith.constant 2 : index
    %c0_99 = arith.constant 0 : index
    %c0_100 = arith.constant 0 : index
    %103 = vector.load %arg1[%c0_97, %c2_98, %c0_99, %c0_100] : memref<1x20x20x32xf32, #tpu.memory_space<vmem>>, vector<1x16x16x32xf32>
    %104 = vector.shape_cast %103 : vector<1x16x16x32xf32> to vector<16x16x32xf32>
    %105 = vector.shape_cast %104 : vector<16x16x32xf32> to vector<256x32xf32>
    %c12 = arith.constant 12 : index
    %c0_101 = arith.constant 0 : index
    %c0_102 = arith.constant 0 : index
    %106 = vector.load %arg2[%c12, %c0_101, %c0_102] : memref<18x32x32xf32, #tpu.memory_space<vmem>>, vector<1x32x32xf32>
    %107 = vector.shape_cast %106 : vector<1x32x32xf32> to vector<32x32xf32>
    %cst_103 = arith.constant dense<0.000000e+00> : vector<256x32xf32>
    %108 = tpu.matmul %105, %107, %cst_103 {dimension_numbers = #tpu.dot_dimension_numbers<[1], [0], [0], [1], [0, 0, 1, 1], [], []>} : vector<256x32xf32>, vector<32x32xf32>, vector<256x32xf32> -> vector<256x32xf32>
    %109 = arith.addf %102, %108 : vector<256x32xf32>
    %c0_104 = arith.constant 0 : index
    %c2_105 = arith.constant 2 : index
    %c2_106 = arith.constant 2 : index
    %c0_107 = arith.constant 0 : index
    %110 = vector.load %arg1[%c0_104, %c2_105, %c2_106, %c0_107] : memref<1x20x20x32xf32, #tpu.memory_space<vmem>>, vector<1x16x16x32xf32>
    %111 = vector.shape_cast %110 : vector<1x16x16x32xf32> to vector<16x16x32xf32>
    %112 = vector.shape_cast %111 : vector<16x16x32xf32> to vector<256x32xf32>
    %c13 = arith.constant 13 : index
    %c0_108 = arith.constant 0 : index
    %c0_109 = arith.constant 0 : index
    %113 = vector.load %arg2[%c13, %c0_108, %c0_109] : memref<18x32x32xf32, #tpu.memory_space<vmem>>, vector<1x32x32xf32>
    %114 = vector.shape_cast %113 : vector<1x32x32xf32> to vector<32x32xf32>
    %cst_110 = arith.constant dense<0.000000e+00> : vector<256x32xf32>
    %115 = tpu.matmul %112, %114, %cst_110 {dimension_numbers = #tpu.dot_dimension_numbers<[1], [0], [0], [1], [0, 0, 1, 1], [], []>} : vector<256x32xf32>, vector<32x32xf32>, vector<256x32xf32> -> vector<256x32xf32>
    %116 = arith.addf %109, %115 : vector<256x32xf32>
    %c0_111 = arith.constant 0 : index
    %c2_112 = arith.constant 2 : index
    %c4_113 = arith.constant 4 : index
    %c0_114 = arith.constant 0 : index
    %117 = vector.load %arg1[%c0_111, %c2_112, %c4_113, %c0_114] : memref<1x20x20x32xf32, #tpu.memory_space<vmem>>, vector<1x16x16x32xf32>
    %118 = vector.shape_cast %117 : vector<1x16x16x32xf32> to vector<16x16x32xf32>
    %119 = vector.shape_cast %118 : vector<16x16x32xf32> to vector<256x32xf32>
    %c14 = arith.constant 14 : index
    %c0_115 = arith.constant 0 : index
    %c0_116 = arith.constant 0 : index
    %120 = vector.load %arg2[%c14, %c0_115, %c0_116] : memref<18x32x32xf32, #tpu.memory_space<vmem>>, vector<1x32x32xf32>
    %121 = vector.shape_cast %120 : vector<1x32x32xf32> to vector<32x32xf32>
    %cst_117 = arith.constant dense<0.000000e+00> : vector<256x32xf32>
    %122 = tpu.matmul %119, %121, %cst_117 {dimension_numbers = #tpu.dot_dimension_numbers<[1], [0], [0], [1], [0, 0, 1, 1], [], []>} : vector<256x32xf32>, vector<32x32xf32>, vector<256x32xf32> -> vector<256x32xf32>
    %123 = arith.addf %116, %122 : vector<256x32xf32>
    %c0_118 = arith.constant 0 : index
    %c4_119 = arith.constant 4 : index
    %c0_120 = arith.constant 0 : index
    %c0_121 = arith.constant 0 : index
    %124 = vector.load %arg1[%c0_118, %c4_119, %c0_120, %c0_121] : memref<1x20x20x32xf32, #tpu.memory_space<vmem>>, vector<1x16x16x32xf32>
    %125 = vector.shape_cast %124 : vector<1x16x16x32xf32> to vector<16x16x32xf32>
    %126 = vector.shape_cast %125 : vector<16x16x32xf32> to vector<256x32xf32>
    %c15 = arith.constant 15 : index
    %c0_122 = arith.constant 0 : index
    %c0_123 = arith.constant 0 : index
    %127 = vector.load %arg2[%c15, %c0_122, %c0_123] : memref<18x32x32xf32, #tpu.memory_space<vmem>>, vector<1x32x32xf32>
    %128 = vector.shape_cast %127 : vector<1x32x32xf32> to vector<32x32xf32>
    %cst_124 = arith.constant dense<0.000000e+00> : vector<256x32xf32>
    %129 = tpu.matmul %126, %128, %cst_124 {dimension_numbers = #tpu.dot_dimension_numbers<[1], [0], [0], [1], [0, 0, 1, 1], [], []>} : vector<256x32xf32>, vector<32x32xf32>, vector<256x32xf32> -> vector<256x32xf32>
    %130 = arith.addf %123, %129 : vector<256x32xf32>
    %c0_125 = arith.constant 0 : index
    %c4_126 = arith.constant 4 : index
    %c2_127 = arith.constant 2 : index
    %c0_128 = arith.constant 0 : index
    %131 = vector.load %arg1[%c0_125, %c4_126, %c2_127, %c0_128] : memref<1x20x20x32xf32, #tpu.memory_space<vmem>>, vector<1x16x16x32xf32>
    %132 = vector.shape_cast %131 : vector<1x16x16x32xf32> to vector<16x16x32xf32>
    %133 = vector.shape_cast %132 : vector<16x16x32xf32> to vector<256x32xf32>
    %c16 = arith.constant 16 : index
    %c0_129 = arith.constant 0 : index
    %c0_130 = arith.constant 0 : index
    %134 = vector.load %arg2[%c16, %c0_129, %c0_130] : memref<18x32x32xf32, #tpu.memory_space<vmem>>, vector<1x32x32xf32>
    %135 = vector.shape_cast %134 : vector<1x32x32xf32> to vector<32x32xf32>
    %cst_131 = arith.constant dense<0.000000e+00> : vector<256x32xf32>
    %136 = tpu.matmul %133, %135, %cst_131 {dimension_numbers = #tpu.dot_dimension_numbers<[1], [0], [0], [1], [0, 0, 1, 1], [], []>} : vector<256x32xf32>, vector<32x32xf32>, vector<256x32xf32> -> vector<256x32xf32>
    %137 = arith.addf %130, %136 : vector<256x32xf32>
    %c0_132 = arith.constant 0 : index
    %c4_133 = arith.constant 4 : index
    %c4_134 = arith.constant 4 : index
    %c0_135 = arith.constant 0 : index
    %138 = vector.load %arg1[%c0_132, %c4_133, %c4_134, %c0_135] : memref<1x20x20x32xf32, #tpu.memory_space<vmem>>, vector<1x16x16x32xf32>
    %139 = vector.shape_cast %138 : vector<1x16x16x32xf32> to vector<16x16x32xf32>
    %140 = vector.shape_cast %139 : vector<16x16x32xf32> to vector<256x32xf32>
    %c17 = arith.constant 17 : index
    %c0_136 = arith.constant 0 : index
    %c0_137 = arith.constant 0 : index
    %141 = vector.load %arg2[%c17, %c0_136, %c0_137] : memref<18x32x32xf32, #tpu.memory_space<vmem>>, vector<1x32x32xf32>
    %142 = vector.shape_cast %141 : vector<1x32x32xf32> to vector<32x32xf32>
    %cst_138 = arith.constant dense<0.000000e+00> : vector<256x32xf32>
    %143 = tpu.matmul %140, %142, %cst_138 {dimension_numbers = #tpu.dot_dimension_numbers<[1], [0], [0], [1], [0, 0, 1, 1], [], []>} : vector<256x32xf32>, vector<32x32xf32>, vector<256x32xf32> -> vector<256x32xf32>
    %144 = arith.addf %137, %143 : vector<256x32xf32>
    %c1_139 = arith.constant 1 : index
    %c0_140 = arith.constant 0 : index
    %c0_141 = arith.constant 0 : index
    %145 = vector.load %arg3[%c1_139, %c0_140, %c0_141] : memref<2x1x32xf32, #tpu.memory_space<vmem>>, vector<1x1x32xf32>
    %146 = vector.shape_cast %145 : vector<1x1x32xf32> to vector<1x32xf32>
    %147 = vector.broadcast %146 : vector<1x32xf32> to vector<256x32xf32>
    %148 = arith.mulf %144, %147 : vector<256x32xf32>
    %c1_142 = arith.constant 1 : index
    %c0_143 = arith.constant 0 : index
    %c0_144 = arith.constant 0 : index
    %149 = vector.load %arg4[%c1_142, %c0_143, %c0_144] : memref<2x1x32xf32, #tpu.memory_space<vmem>>, vector<1x1x32xf32>
    %150 = vector.shape_cast %149 : vector<1x1x32xf32> to vector<1x32xf32>
    %151 = vector.broadcast %150 : vector<1x32xf32> to vector<256x32xf32>
    %152 = arith.addf %148, %151 : vector<256x32xf32>
    %cst_145 = arith.constant 0.000000e+00 : f32
    %153 = vector.broadcast %cst_145 : f32 to vector<256x32xf32>
    %154 = arith.maximumf %152, %153 : vector<256x32xf32>
    %c1_146 = arith.constant 1 : index
    %c0_147 = arith.constant 0 : index
    %c0_148 = arith.constant 0 : index
    %155 = vector.load %arg10[%c1_146, %c0_147, %c0_148] : memref<2x256x32xf32, #tpu.memory_space<vmem>>, vector<1x256x32xf32>
    %156 = vector.shape_cast %155 : vector<1x256x32xf32> to vector<256x32xf32>
    %157 = vector.shape_cast %154 : vector<256x32xf32> to vector<1x256x32xf32>
    tpu.vector_store %arg10[%c1_146, %c0_147, %c0_148], %157 {strides = array<i32>} : memref<2x256x32xf32, #tpu.memory_space<vmem>>, vector<1x256x32xf32>,
    %cst_149 = arith.constant dense<0.000000e+00> : vector<32xf32>
    %158 = vector.multi_reduction <add>, %154, %cst_149 [0] : vector<256x32xf32> to vector<32xf32>
    %159 = vector.shape_cast %158 : vector<32xf32> to vector<1x32xf32>
    %160 = arith.addf %80, %159 : vector<1x32xf32>
    %cst_150 = arith.constant 3.906250e-03 : f32
    %161 = vector.broadcast %cst_150 : f32 to vector<1x32xf32>
    %162 = arith.mulf %160, %161 : vector<1x32xf32>
    %c0_151 = arith.constant 0 : index
    %c0_152 = arith.constant 0 : index
    %163 = vector.load %arg5[%c0_151, %c0_152] : memref<32x32xf32, #tpu.memory_space<vmem>>, vector<32x32xf32>
    %cst_153 = arith.constant dense<0.000000e+00> : vector<1x32xf32>
    %164 = tpu.matmul %162, %163, %cst_153 {dimension_numbers = #tpu.dot_dimension_numbers<[1], [0], [0], [1], [0, 0, 1, 1], [], []>} : vector<1x32xf32>, vector<32x32xf32>, vector<1x32xf32> -> vector<1x32xf32>
    %c0_154 = arith.constant 0 : index
    %c0_155 = arith.constant 0 : index
    %165 = vector.load %arg6[%c0_154, %c0_155] : memref<1x32xf32, #tpu.memory_space<vmem>>, vector<1x32xf32>
    %166 = arith.mulf %164, %165 : vector<1x32xf32>
    %c0_156 = arith.constant 0 : index
    %c0_157 = arith.constant 0 : index
    %167 = vector.load %arg7[%c0_156, %c0_157] : memref<1x32xf32, #tpu.memory_space<vmem>>, vector<1x32xf32>
    %168 = arith.addf %166, %167 : vector<1x32xf32>
    %cst_158 = arith.constant 0.000000e+00 : f32
    %169 = vector.broadcast %cst_158 : f32 to vector<1x32xf32>
    %170 = arith.maximumf %168, %169 : vector<1x32xf32>
    %c0_159 = arith.constant 0 : index
    %c0_160 = arith.constant 0 : index
    %c0_161 = arith.constant 0 : index
    %171 = vector.load %arg8[%c0_159, %c0_160, %c0_161] : memref<2x32x32xf32, #tpu.memory_space<vmem>>, vector<1x32x32xf32>
    %172 = vector.shape_cast %171 : vector<1x32x32xf32> to vector<32x32xf32>
    %cst_162 = arith.constant dense<0.000000e+00> : vector<1x32xf32>
    %173 = tpu.matmul %170, %172, %cst_162 {dimension_numbers = #tpu.dot_dimension_numbers<[1], [0], [0], [1], [0, 0, 1, 1], [], []>} : vector<1x32xf32>, vector<32x32xf32>, vector<1x32xf32> -> vector<1x32xf32>
    %c1_163 = arith.constant 1 : index
    %c0_164 = arith.constant 0 : index
    %c0_165 = arith.constant 0 : index
    %174 = vector.load %arg8[%c1_163, %c0_164, %c0_165] : memref<2x32x32xf32, #tpu.memory_space<vmem>>, vector<1x32x32xf32>
    %175 = vector.shape_cast %174 : vector<1x32x32xf32> to vector<32x32xf32>
    %cst_166 = arith.constant dense<0.000000e+00> : vector<1x32xf32>
    %176 = tpu.matmul %170, %175, %cst_166 {dimension_numbers = #tpu.dot_dimension_numbers<[1], [0], [0], [1], [0, 0, 1, 1], [], []>} : vector<1x32xf32>, vector<32x32xf32>, vector<1x32xf32> -> vector<1x32xf32>
    %177 = arith.maximumf %173, %176 : vector<1x32xf32>
    %178 = arith.subf %173, %177 : vector<1x32xf32>
    %179 = math.exp %178 : vector<1x32xf32>
    %180 = arith.subf %176, %177 : vector<1x32xf32>
    %181 = math.exp %180 : vector<1x32xf32>
    %182 = arith.addf %179, %181 : vector<1x32xf32>
    %cst_167 = arith.constant 1.000000e+00 : f32
    %183 = vector.broadcast %cst_167 : f32 to vector<1x32xf32>
    %184 = arith.divf %183, %182 : vector<1x32xf32>
    %c0_168 = arith.constant 0 : index
    %c0_169 = arith.constant 0 : index
    %c0_170 = arith.constant 0 : index
    %185 = vector.load %arg10[%c0_168, %c0_169, %c0_170] : memref<2x256x32xf32, #tpu.memory_space<vmem>>, vector<1x256x32xf32>
    %186 = vector.shape_cast %185 : vector<1x256x32xf32> to vector<256x32xf32>
    %187 = arith.mulf %179, %184 : vector<1x32xf32>
    %188 = vector.broadcast %187 : vector<1x32xf32> to vector<256x32xf32>
    %189 = arith.mulf %186, %188 : vector<256x32xf32>
    %c1_171 = arith.constant 1 : index
    %c0_172 = arith.constant 0 : index
    %c0_173 = arith.constant 0 : index
    %190 = vector.load %arg10[%c1_171, %c0_172, %c0_173] : memref<2x256x32xf32, #tpu.memory_space<vmem>>, vector<1x256x32xf32>
    %191 = vector.shape_cast %190 : vector<1x256x32xf32> to vector<256x32xf32>
    %192 = arith.mulf %181, %184 : vector<1x32xf32>
    %193 = vector.broadcast %192 : vector<1x32xf32> to vector<256x32xf32>
    %194 = arith.mulf %191, %193 : vector<256x32xf32>
    %195 = arith.addf %189, %194 : vector<256x32xf32>
    %c0_174 = arith.constant 0 : index
    %c0_175 = arith.constant 0 : index
    %c0_176 = arith.constant 0 : index
    %196 = vector.load %arg9[%c0_174, %c0_175, %c0_176] : memref<1x256x32xf32, #tpu.memory_space<vmem>>, vector<1x256x32xf32>
    %197 = vector.shape_cast %196 : vector<1x256x32xf32> to vector<256x32xf32>
    %198 = vector.shape_cast %195 : vector<256x32xf32> to vector<1x256x32xf32>
    tpu.vector_store %arg9[%c0_174, %c0_175, %c0_176], %198 {strides = array<i32>} : memref<1x256x32xf32, #tpu.memory_space<vmem>>, vector<1x256x32xf32>,
    return
  }
  func.func @transform_0(%arg0: i32) -> (i32, i32, i32, i32) {
    %c0_i32 = arith.constant 0 : i32
    %c0_i32_0 = arith.constant 0 : i32
    %c0_i32_1 = arith.constant 0 : i32
    %c0_i32_2 = arith.constant 0 : i32
    return %arg0, %c0_i32, %c0_i32_0, %c0_i32_1 : i32, i32, i32, i32
  }
  func.func @transform_1(%arg0: i32) -> (i32, i32, i32) {
    %c0_i32 = arith.constant 0 : i32
    %c0_i32_0 = arith.constant 0 : i32
    %c0_i32_1 = arith.constant 0 : i32
    %c0_i32_2 = arith.constant 0 : i32
    return %c0_i32, %c0_i32_0, %c0_i32_1 : i32, i32, i32
  }
  func.func @transform_2(%arg0: i32) -> (i32, i32, i32) {
    %c0_i32 = arith.constant 0 : i32
    %c0_i32_0 = arith.constant 0 : i32
    %c0_i32_1 = arith.constant 0 : i32
    %c0_i32_2 = arith.constant 0 : i32
    return %c0_i32, %c0_i32_0, %c0_i32_1 : i32, i32, i32
  }
  func.func @transform_3(%arg0: i32) -> (i32, i32, i32) {
    %c0_i32 = arith.constant 0 : i32
    %c0_i32_0 = arith.constant 0 : i32
    %c0_i32_1 = arith.constant 0 : i32
    %c0_i32_2 = arith.constant 0 : i32
    return %c0_i32, %c0_i32_0, %c0_i32_1 : i32, i32, i32
  }
  func.func @transform_4(%arg0: i32) -> (i32, i32) {
    %c0_i32 = arith.constant 0 : i32
    %c0_i32_0 = arith.constant 0 : i32
    %c0_i32_1 = arith.constant 0 : i32
    return %c0_i32, %c0_i32_0 : i32, i32
  }
  func.func @transform_5(%arg0: i32) -> (i32, i32) {
    %c0_i32 = arith.constant 0 : i32
    %c0_i32_0 = arith.constant 0 : i32
    %c0_i32_1 = arith.constant 0 : i32
    return %c0_i32, %c0_i32_0 : i32, i32
  }
  func.func @transform_6(%arg0: i32) -> (i32, i32) {
    %c0_i32 = arith.constant 0 : i32
    %c0_i32_0 = arith.constant 0 : i32
    %c0_i32_1 = arith.constant 0 : i32
    return %c0_i32, %c0_i32_0 : i32, i32
  }
  func.func @transform_7(%arg0: i32) -> (i32, i32, i32) {
    %c0_i32 = arith.constant 0 : i32
    %c0_i32_0 = arith.constant 0 : i32
    %c0_i32_1 = arith.constant 0 : i32
    %c0_i32_2 = arith.constant 0 : i32
    return %c0_i32, %c0_i32_0, %c0_i32_1 : i32, i32, i32
  }
  func.func @transform_8(%arg0: i32) -> (i32, i32, i32) {
    %c0_i32 = arith.constant 0 : i32
    %c0_i32_0 = arith.constant 0 : i32
    %c0_i32_1 = arith.constant 0 : i32
    return %arg0, %c0_i32, %c0_i32_0 : i32, i32, i32
  }
}

</mosaic_0001>

<bundles_post_ra>
// kernel: tpu_custom_call.1
= control target key start
LH: loop header
LB: loop body
LE: loop exit
PB: predicated region body
PF: predicated region fallthrough
CT: control target
= control target key end

     0   :  { %s7188_s27 = smov 0   ;;  %s10376_s0 = inlined_call_operand.vmem [shape: f32[2,20,20,32], index: 0, kind: input, shape index: {}]   ;;  %s10377_s1 = inlined_call_operand.vmem [shape: f32[18,32,32], index: 1, kind: input, shape index: {}]   ;;  %s10378_s2 = inlined_call_operand.vmem [shape: f32[2,1,32], index: 2, kind: input, shape index: {}]   ;;  %s10379_s3 = inlined_call_operand.vmem [shape: f32[2,1,32], index: 3, kind: input, shape index: {}]   ;;  %s10380_s4 = inlined_call_operand.vmem [shape: f32[32,32], index: 4, kind: input, shape index: {}]   ;;  %s10381_s5 = inlined_call_operand.vmem [shape: f32[1,32], index: 5, kind: input, shape index: {}]   ;;  %s10382_s6 = inlined_call_operand.vmem [shape: f32[1,32], index: 6, kind: input, shape index: {}]   ;;  %s10383_s7 = inlined_call_operand.vmem [shape: f32[2,32,32], index: 7, kind: input, shape index: {}]   ;;  %s10384_s8 = inlined_call_operand.vmem [shape: f32[2,256,32], index: 8, kind: output, shape index: {}]  }
   0x1 LB: > { %s5960_s28 = sadd.s32 4294967295, %s7141_s27   ;;  %p5964_p0 = scmp.ge.s32.totalorder %s7141_s27, 1  ;;  %s7141_s27 = sphi %s7188_s27, %s18_s27  }
   0x2   : > { %p262_p1 = scmp.lt.s32.totalorder %s7141_s27, 3 }
   0x4   : > { %p263_p2 = pnand %p5964_p0, %p262_p1 }
   0x6   : > { %266 = sbr.rel (%p263_p2) target bundleno = 1671 (0x687), region = 52 }
   0xb   : > { %v6035_v0 = vld [vmem:[%s10377_s1 + $0x38] sm:$0xff]  ;;  %v6034_v2 = vld [vmem:[%s10377_s1 + $0x30] sm:$0xff]  ;;  %p296_p3 = scmp.lt.s32.totalorder %s5960_s28, 1  ;;  %v6033_v4 = vld [vmem:[%s10377_s1 + $0x28] sm:$0xff]  ;;  %vm380_vm0 = vcmask 261120  }
   0xc   : > { %v342_v1 = vld [vmem:[%s10377_s1 + $0x18] sm:$0xff]  ;;  %489 = vmatpush.msra.mxu0 %v6035_v0  ;;  %v341_v3 = vld [vmem:[%s10377_s1 + $0x10] sm:$0xff]  ;;  %7104 = vmatpush.msra.mxu3 %v6035_v0  ;;  %v340_v5 = vld [vmem:[%s10377_s1 + $0x8] sm:$0xff] }
   0xd   : > { %698 = vmatpush.msra.mxu1 %v342_v1  ;;  %7108 = vmatpush.msra.mxu2 %v342_v1  ;;  %s10806_s28 = smov (!%p296_p3, %s5960_s28), 1  ;;  %v6032_v6 = vld [vmem:[%s10377_s1 + $0x20] sm:$0xff]  ;;  %v6271_v8 = vld [vmem:[%s10377_s1 + $0x98] sm:$0xff]  ;;  %v6270_v19 = vld [vmem:[%s10377_s1 + $0x90] sm:$0xff] }
   0xe   : > { %490 = vmatpush.msra.mxu0 %v6034_v2  ;;  %7105 = vmatpush.msra.mxu3 %v6034_v2  ;;  %v339_v7 = vld [vmem:[%s10377_s1] sm:$0xff]  ;;  %s7112_s23 = smul.u32 480, %s10806_s28  ;;  %v6339_v13 = vld [vmem:[%s10377_s1 + $0xb8] sm:$0xff]  ;;  %v6134_v20 = vld [vmem:[%s10377_s1 + $0x50] sm:$0xff]  ;;  %s7103_s25 = sshll.u32 %s10806_s28, 8 }
   0xf   : > { %699 = vmatpush.msra.mxu1 %v341_v3  ;;  %7109 = vmatpush.msra.mxu2 %v341_v3  ;;  %v6135_v14 = vld [vmem:[%s10377_s1 + $0x58] sm:$0xff]  ;;  %v6338_v21 = vld [vmem:[%s10377_s1 + $0xb0] sm:$0xff]  ;;  %v6133_v36 = vld [vmem:[%s10377_s1 + $0x48] sm:$0xff]  ;;  %s10253_s30 = scalar_lea.vmem %s10384_s8, %s7103_s25 }
  0x10   : > { %491 = vmatpush.msra.mxu0 %v6033_v4  ;;  %7106 = vmatpush.msra.mxu3 %v6033_v4  ;;  %s7226_s26 = scalar_lea.vmem %s10376_s0, %s7112_s23  ;;  %v6203_v15 = vld [vmem:[%s10377_s1 + $0x78] sm:$0xff]  ;;  %v6202_v22 = vld [vmem:[%s10377_s1 + $0x70] sm:$0xff]  ;;  %v6201_v37 = vld [vmem:[%s10377_s1 + $0x68] sm:$0xff] }
  0x11   : > { %700 = vmatpush.msra.mxu1 %v340_v5  ;;  %7110 = vmatpush.msra.mxu2 %v340_v5  ;;  %v6000_v9 = vld [vmem:[%s7226_s26 + $0x1a] sm:$0xff]  ;;  %v7238_v12 = vld [vmem:[%s7226_s26 + $0xe2] sm:$0xff]  ;;  %v7257_v18 = vld [vmem:[%s7226_s26 + $0xf1] sm:$0xff] }
  0x12   : > { %492 = vmatpush.msra.mxu0 %v6032_v6  ;;  %v5968_v10 = vld [vmem:[%s7226_s26 + $0x19] sm:$0xff]  ;;  %v7234_v11 = vld [vmem:[%s7226_s26 + $0xe1] sm:$0xff]  ;;  %7107 = vmatpush.msra.mxu3 %v6032_v6  ;;  %v7284_v25 = vld [vmem:[%s7226_s26 + $0x31] sm:$0xff] }
  0x13   : > { %701 = vmatpush.msra.mxu1 %v339_v7  ;;  %7111 = vmatpush.msra.mxu2 %v339_v7  ;;  %v6001_v16 = vld [vmem:[%s7226_s26 + $0x22] sm:$0xff]  ;;  %v7273_v23 = vld [vmem:[%s7226_s26 + $0xf2] sm:$0xff]  ;;  %v7292_v27 = vld [vmem:[%s7226_s26 + $0xfa] sm:$0xff] }
  0x14   : > { %6036 = vmatmul.msk.f32.vlgmr.msra.gmra.mxu0 %vm380_vm0, %v6000_v9  ;;  %6068 = vmatmul.msk.f32.vlgmr.msra.gmra.mxu1 %vm380_vm0, %v5968_v10  ;;  %v5969_v17 = vld [vmem:[%s7226_s26 + $0x21] sm:$0xff]  ;;  %v7281_v24 = vld [vmem:[%s7226_s26 + $0x32] sm:$0xff]  ;;  %v7307_v30 = vld [vmem:[%s7226_s26 + $0x109] sm:$0xff] }
  0x15   : > { %6085 = vmatmul.msk.f32.vlgmr.msra.gmra.mxu2 %vm380_vm0, %v7234_v11  ;;  %1501 = vmatpush.msrb.mxu0 %v6271_v8  ;;  %v7287_v26 = vld [vmem:[%s7226_s26 + $0xf9] sm:$0xff]  ;;  %v7312_v31 = vld [vmem:[%s7226_s26 + $0x10a] sm:$0xff]  ;;  %v7359_v42 = vld [vmem:[%s7226_s26 + $0x121] sm:$0xff] }
  0x16   : > { %6053 = vmatmul.msk.f32.vlgmr.msra.gmra.mxu3 %vm380_vm0, %v7238_v12  ;;  %1779 = vmatpush.msrb.mxu1 %v6339_v13  ;;  %v7301_v28 = vld [vmem:[%s7226_s26 + $0x3a] sm:$0xff]  ;;  %v7321_v32 = vld [vmem:[%s7226_s26 + $0x4a] sm:$0xff]  ;;  %v7332_v35 = vld [vmem:[%s7226_s26 + $0x112] sm:$0xff] }
  0x17   : > { %944 = vmatpush.msrb.mxu2 %v6135_v14  ;;  %1223 = vmatpush.msrb.mxu3 %v6203_v15  ;;  %v7304_v29 = vld [vmem:[%s7226_s26 + $0x39] sm:$0xff]  ;;  %v7324_v33 = vld [vmem:[%s7226_s26 + $0x49] sm:$0xff]  ;;  %v7327_v34 = vld [vmem:[%s7226_s26 + $0x111] sm:$0xff] }
  0x18   : > { %1502 = vmatpush.msrb.mxu0 %v6270_v19  ;;  %1780 = vmatpush.msrb.mxu1 %v6338_v21  ;;  %v6269_v38 = vld [vmem:[%s10377_s1 + $0x88] sm:$0xff]  ;;  %v7353_v40 = vld [vmem:[%s7226_s26 + $0x52] sm:$0xff]  ;;  %v7404_v51 = vld [vmem:[%s7226_s26 + $0x13a] sm:$0xff] }
  0x19   : > { %945 = vmatpush.msrb.mxu2 %v6134_v20  ;;  %1224 = vmatpush.msrb.mxu3 %v6202_v22  ;;  %v6337_v39 = vld [vmem:[%s10377_s1 + $0xa8] sm:$0xff]  ;;  %v7356_v41 = vld [vmem:[%s7226_s26 + $0x51] sm:$0xff]  ;;  %v7399_v50 = vld [vmem:[%s7226_s26 + $0x139] sm:$0xff] }
  0x1a   : > { %1503 = vmatpush.msrb.mxu0 %v6269_v38  ;;  %1781 = vmatpush.msrb.mxu1 %v6337_v39  ;;  %v7364_v43 = vld [vmem:[%s7226_s26 + $0x122] sm:$0xff]  ;;  %v7384_v47 = vld [vmem:[%s7226_s26 + $0x12a] sm:$0xff]  ;;  %v7413_v52 = vld [vmem:[%s7226_s26 + $0x7a] sm:$0xff] }
  0x1b   : > { %946 = vmatpush.msrb.mxu2 %v6133_v36  ;;  %1225 = vmatpush.msrb.mxu3 %v6201_v37  ;;  %v7373_v44 = vld [vmem:[%s7226_s26 + $0x62] sm:$0xff]  ;;  %v7393_v48 = vld [vmem:[%s7226_s26 + $0x6a] sm:$0xff]  ;;  %v7416_v53 = vld [vmem:[%s7226_s26 + $0x79] sm:$0xff] }
  0x1c   : > { %6037 = vmatmul.msk.f32.gmra.mxu0 %vm380_vm0, %v6001_v16  ;;  %6069 = vmatmul.msk.f32.gmra.mxu1 %vm380_vm0, %v5969_v17  ;;  %v7376_v45 = vld [vmem:[%s7226_s26 + $0x61] sm:$0xff]  ;;  %v7379_v46 = vld [vmem:[%s7226_s26 + $0x129] sm:$0xff]  ;;  %v7448_v61 = vld [vmem:[%s7226_s26 + $0x151] sm:$0xff] }
  0x1d   : > { %6086 = vmatmul.msk.f32.gmra.mxu2 %vm380_vm0, %v7257_v18  ;;  %v7396_v49 = vld [vmem:[%s7226_s26 + $0x69] sm:$0xff]  ;;  %v7419_v54 = vld [vmem:[%s7226_s26 + $0x141] sm:$0xff]  ;;  %v7453_v62 = vld [vmem:[%s7226_s26 + $0x152] sm:$0xff] }
  0x1e   : > { %6054 = vmatmul.msk.f32.gmra.mxu3 %vm380_vm0, %v7273_v23  ;;  %v7424_v55 = vld [vmem:[%s7226_s26 + $0x142] sm:$0xff]  ;;  %v7465_v0 = vld [vmem:[%s7226_s26 + $0x92] sm:$0xff]  ;;  %v7476_v3 = vld [vmem:[%s7226_s26 + $0x15a] sm:$0xff] }
  0x1f   : > { %v6132_v56 = vld [vmem:[%s10377_s1 + $0x40] sm:$0xff]  ;;  %v7468_v1 = vld [vmem:[%s7226_s26 + $0x91] sm:$0xff]  ;;  %v7491_v6 = vld [vmem:[%s7226_s26 + $0x169] sm:$0xff] }
  0x20   : > { %947 = vmatpush.msrb.mxu2 %v6132_v56  ;;  %v6200_v57 = vld [vmem:[%s10377_s1 + $0x60] sm:$0xff]  ;;  %v7496_v7 = vld [vmem:[%s7226_s26 + $0x16a] sm:$0xff]  ;;  %v6407_v13 = vld [vmem:[%s10377_s1 + $0xd8] sm:$0xff] }
  0x21   : > { %v6268_v58 = vld [vmem:[%s10377_s1 + $0x80] sm:$0xff]  ;;  %1226 = vmatpush.msrb.mxu3 %v6200_v57  ;;  %10441 = vst [vmem:[#allocation3_spill] sm:$0xff] %v7496_v7  ;;  %v7505_v8 = vld [vmem:[%s7226_s26 + $0xaa] sm:$0xff]  ;;  %v7519_v14 = vld [vmem:[%s7226_s26 + $0x172] sm:$0xff] }
  0x22   : > { %1504 = vmatpush.msrb.mxu0 %v6268_v58  ;;  %v7442_v59 = vld [vmem:[%s7226_s26 + $0x82] sm:$0xff]  ;;  %v7471_v2 = vld [vmem:[%s7226_s26 + $0x159] sm:$0xff]  ;;  %v7511_v10 = vld [vmem:[%s7226_s26 + $0x171] sm:$0xff]  ;;  %10443 = vst [vmem:[#allocation5_spill] sm:$0xff] %v7519_v14  ;;  %2058 = vmatpush.msra.mxu2 %v6407_v13 }
  0x23   : > { %v7445_v60 = vld [vmem:[%s7226_s26 + $0x81] sm:$0xff]  ;;  %v7488_v5 = vld [vmem:[%s7226_s26 + $0x99] sm:$0xff]  ;;  %v7508_v9 = vld [vmem:[%s7226_s26 + $0xa9] sm:$0xff]  ;;  %10442 = vst [vmem:[#allocation4_spill] sm:$0xff] %v7511_v10 }
  0x24   : > { %6038 = vmatmul.msk.f32.gmra.mxu0 %vm380_vm0, %v7281_v24  ;;  %6070 = vmatmul.msk.f32.gmra.mxu1 %vm380_vm0, %v7284_v25  ;;  %v6336_v63 = vld [vmem:[%s10377_s1 + $0xa0] sm:$0xff]  ;;  %v6475_v15 = vld [vmem:[%s10377_s1 + $0xf8] sm:$0xff]  ;;  %v7563_v38 = vld [vmem:[%s7226_s26 + $0x189] sm:$0xff] }
  0x25   : > { %6087 = vmatmul.msk.f32.gmra.mxu2 %vm380_vm0, %v7287_v26  ;;  %1782 = vmatpush.msrb.mxu1 %v6336_v63  ;;  %v7485_v4 = vld [vmem:[%s7226_s26 + $0x9a] sm:$0xff]  ;;  %v7531_v16 = vld [vmem:[%s7226_s26 + $0xb2] sm:$0xff]  ;;  %v7542_v20 = vld [vmem:[%s7226_s26 + $0x182] sm:$0xff]  ;;  %10446 = vst [vmem:[#allocation8_spill] sm:$0xff] %v7563_v38 }
  0x26   : > { %6055 = vmatmul.msk.f32.gmra.mxu3 %vm380_vm0, %v7292_v27  ;;  %v7534_v17 = vld [vmem:[%s7226_s26 + $0xb1] sm:$0xff]  ;;  %v7537_v19 = vld [vmem:[%s7226_s26 + $0x181] sm:$0xff]  ;;  %10445 = vst [vmem:[#allocation7_spill] sm:$0xff] %v7542_v20  ;;  %v7580_v57 = vld [vmem:[%s7226_s26 + $0xc9] sm:$0xff] }
  0x27   : > { %2336 = vmatpush.msra.mxu3 %v6475_v15  ;;  %10444 = vst [vmem:[#allocation6_spill] sm:$0xff] %v7537_v19  ;;  %v6543_v21 = vld [vmem:[%s10377_s1 + $0x118] sm:$0xff]  ;;  %v7557_v36 = vld [vmem:[%s7226_s26 + $0xc2] sm:$0xff]  ;;  %v7568_v39 = vld [vmem:[%s7226_s26 + $0x18a] sm:$0xff] }
  0x28   : > { %2614 = vmatpush.msra.mxu0 %v6543_v21  ;;  %v6583_v22 = vld [vmem:[%s10377_s1 + $0x158] sm:$0xff]  ;;  %v7560_v37 = vld [vmem:[%s7226_s26 + $0xc1] sm:$0xff]  ;;  %10447 = vst [vmem:[#allocation9_spill] sm:$0xff] %v7568_v39  ;;  %v7577_v56 = vld [vmem:[%s7226_s26 + $0xca] sm:$0xff] }
  0x29   : > { %3135 = vmatpush.msra.mxu1 %v6583_v22  ;;  %v6100_v58 = vld [vmem:[%s7226_s26 + $0x1b] sm:$0xff]  ;;  %v6101_v22 = vld [vmem:[%s7226_s26 + $0x23] sm:$0xff] }
  0x2a   : > { %v7593_v13 = vld [vmem:[%s7226_s26 + $0xda] sm:$0xff] }
  0x2b   : > { %v7598_v21 = vld [vmem:[%s7226_s26 + $0xd9] sm:$0xff] }
  0x2c   : > { %6039 = vmatmul.msk.f32.gmra.mxu0 %vm380_vm0, %v7301_v28  ;;  %6071 = vmatmul.msk.f32.gmra.mxu1 %vm380_vm0, %v7304_v29 }
  0x2d   : > { %6088 = vmatmul.msk.f32.gmra.mxu2 %vm380_vm0, %v7307_v30 }
  0x2e   : > { %6056 = vmatmul.msk.f32.gmra.mxu3 %vm380_vm0, %v7312_v31 }
  0x34   : > { %6040 = vmatmul.msk.f32.gmra.mxu0 %vm380_vm0, %v7321_v32  ;;  %6072 = vmatmul.msk.f32.gmra.mxu1 %vm380_vm0, %v7324_v33 }
  0x35   : > { %6089 = vmatmul.msk.f32.gmra.mxu2 %vm380_vm0, %v7327_v34 }
  0x36   : > { %6057 = vmatmul.msk.f32.gmra.mxu3 %vm380_vm0, %v7332_v35 }
  0x3c   : > { %6041 = vmatmul.msk.f32.gmra.mxu0 %vm380_vm0, %v7353_v40  ;;  %6073 = vmatmul.msk.f32.gmra.mxu1 %vm380_vm0, %v7356_v41 }
  0x3d   : > { %6090 = vmatmul.msk.f32.gmra.mxu2 %vm380_vm0, %v7359_v42 }
  0x3e   : > { %6058 = vmatmul.msk.f32.gmra.mxu3 %vm380_vm0, %v7364_v43 }
  0x44   : > { %6042 = vmatmul.msk.f32.gmra.mxu0 %vm380_vm0, %v7373_v44  ;;  %6074 = vmatmul.msk.f32.gmra.mxu1 %vm380_vm0, %v7376_v45 }
  0x45   : > { %6091 = vmatmul.msk.f32.gmra.mxu2 %vm380_vm0, %v7379_v46 }
  0x46   : > { %6059 = vmatmul.msk.f32.gmra.mxu3 %vm380_vm0, %v7384_v47 }
  0x4c   : > { %6043 = vmatmul.msk.f32.gmra.mxu0 %vm380_vm0, %v7393_v48  ;;  %6075 = vmatmul.msk.f32.gmra.mxu1 %vm380_vm0, %v7396_v49 }
  0x4d   : > { %6092 = vmatmul.msk.f32.gmra.mxu2 %vm380_vm0, %v7399_v50 }
  0x4e   : > { %6060 = vmatmul.msk.f32.gmra.mxu3 %vm380_vm0, %v7404_v51 }
  0x54   : > { %6044 = vmatmul.msk.f32.gmra.mxu0 %vm380_vm0, %v7413_v52  ;;  %6076 = vmatmul.msk.f32.gmra.mxu1 %vm380_vm0, %v7416_v53 }
  0x55   : > { %6093 = vmatmul.msk.f32.gmra.mxu2 %vm380_vm0, %v7419_v54 }
  0x56   : > { %6061 = vmatmul.msk.f32.gmra.mxu3 %vm380_vm0, %v7424_v55 }
  0x5c   : > { %6045 = vmatmul.msk.f32.gmra.mxu0 %vm380_vm0, %v7442_v59  ;;  %6077 = vmatmul.msk.f32.gmra.mxu1 %vm380_vm0, %v7445_v60 }
  0x5d   : > { %6094 = vmatmul.msk.f32.gmra.mxu2 %vm380_vm0, %v7448_v61 }
  0x5e   : > { %6062 = vmatmul.msk.f32.gmra.mxu3 %vm380_vm0, %v7453_v62 }
  0x64   : > { %6046 = vmatmul.msk.f32.gmra.mxu0 %vm380_vm0, %v7465_v0  ;;  %6078 = vmatmul.msk.f32.gmra.mxu1 %vm380_vm0, %v7468_v1 }
  0x65   : > { %6095 = vmatmul.msk.f32.gmra.mxu2 %vm380_vm0, %v7471_v2 }
  0x66   : > { %6063 = vmatmul.msk.f32.gmra.mxu3 %vm380_vm0, %v7476_v3 }
  0x6c   : > { %6047 = vmatmul.msk.f32.gmra.mxu0 %vm380_vm0, %v7485_v4  ;;  %6079 = vmatmul.msk.f32.gmra.mxu1 %vm380_vm0, %v7488_v5 }
  0x6d   : > { %6096 = vmatmul.msk.f32.gmra.mxu2 %vm380_vm0, %v7491_v6 }
  0x6e   : > { %6064 = vmatmul.msk.f32.gmra.mxu3 %vm380_vm0, %v7496_v7 }
  0x74   : > { %6048 = vmatmul.msk.f32.gmra.mxu0 %vm380_vm0, %v7505_v8  ;;  %6080 = vmatmul.msk.f32.gmra.mxu1 %vm380_vm0, %v7508_v9 }
  0x75   : > { %6097 = vmatmul.msk.f32.gmra.mxu2 %vm380_vm0, %v7511_v10  ;;  %v6103_v10 = vld [vmem:[%s7226_s26 + $0x3b] sm:$0xff] }
  0x76   : > { %6065 = vmatmul.msk.f32.gmra.mxu3 %vm380_vm0, %v7519_v14 }
  0x7c   : > { %6049 = vmatmul.msk.f32.gmra.mxu0 %vm380_vm0, %v7531_v16  ;;  %6081 = vmatmul.msk.f32.gmra.mxu1 %vm380_vm0, %v7534_v17 }
  0x7d   : > { %6098 = vmatmul.msk.f32.gmra.mxu2 %vm380_vm0, %v7537_v19 }
  0x7e   : > { %6066 = vmatmul.msk.f32.gmra.mxu3 %vm380_vm0, %v7542_v20 }
  0x84   : > { %6050 = vmatmul.msk.f32.gmra.mxu0 %vm380_vm0, %v7557_v36  ;;  %6082 = vmatmul.msk.f32.gmra.mxu1 %vm380_vm0, %v7560_v37 }
  0x85   : > { %6099 = vmatmul.msk.f32.gmra.mxu2 %vm380_vm0, %v7563_v38  ;;  %v6102_v38 = vld [vmem:[%s7226_s26 + $0x33] sm:$0xff] }
  0x86   : > { %6067 = vmatmul.msk.f32.gmra.mxu3 %vm380_vm0, %v7568_v39 }
  0x8c   : > { %6051 = vmatmul.msk.f32.gmra.mxu0 %vm380_vm0, %v7577_v56  ;;  %6083 = vmatmul.msk.f32.gmra.mxu1 %vm380_vm0, %v7580_v57 }
  0x8d   : > { %6136 = vmatmul.msk.f32.vlgmr.msrb.gmra.mxu2 %vm380_vm0, %v6100_v58 }
  0x8e   : > { %6204 = vmatmul.msk.f32.vlgmr.msrb.gmra.mxu3 %vm380_vm0, %v7284_v25 }
  0x91   : > { %v7590_v63 = vpop.f32.mrf.mxu0  ;;  %v7595_v15 = vpop.f32.mrf.mxu1 }
  0x94   : > { %6052 = vmatmul.msk.f32.gmra.mxu0 %vm380_vm0, %v7593_v13  ;;  %6084 = vmatmul.msk.f32.gmra.mxu1 %vm380_vm0, %v7598_v21 }
  0x95   : > { %6137 = vmatmul.msk.f32.gmra.mxu2 %vm380_vm0, %v6101_v22 }
  0x96   : > { %6205 = vmatmul.msk.f32.gmra.mxu3 %vm380_vm0, %v7304_v29 }
  0x98   : > { %v754_v25 = vpop.f32.mrf.mxu2 }
  0x99   : > { %v7608_v58 = vpop.f32.mrf.mxu0  ;;  %v545_v39 = vpop.f32.mrf.mxu3 }
  0x9a   : > { %v7610_v20 = vpop.f32.mrf.mxu1  ;;  %v7613_v14 = vadd.f32 %v754_v25, %v545_v39 }
  0x9c   : > { %10448 = vst [vmem:[#allocation10_spill] sm:$0xff] %v7613_v14  ;;  %6272 = vmatmul.msk.f32.vlgmr.msrb.gmra.mxu0 %vm380_vm0, %v7281_v24  ;;  %6340 = vmatmul.msk.f32.vlgmr.msrb.gmra.mxu1 %vm380_vm0, %v6102_v38  ;;  %v7639_v14 = vld [vmem:[%s7226_s26 + $0x4b] sm:$0xff] }
  0x9d   : > { %6138 = vmatmul.msk.f32.gmra.mxu2 %vm380_vm0, %v6102_v38 }
  0x9e   : > { %6206 = vmatmul.msk.f32.gmra.mxu3 %vm380_vm0, %v7324_v33 }
  0xa0   : > { %v757_v29 = vpop.f32.mrf.mxu2 }
  0xa1   : > { %v7621_v22 = vpop.f32.mrf.mxu0  ;;  %v548_v19 = vpop.f32.mrf.mxu3 }
  0xa2   : > { %v7623_v7 = vpop.f32.mrf.mxu1  ;;  %v7626_v39 = vadd.f32 %v757_v29, %v548_v19 }
  0xa4   : > { %10449 = vst [vmem:[#allocation11_spill] sm:$0xff] %v7626_v39  ;;  %6273 = vmatmul.msk.f32.gmra.mxu0 %vm380_vm0, %v7301_v28  ;;  %6341 = vmatmul.msk.f32.gmra.mxu1 %vm380_vm0, %v6103_v10 }
  0xa5   : > { %6139 = vmatmul.msk.f32.gmra.mxu2 %vm380_vm0, %v6103_v10 }
  0xa6   : > { %6207 = vmatmul.msk.f32.gmra.mxu3 %vm380_vm0, %v7356_v41 }
  0xa8   : > { %v760_v24 = vpop.f32.mrf.mxu2 }
  0xa9   : > { %v7634_v33 = vpop.f32.mrf.mxu0  ;;  %v551_v38 = vpop.f32.mrf.mxu3 }
  0xaa   : > { %v7636_v25 = vpop.f32.mrf.mxu1  ;;  %v7641_v19 = vadd.f32 %v760_v24, %v551_v38  ;;  %v7656_v24 = vld [vmem:[%s7226_s26 + $0x53] sm:$0xff] }
  0xab   : > { %10451 = vst [vmem:[#allocation13_spill] sm:$0xff] %v7656_v24 }
  0xac   : > { %10450 = vst [vmem:[#allocation12_spill] sm:$0xff] %v7641_v19  ;;  %6274 = vmatmul.msk.f32.gmra.mxu0 %vm380_vm0, %v7321_v32  ;;  %6342 = vmatmul.msk.f32.gmra.mxu1 %vm380_vm0, %v7639_v14  ;;  %v6406_v32 = vld [vmem:[%s10377_s1 + $0xd0] sm:$0xff] }
  0xad   : > { %6140 = vmatmul.msk.f32.gmra.mxu2 %vm380_vm0, %v7639_v14 }
  0xae   : > { %6208 = vmatmul.msk.f32.gmra.mxu3 %vm380_vm0, %v7376_v45  ;;  %2059 = vmatpush.msra.mxu2 %v6406_v32  ;;  %v6474_v45 = vld [vmem:[%s10377_s1 + $0xf0] sm:$0xff]  ;;  %v7679_v32 = vld [vmem:[%s7226_s26 + $0x63] sm:$0xff] }
  0xaf   : > { %2337 = vmatpush.msra.mxu3 %v6474_v45  ;;  %10453 = vst [vmem:[#allocation15_spill] sm:$0xff] %v7679_v32 }
  0xb0   : > { %v763_v28 = vpop.f32.mrf.mxu2 }
  0xb1   : > { %v7651_v41 = vpop.f32.mrf.mxu0  ;;  %v554_v10 = vpop.f32.mrf.mxu3 }
  0xb2   : > { %v7653_v29 = vpop.f32.mrf.mxu1  ;;  %v7658_v38 = vadd.f32 %v763_v28, %v554_v10 }
  0xb4   : > { %10452 = vst [vmem:[#allocation14_spill] sm:$0xff] %v7658_v38  ;;  %6275 = vmatmul.msk.f32.gmra.mxu0 %vm380_vm0, %v7353_v40  ;;  %6343 = vmatmul.msk.f32.gmra.mxu1 %vm380_vm0, %v7656_v24 }
  0xb5   : > { %6141 = vmatmul.msk.f32.gmra.mxu2 %vm380_vm0, %v7656_v24 }
  0xb6   : > { %6209 = vmatmul.msk.f32.gmra.mxu3 %vm380_vm0, %v7396_v49  ;;  %v6542_v49 = vld [vmem:[%s10377_s1 + $0x110] sm:$0xff] }
  0xb7   : > { %2615 = vmatpush.msra.mxu0 %v6542_v49 }
  0xb8   : > { %v766_v28 = vpop.f32.mrf.mxu2 }
  0xb9   : > { %v7674_v10 = vpop.f32.mrf.mxu0  ;;  %v557_v38 = vpop.f32.mrf.mxu3 }
  0xba   : > { %v7676_v40 = vpop.f32.mrf.mxu1  ;;  %v7681_v19 = vadd.f32 %v766_v28, %v557_v38  ;;  %v6582_v38 = vld [vmem:[%s10377_s1 + $0x150] sm:$0xff] }
  0xbb   : > { %3136 = vmatpush.msra.mxu1 %v6582_v38 }
  0xbc   : > { %10454 = vst [vmem:[#allocation16_spill] sm:$0xff] %v7681_v19  ;;  %6276 = vmatmul.msk.f32.gmra.mxu0 %vm380_vm0, %v7373_v44  ;;  %6344 = vmatmul.msk.f32.gmra.mxu1 %vm380_vm0, %v7679_v32 }
  0xbd   : > { %6142 = vmatmul.msk.f32.gmra.mxu2 %vm380_vm0, %v7679_v32  ;;  %v7702_v32 = vld [vmem:[%s7226_s26 + $0x6b] sm:$0xff] }
  0xbe   : > { %6210 = vmatmul.msk.f32.gmra.mxu3 %vm380_vm0, %v7416_v53  ;;  %10455 = vst [vmem:[#allocation17_spill] sm:$0xff] %v7702_v32 }
  0xc0   : > { %v769_v44 = vpop.f32.mrf.mxu2 }
  0xc1   : > { %v7697_v45 = vpop.f32.mrf.mxu0  ;;  %v560_v28 = vpop.f32.mrf.mxu3 }
  0xc2   : > { %v7699_v19 = vpop.f32.mrf.mxu1  ;;  %v7704_v24 = vadd.f32 %v769_v44, %v560_v28  ;;  %v7719_v44 = vld [vmem:[%s7226_s26 + $0x7b] sm:$0xff] }
  0xc3   : > { %10457 = vst [vmem:[#allocation19_spill] sm:$0xff] %v7719_v44 }
  0xc4   : > { %10456 = vst [vmem:[#allocation18_spill] sm:$0xff] %v7704_v24  ;;  %6277 = vmatmul.msk.f32.gmra.mxu0 %vm380_vm0, %v7393_v48  ;;  %6345 = vmatmul.msk.f32.gmra.mxu1 %vm380_vm0, %v7702_v32 }
  0xc5   : > { %6143 = vmatmul.msk.f32.gmra.mxu2 %vm380_vm0, %v7702_v32 }
  0xc6   : > { %6211 = vmatmul.msk.f32.gmra.mxu3 %vm380_vm0, %v7445_v60 }
  0xc8   : > { %v772_v53 = vpop.f32.mrf.mxu2 }
  0xc9   : > { %v7714_v49 = vpop.f32.mrf.mxu0  ;;  %v563_v38 = vpop.f32.mrf.mxu3 }
  0xca   : > { %v7716_v39 = vpop.f32.mrf.mxu1  ;;  %v7721_v28 = vadd.f32 %v772_v53, %v563_v38  ;;  %v7736_v53 = vld [vmem:[%s7226_s26 + $0x83] sm:$0xff] }
  0xcb   : > { %10459 = vst [vmem:[#allocation21_spill] sm:$0xff] %v7736_v53 }
  0xcc   : > { %10458 = vst [vmem:[#allocation20_spill] sm:$0xff] %v7721_v28  ;;  %6278 = vmatmul.msk.f32.gmra.mxu0 %vm380_vm0, %v7413_v52  ;;  %6346 = vmatmul.msk.f32.gmra.mxu1 %vm380_vm0, %v7719_v44 }
  0xcd   : > { %6144 = vmatmul.msk.f32.gmra.mxu2 %vm380_vm0, %v7719_v44 }
  0xce   : > { %6212 = vmatmul.msk.f32.gmra.mxu3 %vm380_vm0, %v7468_v1 }
  0xd0   : > { %v775_v48 = vpop.f32.mrf.mxu2 }
  0xd1   : > { %v7731_v60 = vpop.f32.mrf.mxu0  ;;  %v566_v24 = vpop.f32.mrf.mxu3 }
  0xd2   : > { %v7733_v32 = vpop.f32.mrf.mxu1  ;;  %v7738_v38 = vadd.f32 %v775_v48, %v566_v24  ;;  %v7753_v24 = vld [vmem:[%s7226_s26 + $0x93] sm:$0xff] }
  0xd3   : > { %10461 = vst [vmem:[#allocation23_spill] sm:$0xff] %v7753_v24 }
  0xd4   : > { %10460 = vst [vmem:[#allocation22_spill] sm:$0xff] %v7738_v38  ;;  %6279 = vmatmul.msk.f32.gmra.mxu0 %vm380_vm0, %v7442_v59  ;;  %6347 = vmatmul.msk.f32.gmra.mxu1 %vm380_vm0, %v7736_v53 }
  0xd5   : > { %6145 = vmatmul.msk.f32.gmra.mxu2 %vm380_vm0, %v7736_v53 }
  0xd6   : > { %6213 = vmatmul.msk.f32.gmra.mxu3 %vm380_vm0, %v7488_v5 }
  0xd8   : > { %v778_v52 = vpop.f32.mrf.mxu2 }
  0xd9   : > { %v7748_v1 = vpop.f32.mrf.mxu0  ;;  %v569_v28 = vpop.f32.mrf.mxu3 }
  0xda   : > { %v7750_v44 = vpop.f32.mrf.mxu1  ;;  %v7755_v48 = vadd.f32 %v778_v52, %v569_v28  ;;  %v7770_v28 = vld [vmem:[%s7226_s26 + $0x9b] sm:$0xff] }
  0xdb   : > { %10463 = vst [vmem:[#allocation25_spill] sm:$0xff] %v7770_v28 }
  0xdc   : > { %10462 = vst [vmem:[#allocation24_spill] sm:$0xff] %v7755_v48  ;;  %6280 = vmatmul.msk.f32.gmra.mxu0 %vm380_vm0, %v7465_v0  ;;  %6348 = vmatmul.msk.f32.gmra.mxu1 %vm380_vm0, %v7753_v24 }
  0xdd   : > { %6146 = vmatmul.msk.f32.gmra.mxu2 %vm380_vm0, %v7753_v24 }
  0xde   : > { %6214 = vmatmul.msk.f32.gmra.mxu3 %vm380_vm0, %v7508_v9 }
  0xe0   : > { %v781_v59 = vpop.f32.mrf.mxu2 }
  0xe1   : > { %v7765_v5 = vpop.f32.mrf.mxu0  ;;  %v572_v38 = vpop.f32.mrf.mxu3 }
  0xe2   : > { %v7767_v53 = vpop.f32.mrf.mxu1  ;;  %v7772_v52 = vadd.f32 %v781_v59, %v572_v38  ;;  %v7787_v38 = vld [vmem:[%s7226_s26 + $0xab] sm:$0xff] }
  0xe3   : > { %10465 = vst [vmem:[#allocation27_spill] sm:$0xff] %v7787_v38 }
  0xe4   : > { %10464 = vst [vmem:[#allocation26_spill] sm:$0xff] %v7772_v52  ;;  %6281 = vmatmul.msk.f32.gmra.mxu0 %vm380_vm0, %v7485_v4  ;;  %6349 = vmatmul.msk.f32.gmra.mxu1 %vm380_vm0, %v7770_v28 }
  0xe5   : > { %6147 = vmatmul.msk.f32.gmra.mxu2 %vm380_vm0, %v7770_v28 }
  0xe6   : > { %6215 = vmatmul.msk.f32.gmra.mxu3 %vm380_vm0, %v7534_v17 }
  0xe8   : > { %v784_v0 = vpop.f32.mrf.mxu2 }
  0xe9   : > { %v7782_v9 = vpop.f32.mrf.mxu0  ;;  %v575_v48 = vpop.f32.mrf.mxu3 }
  0xea   : > { %v7784_v24 = vpop.f32.mrf.mxu1  ;;  %v7789_v59 = vadd.f32 %v784_v0, %v575_v48  ;;  %v7804_v48 = vld [vmem:[%s7226_s26 + $0xb3] sm:$0xff] }
  0xeb   : > { %10467 = vst [vmem:[#allocation29_spill] sm:$0xff] %v7804_v48 }
  0xec   : > { %10466 = vst [vmem:[#allocation28_spill] sm:$0xff] %v7789_v59  ;;  %6282 = vmatmul.msk.f32.gmra.mxu0 %vm380_vm0, %v7505_v8  ;;  %6350 = vmatmul.msk.f32.gmra.mxu1 %vm380_vm0, %v7787_v38  ;;  %v6405_v8 = vld [vmem:[%s10377_s1 + $0xc8] sm:$0xff] }
  0xed   : > { %6148 = vmatmul.msk.f32.gmra.mxu2 %vm380_vm0, %v7787_v38 }
  0xee   : > { %6216 = vmatmul.msk.f32.gmra.mxu3 %vm380_vm0, %v7560_v37  ;;  %2060 = vmatpush.msra.mxu2 %v6405_v8  ;;  %v6473_v37 = vld [vmem:[%s10377_s1 + $0xe8] sm:$0xff] }
  0xef   : > { %2338 = vmatpush.msra.mxu3 %v6473_v37  ;;  %v7827_v8 = vld [vmem:[%s7226_s26 + $0xc3] sm:$0xff] }
  0xf0   : > { %v787_v4 = vpop.f32.mrf.mxu2  ;;  %10469 = vst [vmem:[#allocation31_spill] sm:$0xff] %v7827_v8 }
  0xf1   : > { %v7799_v17 = vpop.f32.mrf.mxu0  ;;  %v578_v52 = vpop.f32.mrf.mxu3 }
  0xf2   : > { %v7801_v28 = vpop.f32.mrf.mxu1  ;;  %v7806_v0 = vadd.f32 %v787_v4, %v578_v52 }
  0xf4   : > { %10468 = vst [vmem:[#allocation30_spill] sm:$0xff] %v7806_v0  ;;  %6283 = vmatmul.msk.f32.gmra.mxu0 %vm380_vm0, %v7531_v16  ;;  %6351 = vmatmul.msk.f32.gmra.mxu1 %vm380_vm0, %v7804_v48 }
  0xf5   : > { %6149 = vmatmul.msk.f32.gmra.mxu2 %vm380_vm0, %v7804_v48 }
  0xf6   : > { %6217 = vmatmul.msk.f32.gmra.mxu3 %vm380_vm0, %v7580_v57  ;;  %v6541_v57 = vld [vmem:[%s10377_s1 + $0x108] sm:$0xff] }
  0xf7   : > { %2616 = vmatpush.msra.mxu0 %v6541_v57 }
  0xf8   : > { %v790_v52 = vpop.f32.mrf.mxu2 }
  0xf9   : > { %v7822_v4 = vpop.f32.mrf.mxu0  ;;  %v581_v0 = vpop.f32.mrf.mxu3 }
  0xfa   : > { %v7824_v16 = vpop.f32.mrf.mxu1  ;;  %v7829_v59 = vadd.f32 %v790_v52, %v581_v0  ;;  %v6581_v0 = vld [vmem:[%s10377_s1 + $0x148] sm:$0xff] }
  0xfb   : > { %3137 = vmatpush.msra.mxu1 %v6581_v0 }
  0xfc   : > { %10470 = vst [vmem:[#allocation32_spill] sm:$0xff] %v7829_v59  ;;  %6284 = vmatmul.msk.f32.gmra.mxu0 %vm380_vm0, %v7557_v36  ;;  %6352 = vmatmul.msk.f32.gmra.mxu1 %vm380_vm0, %v7827_v8 }
  0xfd   : > { %6150 = vmatmul.msk.f32.gmra.mxu2 %vm380_vm0, %v7827_v8  ;;  %v7850_v8 = vld [vmem:[%s7226_s26 + $0xcb] sm:$0xff] }
  0xfe   : > { %6218 = vmatmul.msk.f32.gmra.mxu3 %vm380_vm0, %v7598_v21  ;;  %10471 = vst [vmem:[#allocation33_spill] sm:$0xff] %v7850_v8 }
 0x100   : > { %v793_v36 = vpop.f32.mrf.mxu2 }
 0x101   : > { %v7845_v37 = vpop.f32.mrf.mxu0  ;;  %v584_v52 = vpop.f32.mrf.mxu3 }
 0x102   : > { %v7847_v59 = vpop.f32.mrf.mxu1  ;;  %v7852_v48 = vadd.f32 %v793_v36, %v584_v52  ;;  %v6116_v36 = vld [vmem:[%s7226_s26 + $0xdb] sm:$0xff] }
 0x104   : > { %10472 = vst [vmem:[#allocation34_spill] sm:$0xff] %v7852_v48  ;;  %6285 = vmatmul.msk.f32.gmra.mxu0 %vm380_vm0, %v7577_v56  ;;  %6353 = vmatmul.msk.f32.gmra.mxu1 %vm380_vm0, %v7850_v8 }
 0x105   : > { %6151 = vmatmul.msk.f32.gmra.mxu2 %vm380_vm0, %v7850_v8 }
 0x106   : > { %6219 = vmatmul.msk.f32.gmra.mxu3 %vm380_vm0, %v7234_v11  ;;  %v704_v11 = vadd.f32 %v7595_v15, %v7590_v63 }
 0x108   : > { %v796_v21 = vpop.f32.mrf.mxu2 }
 0x109   : > { %v7862_v57 = vpop.f32.mrf.mxu0  ;;  %v587_v0 = vpop.f32.mrf.mxu3 }
 0x10a   : > { %v7864_v38 = vpop.f32.mrf.mxu1  ;;  %v7867_v52 = vadd.f32 %v796_v21, %v587_v0 }
 0x10c   : > { %10473 = vst [vmem:[#allocation35_spill] sm:$0xff] %v7867_v52  ;;  %6286 = vmatmul.msk.f32.gmra.mxu0 %vm380_vm0, %v7593_v13  ;;  %6354 = vmatmul.msk.f32.gmra.mxu1 %vm380_vm0, %v6116_v36  ;;  %v7882_v52 = vld [vmem:[%s7226_s26 + $0xe3] sm:$0xff] }
 0x10d   : > { %6152 = vmatmul.msk.f32.gmra.mxu2 %vm380_vm0, %v6116_v36 }
 0x10e   : > { %6220 = vmatmul.msk.f32.gmra.mxu3 %vm380_vm0, %v7257_v18  ;;  %v707_v18 = vadd.f32 %v7610_v20, %v7608_v58 }
 0x110   : > { %v949_v56 = vpop.f32.mrf.mxu2 }
 0x111   : > { %v1045_v48 = vadd.f32 %v949_v56, %v704_v11  ;;  %v7877_v8 = vpop.f32.mrf.mxu0  ;;  %v1228_v0 = vpop.f32.mrf.mxu3 }
 0x112   : > { %v7879_v21 = vpop.f32.mrf.mxu1 }
 0x113   : > { %v7884_v13 = vadd.f32 %v1228_v0, %v1045_v48 }
 0x114   : > { %6287 = vmatmul.msk.f32.gmra.mxu0 %vm380_vm0, %v7238_v12  ;;  %6355 = vmatmul.msk.f32.gmra.mxu1 %vm380_vm0, %v7882_v52  ;;  %v7901_v12 = vld [vmem:[%s7226_s26 + $0xf3] sm:$0xff] }
 0x115   : > { %6153 = vmatmul.msk.f32.gmra.mxu2 %vm380_vm0, %v7882_v52 }
 0x116   : > { %6221 = vmatmul.msk.f32.gmra.mxu3 %vm380_vm0, %v7287_v26  ;;  %v710_v26 = vadd.f32 %v7623_v7, %v7621_v22 }
 0x118   : > { %v952_v63 = vpop.f32.mrf.mxu2 }
 0x119   : > { %v1046_v15 = vadd.f32 %v952_v63, %v707_v18  ;;  %v7896_v48 = vpop.f32.mrf.mxu0  ;;  %v1231_v36 = vpop.f32.mrf.mxu3 }
 0x11a   : > { %v7898_v11 = vpop.f32.mrf.mxu1 }
 0x11b   : > { %v7903_v56 = vadd.f32 %v1231_v36, %v1046_v15 }
 0x11c   : > { %6288 = vmatmul.msk.f32.gmra.mxu0 %vm380_vm0, %v7273_v23  ;;  %6356 = vmatmul.msk.f32.gmra.mxu1 %vm380_vm0, %v7901_v12  ;;  %v7920_v23 = vld [vmem:[%s7226_s26 + $0xfb] sm:$0xff] }
 0x11d   : > { %6154 = vmatmul.msk.f32.gmra.mxu2 %vm380_vm0, %v7901_v12 }
 0x11e   : > { %6222 = vmatmul.msk.f32.gmra.mxu3 %vm380_vm0, %v7307_v30  ;;  %v713_v30 = vadd.f32 %v7636_v25, %v7634_v33 }
 0x120   : > { %v955_v20 = vpop.f32.mrf.mxu2 }
 0x121   : > { %v1047_v58 = vadd.f32 %v955_v20, %v710_v26  ;;  %v7915_v0 = vpop.f32.mrf.mxu0  ;;  %v1234_v18 = vpop.f32.mrf.mxu3 }
 0x122   : > { %v7917_v63 = vpop.f32.mrf.mxu1 }
 0x123   : > { %v7922_v15 = vadd.f32 %v1234_v18, %v1047_v58 }
 0x124   : > { %6289 = vmatmul.msk.f32.gmra.mxu0 %vm380_vm0, %v7292_v27  ;;  %6357 = vmatmul.msk.f32.gmra.mxu1 %vm380_vm0, %v7920_v23  ;;  %v6120_v27 = vld [vmem:[%s7226_s26 + $0x10b] sm:$0xff] }
 0x125   : > { %6155 = vmatmul.msk.f32.gmra.mxu2 %vm380_vm0, %v7920_v23 }
 0x126   : > { %6223 = vmatmul.msk.f32.gmra.mxu3 %vm380_vm0, %v7327_v34  ;;  %v716_v34 = vadd.f32 %v7653_v29, %v7651_v41  ;;  %v719_v41 = vadd.f32 %v7676_v40, %v7674_v10  ;;  %v722_v10 = vadd.f32 %v7699_v19, %v7697_v45  ;;  %v6580_v40 = vld [vmem:[%s10377_s1 + $0x140] sm:$0xff] }
 0x127   : > { %3138 = vmatpush.msra.mxu1 %v6580_v40 }
 0x128   : > { %v958_v7 = vpop.f32.mrf.mxu2 }
 0x129   : > { %v1048_v22 = vadd.f32 %v958_v7, %v713_v30  ;;  %v7934_v36 = vpop.f32.mrf.mxu0  ;;  %v1237_v26 = vpop.f32.mrf.mxu3 }
 0x12a   : > { %v7936_v20 = vpop.f32.mrf.mxu1 }
 0x12b   : > { %v7939_v58 = vadd.f32 %v1237_v26, %v1048_v22  ;;  %v6121_v22 = vld [vmem:[%s7226_s26 + $0x113] sm:$0xff]  ;;  %v6404_v26 = vld [vmem:[%s10377_s1 + $0xc0] sm:$0xff] }
 0x12c   : > { %6290 = vmatmul.msk.f32.gmra.mxu0 %vm380_vm0, %v7312_v31  ;;  %6358 = vmatmul.msk.f32.gmra.mxu1 %vm380_vm0, %v6120_v27 }
 0x12d   : > { %6156 = vmatmul.msk.f32.gmra.mxu2 %vm380_vm0, %v6120_v27 }
 0x12e   : > { %6224 = vmatmul.msk.f32.gmra.mxu3 %vm380_vm0, %v7359_v42  ;;  %2061 = vmatpush.msra.mxu2 %v6404_v26  ;;  %v6472_v42 = vld [vmem:[%s10377_s1 + $0xe0] sm:$0xff] }
 0x12f   : > { %2339 = vmatpush.msra.mxu3 %v6472_v42 }
 0x130   : > { %v961_v33 = vpop.f32.mrf.mxu2 }
 0x131   : > { %v1049_v25 = vadd.f32 %v961_v33, %v716_v34  ;;  %v7949_v18 = vpop.f32.mrf.mxu0  ;;  %v1240_v30 = vpop.f32.mrf.mxu3 }
 0x132   : > { %v7951_v7 = vpop.f32.mrf.mxu1 }
 0x133   : > { %v7954_v31 = vadd.f32 %v1240_v30, %v1049_v25  ;;  %v6122_v25 = vld [vmem:[%s7226_s26 + $0x123] sm:$0xff] }
 0x134   : > { %6291 = vmatmul.msk.f32.gmra.mxu0 %vm380_vm0, %v7332_v35  ;;  %6359 = vmatmul.msk.f32.gmra.mxu1 %vm380_vm0, %v6121_v22 }
 0x135   : > { %6157 = vmatmul.msk.f32.gmra.mxu2 %vm380_vm0, %v6121_v22 }
 0x136   : > { %6225 = vmatmul.msk.f32.gmra.mxu3 %vm380_vm0, %v7379_v46  ;;  %v6540_v46 = vld [vmem:[%s10377_s1 + $0x100] sm:$0xff] }
 0x137   : > { %2617 = vmatpush.msra.mxu0 %v6540_v46 }
 0x138   : > { %v964_v29 = vpop.f32.mrf.mxu2 }
 0x139   : > { %v1050_v27 = vadd.f32 %v964_v29, %v719_v41  ;;  %v7970_v34 = vpop.f32.mrf.mxu0  ;;  %v1243_v35 = vpop.f32.mrf.mxu3  ;;  %v6123_v29 = vld [vmem:[%s7226_s26 + $0x12b] sm:$0xff] }
 0x13a   : > { %v7972_v33 = vpop.f32.mrf.mxu1 }
 0x13b   : > { %v7975_v30 = vadd.f32 %v1243_v35, %v1050_v27 }
 0x13c   : > { %6292 = vmatmul.msk.f32.gmra.mxu0 %vm380_vm0, %v7364_v43  ;;  %6360 = vmatmul.msk.f32.gmra.mxu1 %vm380_vm0, %v6122_v25 }
 0x13d   : > { %6158 = vmatmul.msk.f32.gmra.mxu2 %vm380_vm0, %v6122_v25 }
 0x13e   : > { %6226 = vmatmul.msk.f32.gmra.mxu3 %vm380_vm0, %v7399_v50  ;;  %v725_v50 = vadd.f32 %v7716_v39, %v7714_v49 }
 0x140   : > { %v967_v43 = vpop.f32.mrf.mxu2 }
 0x141   : > { %v1051_v22 = vadd.f32 %v967_v43, %v722_v10  ;;  %v7991_v26 = vpop.f32.mrf.mxu0  ;;  %v1246_v42 = vpop.f32.mrf.mxu3  ;;  %v6124_v10 = vld [vmem:[%s7226_s26 + $0x13b] sm:$0xff] }
 0x142   : > { %v7993_v41 = vpop.f32.mrf.mxu1 }
 0x143   : > { %v7996_v27 = vadd.f32 %v1246_v42, %v1051_v22  ;;  %v6125_v42 = vld [vmem:[%s7226_s26 + $0x143] sm:$0xff] }
 0x144   : > { %6293 = vmatmul.msk.f32.gmra.mxu0 %vm380_vm0, %v7384_v47  ;;  %6361 = vmatmul.msk.f32.gmra.mxu1 %vm380_vm0, %v6123_v29 }
 0x145   : > { %6159 = vmatmul.msk.f32.gmra.mxu2 %vm380_vm0, %v6123_v29 }
 0x146   : > { %6227 = vmatmul.msk.f32.gmra.mxu3 %vm380_vm0, %v7419_v54  ;;  %v728_v54 = vadd.f32 %v7733_v32, %v7731_v60 }
 0x148   : > { %v970_v19 = vpop.f32.mrf.mxu2 }
 0x149   : > { %v1052_v45 = vadd.f32 %v970_v19, %v725_v50  ;;  %v8006_v35 = vpop.f32.mrf.mxu0  ;;  %v1249_v25 = vpop.f32.mrf.mxu3 }
 0x14a   : > { %v8008_v46 = vpop.f32.mrf.mxu1 }
 0x14b   : > { %v8011_v47 = vadd.f32 %v1249_v25, %v1052_v45  ;;  %v6126_v45 = vld [vmem:[%s7226_s26 + $0x153] sm:$0xff] }
 0x14c   : > { %6294 = vmatmul.msk.f32.gmra.mxu0 %vm380_vm0, %v7404_v51  ;;  %6362 = vmatmul.msk.f32.gmra.mxu1 %vm380_vm0, %v6124_v10 }
 0x14d   : > { %6160 = vmatmul.msk.f32.gmra.mxu2 %vm380_vm0, %v6124_v10 }
 0x14e   : > { %6228 = vmatmul.msk.f32.gmra.mxu3 %vm380_vm0, %v7448_v61  ;;  %v731_v61 = vadd.f32 %v7750_v44, %v7748_v1 }
 0x150   : > { %v973_v39 = vpop.f32.mrf.mxu2 }
 0x151   : > { %v1053_v49 = vadd.f32 %v973_v39, %v728_v54  ;;  %v8021_v40 = vpop.f32.mrf.mxu0  ;;  %v1252_v43 = vpop.f32.mrf.mxu3  ;;  %v6127_v39 = vld [vmem:[%s7226_s26 + $0x15b] sm:$0xff] }
 0x152   : > { %v8023_v22 = vpop.f32.mrf.mxu1 }
 0x153   : > { %v8026_v51 = vadd.f32 %v1252_v43, %v1053_v49 }
 0x154   : > { %6295 = vmatmul.msk.f32.gmra.mxu0 %vm380_vm0, %v7424_v55  ;;  %6363 = vmatmul.msk.f32.gmra.mxu1 %vm380_vm0, %v6125_v42 }
 0x155   : > { %6161 = vmatmul.msk.f32.gmra.mxu2 %vm380_vm0, %v6125_v42 }
 0x156   : > { %6229 = vmatmul.msk.f32.gmra.mxu3 %vm380_vm0, %v7471_v2  ;;  %v734_v2 = vadd.f32 %v7767_v53, %v7765_v5  ;;  %v10474_v53 = vld [vmem:[#allocation4_spill] sm:$0xff] }
 0x158   : > { %v976_v32 = vpop.f32.mrf.mxu2 }
 0x159   : > { %v1054_v60 = vadd.f32 %v976_v32, %v731_v61  ;;  %v8036_v29 = vpop.f32.mrf.mxu0  ;;  %v1255_v50 = vpop.f32.mrf.mxu3  ;;  %v6128_v32 = vld [vmem:[%s7226_s26 + $0x16b] sm:$0xff] }
 0x15a   : > { %v8038_v19 = vpop.f32.mrf.mxu1 }
 0x15b   : > { %v8041_v55 = vadd.f32 %v1255_v50, %v1054_v60  ;;  %v10475_v60 = vld [vmem:[#allocation3_spill] sm:$0xff] }
 0x15c   : > { %6296 = vmatmul.msk.f32.gmra.mxu0 %vm380_vm0, %v7453_v62  ;;  %6364 = vmatmul.msk.f32.gmra.mxu1 %vm380_vm0, %v6126_v45 }
 0x15d   : > { %6162 = vmatmul.msk.f32.gmra.mxu2 %vm380_vm0, %v6126_v45 }
 0x15e   : > { %6230 = vmatmul.msk.f32.gmra.mxu3 %vm380_vm0, %v7491_v6  ;;  %v737_v6 = vadd.f32 %v7784_v24, %v7782_v9  ;;  %v740_v24 = vadd.f32 %v7801_v28, %v7799_v17  ;;  %v10476_v9 = vld [vmem:[#allocation6_spill] sm:$0xff]  ;;  %v743_v17 = vadd.f32 %v7824_v16, %v7822_v4  ;;  %v746_v16 = vadd.f32 %v7847_v59, %v7845_v37  ;;  %v10481_v59 = vld [vmem:[#allocation9_spill] sm:$0xff]  ;;  %v6199_v37 = vld [vmem:[%s7226_s26 + $0x1a1] sm:$0xff] }
 0x15f   : > { %v6651_v28 = vld [vmem:[%s10377_s1 + $0x178] sm:$0xff] }
 0x160   : > { %v979_v44 = vpop.f32.mrf.mxu2  ;;  %3590 = vmatpush.msrb.mxu3 %v6651_v28  ;;  %v6719_v4 = vld [vmem:[%s10377_s1 + $0x198] sm:$0xff] }
 0x161   : > { %v1055_v1 = vadd.f32 %v979_v44, %v734_v2  ;;  %v8051_v25 = vpop.f32.mrf.mxu0  ;;  %v1258_v10 = vpop.f32.mrf.mxu3  ;;  %3868 = vmatpush.msrb.mxu0 %v6719_v4  ;;  %v6266_v4 = vld [vmem:[%s7226_s26 + $0x19a] sm:$0xff] }
 0x162   : > { %v8053_v54 = vpop.f32.mrf.mxu1 }
 0x163   : > { %v8056_v62 = vadd.f32 %v1258_v10, %v1055_v1  ;;  %v6129_v10 = vld [vmem:[%s7226_s26 + $0x173] sm:$0xff] }
 0x164   : > { %6297 = vmatmul.msk.f32.gmra.mxu0 %vm380_vm0, %v7476_v3  ;;  %6365 = vmatmul.msk.f32.gmra.mxu1 %vm380_vm0, %v6127_v39 }
 0x165   : > { %6163 = vmatmul.msk.f32.gmra.mxu2 %vm380_vm0, %v6127_v39 }
 0x166   : > { %6231 = vmatmul.msk.f32.gmra.mxu3 %vm380_vm0, %v10474_v53  ;;  %v10477_v53 = vld [vmem:[#allocation5_spill] sm:$0xff] }
 0x168   : > { %v982_v5 = vpop.f32.mrf.mxu2 }
 0x169   : > { %v1056_v49 = vadd.f32 %v982_v5, %v737_v6  ;;  %v8066_v43 = vpop.f32.mrf.mxu0  ;;  %v1261_v42 = vpop.f32.mrf.mxu3  ;;  %v6579_v6 = vld [vmem:[%s10377_s1 + $0x138] sm:$0xff]  ;;  %v10478_v5 = vld [vmem:[#allocation8_spill] sm:$0xff] }
 0x16a   : > { %v8068_v61 = vpop.f32.mrf.mxu1  ;;  %3344 = vmatpush.msrb.mxu2 %v6579_v6 }
 0x16b   : > { %v8071_v3 = vadd.f32 %v1261_v42, %v1056_v49 }
 0x16c   : > { %6298 = vmatmul.msk.f32.gmra.mxu0 %vm380_vm0, %v10475_v60  ;;  %6366 = vmatmul.msk.f32.gmra.mxu1 %vm380_vm0, %v6128_v32 }
 0x16d   : > { %6164 = vmatmul.msk.f32.gmra.mxu2 %vm380_vm0, %v6128_v32 }
 0x16e   : > { %6232 = vmatmul.msk.f32.gmra.mxu3 %vm380_vm0, %v10476_v9  ;;  %v6130_v9 = vld [vmem:[%s7226_s26 + $0x183] sm:$0xff] }
 0x170   : > { %v985_v50 = vpop.f32.mrf.mxu2 }
 0x171   : > { %v1057_v45 = vadd.f32 %v985_v50, %v740_v24  ;;  %v8081_v2 = vpop.f32.mrf.mxu0  ;;  %v1264_v44 = vpop.f32.mrf.mxu3 }
 0x172   : > { %v8083_v1 = vpop.f32.mrf.mxu1 }
 0x173   : > { %v8086_v39 = vadd.f32 %v1264_v44, %v1057_v45  ;;  %v10479_v45 = vld [vmem:[#allocation7_spill] sm:$0xff] }
 0x174   : > { %6299 = vmatmul.msk.f32.gmra.mxu0 %vm380_vm0, %v10477_v53  ;;  %6367 = vmatmul.msk.f32.gmra.mxu1 %vm380_vm0, %v6129_v10  ;;  %v6198_v44 = vld [vmem:[%s7226_s26 + $0x199] sm:$0xff] }
 0x175   : > { %6165 = vmatmul.msk.f32.gmra.mxu2 %vm380_vm0, %v6129_v10  ;;  %v6787_v10 = vld [vmem:[%s10377_s1 + $0x1b8] sm:$0xff] }
 0x176   : > { %6233 = vmatmul.msk.f32.gmra.mxu3 %vm380_vm0, %v10478_v5  ;;  %4146 = vmatpush.msrb.mxu1 %v6787_v10 }
 0x178   : > { %v988_v49 = vpop.f32.mrf.mxu2 }
 0x179   : > { %v1058_v42 = vadd.f32 %v988_v49, %v743_v17  ;;  %v8102_v32 = vpop.f32.mrf.mxu0  ;;  %v1267_v60 = vpop.f32.mrf.mxu3  ;;  %v6131_v49 = vld [vmem:[%s7226_s26 + $0x18b] sm:$0xff] }
 0x17a   : > { %v8104_v24 = vpop.f32.mrf.mxu1 }
 0x17b   : > { %v8107_v50 = vadd.f32 %v1267_v60, %v1058_v42  ;;  %v749_v60 = vadd.f32 %v7864_v38, %v7862_v57  ;;  %v8149_v38 = vld [vmem:[%s7226_s26 + $0x4a] sm:$0xff]  ;;  %v752_v57 = vadd.f32 %v7879_v21, %v7877_v8  ;;  %v8168_v8 = vld [vmem:[%s7226_s26 + $0x52] sm:$0xff] }
 0x17c   : > { %6300 = vmatmul.msk.f32.gmra.mxu0 %vm380_vm0, %v10479_v45  ;;  %6368 = vmatmul.msk.f32.gmra.mxu1 %vm380_vm0, %v6130_v9 }
 0x17d   : > { %6166 = vmatmul.msk.f32.gmra.mxu2 %vm380_vm0, %v6130_v9 }
 0x17e   : > { %6234 = vmatmul.msk.f32.gmra.mxu3 %vm380_vm0, %v6198_v44 }
 0x180   : > { %v991_v6 = vpop.f32.mrf.mxu2 }
 0x181   : > { %v1059_v53 = vadd.f32 %v991_v6, %v746_v16  ;;  %v8123_v28 = vpop.f32.mrf.mxu0  ;;  %v1270_v17 = vpop.f32.mrf.mxu3  ;;  %v6372_v6 = vld [vmem:[%s7226_s26 + $0x49] sm:$0xff] }
 0x182   : > { %v8125_v5 = vpop.f32.mrf.mxu1 }
 0x183   : > { %v8128_v42 = vadd.f32 %v1270_v17, %v1059_v53  ;;  %v6334_v53 = vld [vmem:[%s7226_s26 + $0x19b] sm:$0xff] }
 0x184   : > { %6301 = vmatmul.msk.f32.gmra.mxu0 %vm380_vm0, %v10481_v59  ;;  %6369 = vmatmul.msk.f32.gmra.mxu1 %vm380_vm0, %v6131_v49 }
 0x185   : > { %10480 = vst [vmem:[#allocation4_spill] sm:$0xff] %v8128_v42  ;;  %6167 = vmatmul.msk.f32.gmra.mxu2 %vm380_vm0, %v6131_v49  ;;  %v8288_v42 = vld [vmem:[%s7226_s26 + $0x9a] sm:$0xff] }
 0x186   : > { %6235 = vmatmul.msk.f32.gmra.mxu3 %vm380_vm0, %v6199_v37 }
 0x188   : > { %v994_v9 = vpop.f32.mrf.mxu2 }
 0x189   : > { %v1060_v45 = vadd.f32 %v994_v9, %v749_v60  ;;  %v8138_v44 = vpop.f32.mrf.mxu0  ;;  %v1273_v16 = vpop.f32.mrf.mxu3  ;;  %v6267_v60 = vld [vmem:[%s7226_s26 + $0x1a2] sm:$0xff] }
 0x18a   : > { %10482 = vst [vmem:[#allocation3_spill] sm:$0xff] %v8138_v44  ;;  %v8141_v10 = vpop.f32.mrf.mxu1  ;;  %v10516_v44 = vld [vmem:[#allocation21_spill] sm:$0xff] }
 0x18b   : > { %10483 = vst [vmem:[#allocation6_spill] sm:$0xff] %v8141_v10  ;;  %v8145_v17 = vadd.f32 %v1273_v16, %v1060_v45  ;;  %v6335_v16 = vld [vmem:[%s7226_s26 + $0x1a3] sm:$0xff] }
 0x18c   : > { %6302 = vmatmul.msk.f32.gmra.mxu0 %vm380_vm0, %v6266_v4  ;;  %6370 = vmatmul.msk.f32.gmra.mxu1 %vm380_vm0, %v6334_v53  ;;  %v6373_v4 = vld [vmem:[%s7226_s26 + $0x51] sm:$0xff]  ;;  %v8243_v10 = vld [vmem:[%s7226_s26 + $0x82] sm:$0xff] }
 0x18d   : > { %10484 = vst [vmem:[#allocation5_spill] sm:$0xff] %v8145_v17  ;;  %6408 = vmatmul.msk.f32.vlgmr.msra.gmra.mxu2 %vm380_vm0, %v6372_v6  ;;  %v10488_v53 = vld [vmem:[#allocation10_spill] sm:$0xff]  ;;  %v2993_v17 = vld [vmem:[%s7226_s26 + $0x22] sm:$0xff] }
 0x18e   : > { %6476 = vmatmul.msk.f32.vlgmr.msra.gmra.mxu3 %vm380_vm0, %v8149_v38 }
 0x190   : > { %v997_v49 = vpop.f32.mrf.mxu2 }
 0x191   : > { %v1061_v59 = vadd.f32 %v997_v49, %v752_v57  ;;  %v8157_v37 = vpop.f32.mrf.mxu0  ;;  %v1276_v9 = vpop.f32.mrf.mxu3 }
 0x192   : > { %10485 = vst [vmem:[#allocation8_spill] sm:$0xff] %v8157_v37  ;;  %v8160_v45 = vpop.f32.mrf.mxu1 }
 0x193   : > { %10486 = vst [vmem:[#allocation7_spill] sm:$0xff] %v8160_v45  ;;  %v8164_v6 = vadd.f32 %v1276_v9, %v1061_v59  ;;  %v2990_v9 = vld [vmem:[%s7226_s26 + $0x2] sm:$0xff] }
 0x194   : > { %6303 = vmatmul.msk.f32.gmra.mxu0 %vm380_vm0, %v6267_v60  ;;  %6371 = vmatmul.msk.f32.gmra.mxu1 %vm380_vm0, %v6335_v16  ;;  %v6374_v60 = vld [vmem:[%s7226_s26 + $0x61] sm:$0xff] }
 0x195   : > { %10487 = vst [vmem:[#allocation9_spill] sm:$0xff] %v8164_v6  ;;  %6409 = vmatmul.msk.f32.gmra.mxu2 %vm380_vm0, %v6373_v4  ;;  %v8186_v4 = vld [vmem:[%s7226_s26 + $0x62] sm:$0xff] }
 0x196   : > { %6477 = vmatmul.msk.f32.gmra.mxu3 %vm380_vm0, %v8168_v8 }
 0x198   : > { %v1000_v21 = vpop.f32.mrf.mxu2 }
 0x199   : > { %v1062_v57 = vadd.f32 %v1000_v21, %v10488_v53  ;;  %v8175_v49 = vpop.f32.mrf.mxu0  ;;  %v1279_v45 = vpop.f32.mrf.mxu3  ;;  %v10492_v21 = vld [vmem:[#allocation11_spill] sm:$0xff] }
 0x19a   : > { %10489 = vst [vmem:[#allocation10_spill] sm:$0xff] %v8175_v49  ;;  %v8177_v59 = vpop.f32.mrf.mxu1 }
 0x19b   : > { %10490 = vst [vmem:[#allocation36_spill] sm:$0xff] %v8177_v59  ;;  %v8181_v6 = vadd.f32 %v1279_v45, %v1062_v57 }
 0x19c   : > { %6544 = vmatmul.msk.f32.vlgmr.msra.gmra.mxu0 %vm380_vm0, %v7639_v14  ;;  %6584 = vmatmul.msk.f32.vlgmr.msra.gmra.mxu1 %vm380_vm0, %v2990_v9  ;;  %v6375_v14 = vld [vmem:[%s7226_s26 + $0x69] sm:$0xff] }
 0x19d   : > { %10491 = vst [vmem:[#allocation37_spill] sm:$0xff] %v8181_v6  ;;  %6410 = vmatmul.msk.f32.gmra.mxu2 %vm380_vm0, %v6374_v60  ;;  %v2991_v6 = vld [vmem:[%s7226_s26 + $0xa] sm:$0xff] }
 0x19e   : > { %6478 = vmatmul.msk.f32.gmra.mxu3 %vm380_vm0, %v8186_v4  ;;  %v10496_v60 = vld [vmem:[#allocation13_spill] sm:$0xff] }
 0x19f   : > { %v8204_v9 = vld [vmem:[%s7226_s26 + $0x6a] sm:$0xff] }
 0x1a0   : > { %v1003_v16 = vpop.f32.mrf.mxu2 }
 0x1a1   : > { %v1063_v53 = vadd.f32 %v1003_v16, %v10492_v21  ;;  %v8193_v59 = vpop.f32.mrf.mxu0  ;;  %v1282_v45 = vpop.f32.mrf.mxu3  ;;  %v10497_v21 = vld [vmem:[#allocation12_spill] sm:$0xff] }
 0x1a2   : > { %10493 = vst [vmem:[#allocation11_spill] sm:$0xff] %v8193_v59  ;;  %v8195_v57 = vpop.f32.mrf.mxu1 }
 0x1a3   : > { %10494 = vst [vmem:[#allocation38_spill] sm:$0xff] %v8195_v57  ;;  %v8199_v49 = vadd.f32 %v1282_v45, %v1063_v53 }
 0x1a4   : > { %6545 = vmatmul.msk.f32.gmra.mxu0 %vm380_vm0, %v10496_v60  ;;  %6585 = vmatmul.msk.f32.gmra.mxu1 %vm380_vm0, %v2991_v6  ;;  %v6376_v60 = vld [vmem:[%s7226_s26 + $0x79] sm:$0xff] }
 0x1a5   : > { %10495 = vst [vmem:[#allocation39_spill] sm:$0xff] %v8199_v49  ;;  %6411 = vmatmul.msk.f32.gmra.mxu2 %vm380_vm0, %v6375_v14  ;;  %v2992_v49 = vld [vmem:[%s7226_s26 + $0x1a] sm:$0xff] }
 0x1a6   : > { %6479 = vmatmul.msk.f32.gmra.mxu3 %vm380_vm0, %v8204_v9  ;;  %v10501_v14 = vld [vmem:[#allocation15_spill] sm:$0xff] }
 0x1a7   : > { %v8222_v6 = vld [vmem:[%s7226_s26 + $0x7a] sm:$0xff] }
 0x1a8   : > { %v1006_v16 = vpop.f32.mrf.mxu2 }
 0x1a9   : > { %v1064_v57 = vadd.f32 %v1006_v16, %v10497_v21  ;;  %v8211_v59 = vpop.f32.mrf.mxu0  ;;  %v1285_v53 = vpop.f32.mrf.mxu3  ;;  %v10502_v21 = vld [vmem:[#allocation14_spill] sm:$0xff] }
 0x1aa   : > { %10498 = vst [vmem:[#allocation13_spill] sm:$0xff] %v8211_v59  ;;  %v8213_v45 = vpop.f32.mrf.mxu1 }
 0x1ab   : > { %10499 = vst [vmem:[#allocation12_spill] sm:$0xff] %v8213_v45  ;;  %v8217_v37 = vadd.f32 %v1285_v53, %v1064_v57 }
 0x1ac   : > { %6546 = vmatmul.msk.f32.gmra.mxu0 %vm380_vm0, %v10501_v14  ;;  %6586 = vmatmul.msk.f32.gmra.mxu1 %vm380_vm0, %v2992_v49  ;;  %v6578_v49 = vld [vmem:[%s10377_s1 + $0x130] sm:$0xff] }
 0x1ad   : > { %10500 = vst [vmem:[#allocation40_spill] sm:$0xff] %v8217_v37  ;;  %6412 = vmatmul.msk.f32.gmra.mxu2 %vm380_vm0, %v6376_v60  ;;  %v6377_v37 = vld [vmem:[%s7226_s26 + $0x81] sm:$0xff]  ;;  %v10506_v60 = vld [vmem:[#allocation17_spill] sm:$0xff] }
 0x1ae   : > { %6480 = vmatmul.msk.f32.gmra.mxu3 %vm380_vm0, %v8222_v6  ;;  %3345 = vmatpush.msrb.mxu2 %v6578_v49  ;;  %v6378_v49 = vld [vmem:[%s7226_s26 + $0x91] sm:$0xff] }
 0x1b0   : > { %v1009_v16 = vpop.f32.mrf.mxu2 }
 0x1b1   : > { %v1065_v45 = vadd.f32 %v1009_v16, %v10502_v21  ;;  %v8229_v59 = vpop.f32.mrf.mxu0  ;;  %v1288_v57 = vpop.f32.mrf.mxu3  ;;  %v10507_v21 = vld [vmem:[#allocation16_spill] sm:$0xff] }
 0x1b2   : > { %10503 = vst [vmem:[#allocation15_spill] sm:$0xff] %v8229_v59  ;;  %v8231_v53 = vpop.f32.mrf.mxu1  ;;  %v10511_v59 = vld [vmem:[#allocation19_spill] sm:$0xff] }
 0x1b3   : > { %10504 = vst [vmem:[#allocation14_spill] sm:$0xff] %v8231_v53  ;;  %v8235_v14 = vadd.f32 %v1288_v57, %v1065_v45  ;;  %v6650_v45 = vld [vmem:[%s10377_s1 + $0x170] sm:$0xff] }
 0x1b4   : > { %6547 = vmatmul.msk.f32.gmra.mxu0 %vm380_vm0, %v10506_v60  ;;  %6587 = vmatmul.msk.f32.gmra.mxu1 %vm380_vm0, %v2993_v17 }
 0x1b5   : > { %10505 = vst [vmem:[#allocation41_spill] sm:$0xff] %v8235_v14  ;;  %6413 = vmatmul.msk.f32.gmra.mxu2 %vm380_vm0, %v6377_v37  ;;  %3591 = vmatpush.msrb.mxu3 %v6650_v45  ;;  %v2994_v37 = vld [vmem:[%s7226_s26 + $0x32] sm:$0xff] }
 0x1b6   : > { %6481 = vmatmul.msk.f32.gmra.mxu3 %vm380_vm0, %v8243_v10  ;;  %v8264_v45 = vld [vmem:[%s7226_s26 + $0x92] sm:$0xff] }
 0x1b8   : > { %v1012_v16 = vpop.f32.mrf.mxu2 }
 0x1b9   : > { %v1066_v57 = vadd.f32 %v1012_v16, %v10507_v21  ;;  %v8253_v60 = vpop.f32.mrf.mxu0  ;;  %v1291_v14 = vpop.f32.mrf.mxu3  ;;  %v6718_v16 = vld [vmem:[%s10377_s1 + $0x190] sm:$0xff]  ;;  %v10512_v21 = vld [vmem:[#allocation18_spill] sm:$0xff] }
 0x1ba   : > { %10508 = vst [vmem:[#allocation17_spill] sm:$0xff] %v8253_v60  ;;  %v8255_v53 = vpop.f32.mrf.mxu1  ;;  %3869 = vmatpush.msrb.mxu0 %v6718_v16  ;;  %v2995_v16 = vld [vmem:[%s7226_s26 + $0x3a] sm:$0xff] }
 0x1bb   : > { %10509 = vst [vmem:[#allocation16_spill] sm:$0xff] %v8255_v53  ;;  %v8259_v17 = vadd.f32 %v1291_v14, %v1066_v57  ;;  %v6786_v14 = vld [vmem:[%s10377_s1 + $0x1b0] sm:$0xff]  ;;  %v6379_v53 = vld [vmem:[%s7226_s26 + $0x99] sm:$0xff] }
 0x1bc   : > { %6548 = vmatmul.msk.f32.gmra.mxu0 %vm380_vm0, %v10511_v59  ;;  %6588 = vmatmul.msk.f32.gmra.mxu1 %vm380_vm0, %v2994_v37 }
 0x1bd   : > { %10510 = vst [vmem:[#allocation42_spill] sm:$0xff] %v8259_v17  ;;  %6414 = vmatmul.msk.f32.gmra.mxu2 %vm380_vm0, %v6378_v49  ;;  %4147 = vmatpush.msrb.mxu1 %v6786_v14 }
 0x1be   : > { %6482 = vmatmul.msk.f32.gmra.mxu3 %vm380_vm0, %v8264_v45 }
 0x1c0   : > { %v1015_v59 = vpop.f32.mrf.mxu2 }
 0x1c1   : > { %v1067_v57 = vadd.f32 %v1015_v59, %v10512_v21  ;;  %v8277_v49 = vpop.f32.mrf.mxu0  ;;  %v1294_v37 = vpop.f32.mrf.mxu3  ;;  %v10517_v59 = vld [vmem:[#allocation20_spill] sm:$0xff] }
 0x1c2   : > { %10513 = vst [vmem:[#allocation19_spill] sm:$0xff] %v8277_v49  ;;  %v8279_v17 = vpop.f32.mrf.mxu1  ;;  %v10521_v49 = vld [vmem:[#allocation23_spill] sm:$0xff] }
 0x1c3   : > { %10514 = vst [vmem:[#allocation18_spill] sm:$0xff] %v8279_v17  ;;  %v8283_v60 = vadd.f32 %v1294_v37, %v1067_v57 }
 0x1c4   : > { %6549 = vmatmul.msk.f32.gmra.mxu0 %vm380_vm0, %v10516_v44  ;;  %6589 = vmatmul.msk.f32.gmra.mxu1 %vm380_vm0, %v2995_v16  ;;  %v6380_v44 = vld [vmem:[%s7226_s26 + $0xa9] sm:$0xff] }
 0x1c5   : > { %10515 = vst [vmem:[#allocation43_spill] sm:$0xff] %v8283_v60  ;;  %6415 = vmatmul.msk.f32.gmra.mxu2 %vm380_vm0, %v6379_v53  ;;  %v8305_v53 = vld [vmem:[%s7226_s26 + $0xaa] sm:$0xff] }
 0x1c6   : > { %6483 = vmatmul.msk.f32.gmra.mxu3 %vm380_vm0, %v8288_v42 }
 0x1c8   : > { %v1018_v14 = vpop.f32.mrf.mxu2 }
 0x1c9   : > { %v1068_v21 = vadd.f32 %v1018_v14, %v10517_v59  ;;  %v8295_v17 = vpop.f32.mrf.mxu0  ;;  %v1297_v57 = vpop.f32.mrf.mxu3  ;;  %v10522_v14 = vld [vmem:[#allocation22_spill] sm:$0xff] }
 0x1ca   : > { %10518 = vst [vmem:[#allocation21_spill] sm:$0xff] %v8295_v17  ;;  %v8297_v37 = vpop.f32.mrf.mxu1  ;;  %v8398_v17 = vld [vmem:[%s7226_s26 + $0xe2] sm:$0xff] }
 0x1cb   : > { %10519 = vst [vmem:[#allocation20_spill] sm:$0xff] %v8297_v37  ;;  %v8300_v60 = vadd.f32 %v1297_v57, %v1068_v21 }
 0x1cc   : > { %6550 = vmatmul.msk.f32.gmra.mxu0 %vm380_vm0, %v10521_v49  ;;  %6590 = vmatmul.msk.f32.gmra.mxu1 %vm380_vm0, %v8149_v38  ;;  %v6381_v49 = vld [vmem:[%s7226_s26 + $0xb1] sm:$0xff] }
 0x1cd   : > { %10520 = vst [vmem:[#allocation44_spill] sm:$0xff] %v8300_v60  ;;  %6416 = vmatmul.msk.f32.gmra.mxu2 %vm380_vm0, %v6380_v44  ;;  %v10526_v44 = vld [vmem:[#allocation25_spill] sm:$0xff] }
 0x1ce   : > { %6484 = vmatmul.msk.f32.gmra.mxu3 %vm380_vm0, %v8305_v53  ;;  %v8323_v38 = vld [vmem:[%s7226_s26 + $0xb2] sm:$0xff] }
 0x1d0   : > { %v1021_v16 = vpop.f32.mrf.mxu2 }
 0x1d1   : > { %v1069_v59 = vadd.f32 %v1021_v16, %v10522_v14  ;;  %v8313_v37 = vpop.f32.mrf.mxu0  ;;  %v1300_v21 = vpop.f32.mrf.mxu3  ;;  %v10527_v14 = vld [vmem:[#allocation24_spill] sm:$0xff] }
 0x1d2   : > { %10523 = vst [vmem:[#allocation23_spill] sm:$0xff] %v8313_v37  ;;  %v8315_v57 = vpop.f32.mrf.mxu1 }
 0x1d3   : > { %10524 = vst [vmem:[#allocation22_spill] sm:$0xff] %v8315_v57  ;;  %v8318_v60 = vadd.f32 %v1300_v21, %v1069_v59 }
 0x1d4   : > { %6551 = vmatmul.msk.f32.gmra.mxu0 %vm380_vm0, %v10526_v44  ;;  %6591 = vmatmul.msk.f32.gmra.mxu1 %vm380_vm0, %v8168_v8  ;;  %v6382_v44 = vld [vmem:[%s7226_s26 + $0xc1] sm:$0xff] }
 0x1d5   : > { %10525 = vst [vmem:[#allocation45_spill] sm:$0xff] %v8318_v60  ;;  %6417 = vmatmul.msk.f32.gmra.mxu2 %vm380_vm0, %v6381_v49  ;;  %v10531_v49 = vld [vmem:[#allocation27_spill] sm:$0xff] }
 0x1d6   : > { %6485 = vmatmul.msk.f32.gmra.mxu3 %vm380_vm0, %v8323_v38  ;;  %v8341_v8 = vld [vmem:[%s7226_s26 + $0xc2] sm:$0xff] }
 0x1d8   : > { %v1024_v16 = vpop.f32.mrf.mxu2 }
 0x1d9   : > { %v1070_v57 = vadd.f32 %v1024_v16, %v10527_v14  ;;  %v8331_v37 = vpop.f32.mrf.mxu0  ;;  %v1303_v59 = vpop.f32.mrf.mxu3  ;;  %v10532_v14 = vld [vmem:[#allocation26_spill] sm:$0xff] }
 0x1da   : > { %10528 = vst [vmem:[#allocation25_spill] sm:$0xff] %v8331_v37  ;;  %v8333_v21 = vpop.f32.mrf.mxu1 }
 0x1db   : > { %10529 = vst [vmem:[#allocation24_spill] sm:$0xff] %v8333_v21  ;;  %v8336_v60 = vadd.f32 %v1303_v59, %v1070_v57 }
 0x1dc   : > { %6552 = vmatmul.msk.f32.gmra.mxu0 %vm380_vm0, %v10531_v49  ;;  %6592 = vmatmul.msk.f32.gmra.mxu1 %vm380_vm0, %v8186_v4  ;;  %v6383_v49 = vld [vmem:[%s7226_s26 + $0xc9] sm:$0xff] }
 0x1dd   : > { %10530 = vst [vmem:[#allocation46_spill] sm:$0xff] %v8336_v60  ;;  %6418 = vmatmul.msk.f32.gmra.mxu2 %vm380_vm0, %v6382_v44  ;;  %v10536_v44 = vld [vmem:[#allocation29_spill] sm:$0xff] }
 0x1de   : > { %6486 = vmatmul.msk.f32.gmra.mxu3 %vm380_vm0, %v8341_v8  ;;  %v8359_v4 = vld [vmem:[%s7226_s26 + $0xca] sm:$0xff] }
 0x1e0   : > { %v1027_v16 = vpop.f32.mrf.mxu2 }
 0x1e1   : > { %v1071_v21 = vadd.f32 %v1027_v16, %v10532_v14  ;;  %v8349_v37 = vpop.f32.mrf.mxu0  ;;  %v1306_v57 = vpop.f32.mrf.mxu3  ;;  %v10537_v14 = vld [vmem:[#allocation28_spill] sm:$0xff] }
 0x1e2   : > { %10533 = vst [vmem:[#allocation27_spill] sm:$0xff] %v8349_v37  ;;  %v8351_v59 = vpop.f32.mrf.mxu1 }
 0x1e3   : > { %10534 = vst [vmem:[#allocation26_spill] sm:$0xff] %v8351_v59  ;;  %v8354_v60 = vadd.f32 %v1306_v57, %v1071_v21 }
 0x1e4   : > { %6553 = vmatmul.msk.f32.gmra.mxu0 %vm380_vm0, %v10536_v44  ;;  %6593 = vmatmul.msk.f32.gmra.mxu1 %vm380_vm0, %v8204_v9  ;;  %v6384_v44 = vld [vmem:[%s7226_s26 + $0xd9] sm:$0xff] }
 0x1e5   : > { %10535 = vst [vmem:[#allocation47_spill] sm:$0xff] %v8354_v60  ;;  %6419 = vmatmul.msk.f32.gmra.mxu2 %vm380_vm0, %v6383_v49  ;;  %v10541_v49 = vld [vmem:[#allocation31_spill] sm:$0xff] }
 0x1e6   : > { %6487 = vmatmul.msk.f32.gmra.mxu3 %vm380_vm0, %v8359_v4  ;;  %v8377_v9 = vld [vmem:[%s7226_s26 + $0xda] sm:$0xff] }
 0x1e8   : > { %v1030_v16 = vpop.f32.mrf.mxu2 }
 0x1e9   : > { %v1072_v59 = vadd.f32 %v1030_v16, %v10537_v14  ;;  %v8367_v37 = vpop.f32.mrf.mxu0  ;;  %v1309_v21 = vpop.f32.mrf.mxu3  ;;  %v10542_v14 = vld [vmem:[#allocation30_spill] sm:$0xff] }
 0x1ea   : > { %10538 = vst [vmem:[#allocation29_spill] sm:$0xff] %v8367_v37  ;;  %v8369_v57 = vpop.f32.mrf.mxu1 }
 0x1eb   : > { %10539 = vst [vmem:[#allocation28_spill] sm:$0xff] %v8369_v57  ;;  %v8372_v60 = vadd.f32 %v1309_v21, %v1072_v59 }
 0x1ec   : > { %6554 = vmatmul.msk.f32.gmra.mxu0 %vm380_vm0, %v10541_v49  ;;  %6594 = vmatmul.msk.f32.gmra.mxu1 %vm380_vm0, %v8222_v6  ;;  %v6385_v49 = vld [vmem:[%s7226_s26 + $0xe1] sm:$0xff] }
 0x1ed   : > { %10540 = vst [vmem:[#allocation48_spill] sm:$0xff] %v8372_v60  ;;  %6420 = vmatmul.msk.f32.gmra.mxu2 %vm380_vm0, %v6384_v44  ;;  %v6577_v6 = vld [vmem:[%s10377_s1 + $0x128] sm:$0xff]  ;;  %v10546_v44 = vld [vmem:[#allocation33_spill] sm:$0xff] }
 0x1ee   : > { %6488 = vmatmul.msk.f32.gmra.mxu3 %vm380_vm0, %v8377_v9  ;;  %3346 = vmatpush.msrb.mxu2 %v6577_v6  ;;  %v6520_v6 = vld [vmem:[%s7226_s26 + $0xdb] sm:$0xff] }
 0x1f0   : > { %v1033_v16 = vpop.f32.mrf.mxu2 }
 0x1f1   : > { %v1073_v57 = vadd.f32 %v1033_v16, %v10542_v14  ;;  %v8385_v37 = vpop.f32.mrf.mxu0  ;;  %v1312_v59 = vpop.f32.mrf.mxu3  ;;  %v10547_v14 = vld [vmem:[#allocation32_spill] sm:$0xff] }
 0x1f2   : > { %10543 = vst [vmem:[#allocation31_spill] sm:$0xff] %v8385_v37  ;;  %v8387_v21 = vpop.f32.mrf.mxu1 }
 0x1f3   : > { %10544 = vst [vmem:[#allocation30_spill] sm:$0xff] %v8387_v21  ;;  %v8390_v60 = vadd.f32 %v1312_v59, %v1073_v57  ;;  %v6649_v57 = vld [vmem:[%s10377_s1 + $0x168] sm:$0xff] }
 0x1f4   : > { %6555 = vmatmul.msk.f32.gmra.mxu0 %vm380_vm0, %v10546_v44  ;;  %6595 = vmatmul.msk.f32.gmra.mxu1 %vm380_vm0, %v8243_v10  ;;  %v6386_v10 = vld [vmem:[%s7226_s26 + $0xf1] sm:$0xff] }
 0x1f5   : > { %10545 = vst [vmem:[#allocation49_spill] sm:$0xff] %v8390_v60  ;;  %6421 = vmatmul.msk.f32.gmra.mxu2 %vm380_vm0, %v6385_v49  ;;  %3592 = vmatpush.msrb.mxu3 %v6649_v57  ;;  %v8419_v57 = vld [vmem:[%s7226_s26 + $0xf2] sm:$0xff] }
 0x1f6   : > { %6489 = vmatmul.msk.f32.gmra.mxu3 %vm380_vm0, %v8398_v17 }
 0x1f8   : > { %v1036_v16 = vpop.f32.mrf.mxu2 }
 0x1f9   : > { %v1074_v59 = vadd.f32 %v1036_v16, %v10547_v14  ;;  %v8409_v44 = vpop.f32.mrf.mxu0  ;;  %v1315_v60 = vpop.f32.mrf.mxu3  ;;  %v10550_v14 = vld [vmem:[#allocation34_spill] sm:$0xff] }
 0x1fa   : > { %10548 = vst [vmem:[#allocation33_spill] sm:$0xff] %v8409_v44  ;;  %v8412_v49 = vpop.f32.mrf.mxu1 }
 0x1fb   : > { %10549 = vst [vmem:[#allocation32_spill] sm:$0xff] %v8412_v49  ;;  %v8415_v21 = vadd.f32 %v1315_v60, %v1074_v59  ;;  %v6387_v59 = vld [vmem:[%s7226_s26 + $0xf9] sm:$0xff] }
 0x1fc   : > { %6556 = vmatmul.msk.f32.gmra.mxu0 %vm380_vm0, %v6520_v6  ;;  %6596 = vmatmul.msk.f32.gmra.mxu1 %vm380_vm0, %v8264_v45 }
 0x1fd   : > { %6422 = vmatmul.msk.f32.gmra.mxu2 %vm380_vm0, %v6386_v10  ;;  %v8437_v10 = vld [vmem:[%s7226_s26 + $0xfa] sm:$0xff] }
 0x1fe   : > { %6490 = vmatmul.msk.f32.gmra.mxu3 %vm380_vm0, %v8419_v57 }
 0x200   : > { %v1039_v16 = vpop.f32.mrf.mxu2 }
 0x201   : > { %v1075_v44 = vadd.f32 %v1039_v16, %v10550_v14  ;;  %v8427_v49 = vpop.f32.mrf.mxu0  ;;  %v1318_v37 = vpop.f32.mrf.mxu3  ;;  %v10553_v16 = vld [vmem:[#allocation35_spill] sm:$0xff] }
 0x202   : > { %v8429_v60 = vpop.f32.mrf.mxu1 }
 0x203   : > { %10551 = vst [vmem:[#allocation34_spill] sm:$0xff] %v8429_v60  ;;  %v8432_v6 = vadd.f32 %v1318_v37, %v1075_v44  ;;  %v6785_v37 = vld [vmem:[%s10377_s1 + $0x1a8] sm:$0xff] }
 0x204   : > { %6557 = vmatmul.msk.f32.gmra.mxu0 %vm380_vm0, %v7882_v52  ;;  %6597 = vmatmul.msk.f32.gmra.mxu1 %vm380_vm0, %v8288_v42  ;;  %v6717_v52 = vld [vmem:[%s10377_s1 + $0x188] sm:$0xff] }
 0x205   : > { %10552 = vst [vmem:[#allocation50_spill] sm:$0xff] %v8432_v6  ;;  %6423 = vmatmul.msk.f32.gmra.mxu2 %vm380_vm0, %v6387_v59  ;;  %v6388_v42 = vld [vmem:[%s7226_s26 + $0x109] sm:$0xff]  ;;  %3870 = vmatpush.msrb.mxu0 %v6717_v52 }
 0x206   : > { %6491 = vmatmul.msk.f32.gmra.mxu3 %vm380_vm0, %v8437_v10  ;;  %4148 = vmatpush.msrb.mxu1 %v6785_v37 }
 0x208   : > { %v1042_v45 = vpop.f32.mrf.mxu2 }
 0x209   : > { %v1076_v14 = vadd.f32 %v1042_v45, %v10553_v16  ;;  %v8445_v60 = vpop.f32.mrf.mxu0  ;;  %v1321_v44 = vpop.f32.mrf.mxu3  ;;  %v8461_v45 = vld [vmem:[%s7226_s26 + $0x10a] sm:$0xff]  ;;  %v1602_v16 = vadd.f32 %v7896_v48, %v7884_v13  ;;  %v1603_v13 = vadd.f32 %v7915_v0, %v7903_v56  ;;  %v8498_v56 = vld [vmem:[%s10379_s3] ss:$0 sm:$0xff] }
 0x20a   : > { %v8453_v59 = vpop.f32.mrf.mxu1 }
 0x20b   : > { %v8456_v6 = vadd.f32 %v1321_v44, %v1076_v14  ;;  %v1880_v14 = vadd.f32 %v7898_v11, %v1602_v16 }
 0x20c   : > { %6558 = vmatmul.msk.f32.gmra.mxu0 %vm380_vm0, %v7901_v12  ;;  %6598 = vmatmul.msk.f32.gmra.mxu1 %vm380_vm0, %v8305_v53  ;;  %v8479_v53 = vld [vmem:[%s7226_s26 + $0x112] sm:$0xff] }
 0x20d   : > { %10554 = vst [vmem:[#allocation35_spill] sm:$0xff] %v8456_v6  ;;  %6424 = vmatmul.msk.f32.gmra.mxu2 %vm380_vm0, %v6388_v42  ;;  %v6389_v6 = vld [vmem:[%s7226_s26 + $0x111] sm:$0xff] }
 0x20e   : > { %6492 = vmatmul.msk.f32.gmra.mxu3 %vm380_vm0, %v8461_v45 }
 0x210   : > { %v2063_v52 = vpop.f32.mrf.mxu2 }
 0x211   : > { %v8470_v37 = vpop.f32.mrf.mxu0  ;;  %v2341_v12 = vpop.f32.mrf.mxu3  ;;  %v2159_v42 = vadd.f32 %v2063_v52, %v1880_v14  ;;  %v6524_v52 = vld [vmem:[%s7226_s26 + $0x10b] sm:$0xff] }
 0x212   : > { %10555 = vst [vmem:[#allocation51_spill] sm:$0xff] %v8470_v37  ;;  %v8473_v44 = vpop.f32.mrf.mxu1  ;;  %v8506_v37 = vld [vmem:[%s7226_s26 + $0x122] sm:$0xff] }
 0x213   : > { %10556 = vst [vmem:[#allocation52_spill] sm:$0xff] %v8473_v44  ;;  %v2437_v48 = vadd.f32 %v2341_v12, %v2159_v42  ;;  %v6390_v12 = vld [vmem:[%s7226_s26 + $0x121] sm:$0xff] }
 0x214   : > { %6559 = vmatmul.msk.f32.gmra.mxu0 %vm380_vm0, %v7920_v23  ;;  %6599 = vmatmul.msk.f32.gmra.mxu1 %vm380_vm0, %v8323_v38  ;;  %v8491_v23 = vld [vmem:[%s10378_s2] ss:$0 sm:$0xff] }
 0x215   : > { %6425 = vmatmul.msk.f32.gmra.mxu2 %vm380_vm0, %v6389_v6  ;;  %v1881_v6 = vadd.f32 %v7917_v63, %v1603_v13  ;;  %v1604_v63 = vadd.f32 %v7934_v36, %v7922_v15  ;;  %v6391_v15 = vld [vmem:[%s7226_s26 + $0x129] sm:$0xff] }
 0x216   : > { %6493 = vmatmul.msk.f32.gmra.mxu3 %vm380_vm0, %v8479_v53 }
 0x218   : > { %v2066_v11 = vpop.f32.mrf.mxu2 }
 0x219   : > { %v2619_v16 = vpop.f32.mrf.mxu0  ;;  %v2344_v14 = vpop.f32.mrf.mxu3  ;;  %v2160_v42 = vadd.f32 %v2066_v11, %v1881_v6  ;;  %v6525_v6 = vld [vmem:[%s7226_s26 + $0x113] sm:$0xff] }
 0x21a   : > { %v2715_v38 = vadd.f32 %v2619_v16, %v2437_v48  ;;  %v8500_v0 = vpop.f32.mrf.mxu1 }
 0x21b   : > { %10557 = vst [vmem:[#allocation53_spill] sm:$0xff] %v8500_v0  ;;  %v2438_v48 = vadd.f32 %v2344_v14, %v2160_v42  ;;  %v8525_v14 = vld [vmem:[%s7226_s26 + $0x12a] sm:$0xff] }
 0x21c   : > { %v2751_v44 = vmul.f32 %v8491_v23, %v2715_v38  ;;  %6560 = vmatmul.msk.f32.gmra.mxu0 %vm380_vm0, %v6524_v52  ;;  %6600 = vmatmul.msk.f32.gmra.mxu1 %vm380_vm0, %v8341_v8  ;;  %v1882_v38 = vadd.f32 %v7936_v20, %v1604_v63  ;;  %v1605_v20 = vadd.f32 %v7949_v18, %v7939_v58 }
 0x21d   : > { %6426 = vmatmul.msk.f32.gmra.mxu2 %vm380_vm0, %v6390_v12 }
 0x21e   : > { %v2787_v13 = vadd.f32 %v8498_v56, %v2751_v44  ;;  %6494 = vmatmul.msk.f32.gmra.mxu3 %vm380_vm0, %v8506_v37 }
 0x220   : > { %v2819_v11 = vmax.f32 %v2787_v13, 0.0  ;;  %v2069_v16 = vpop.f32.mrf.mxu2 }
 0x221   : > { %v2622_v52 = vpop.f32.mrf.mxu0  ;;  %v2347_v12 = vpop.f32.mrf.mxu3  ;;  %v2161_v36 = vadd.f32 %v2069_v16, %v1882_v38 }
 0x222   : > { %2851 = vst.msk [vmem:[#allocation2] sm:$0xff] %vm380_vm0, %v2819_v11  ;;  %v2716_v8 = vadd.f32 %v2622_v52, %v2438_v48  ;;  %v8519_v0 = vpop.f32.mrf.mxu1  ;;  %v6526_v52 = vld [vmem:[%s7226_s26 + $0x123] sm:$0xff]  ;;  %v2883_v38 = vsel %vm380_vm0, %v2819_v11, 0.0 }
 0x223   : > { %v2439_v63 = vadd.f32 %v2347_v12, %v2161_v36 }
 0x224   : > { %v2752_v44 = vmul.f32 %v8491_v23, %v2716_v8  ;;  %6561 = vmatmul.msk.f32.gmra.mxu0 %vm380_vm0, %v6525_v6  ;;  %6601 = vmatmul.msk.f32.gmra.mxu1 %vm380_vm0, %v8359_v4  ;;  %v1883_v6 = vadd.f32 %v7951_v7, %v1605_v20  ;;  %v1606_v7 = vadd.f32 %v7970_v34, %v7954_v31  ;;  %v6393_v34 = vld [vmem:[%s7226_s26 + $0x141] sm:$0xff] }
 0x225   : > { %6427 = vmatmul.msk.f32.gmra.mxu2 %vm380_vm0, %v6391_v15  ;;  %v6392_v15 = vld [vmem:[%s7226_s26 + $0x139] sm:$0xff] }
 0x226   : > { %v2788_v42 = vadd.f32 %v8498_v56, %v2752_v44  ;;  %6495 = vmatmul.msk.f32.gmra.mxu3 %vm380_vm0, %v8525_v14 }
 0x228   : > { %v2820_v13 = vmax.f32 %v2788_v42, 0.0  ;;  %v2072_v48 = vpop.f32.mrf.mxu2  ;;  %v8546_v42 = vld [vmem:[%s7226_s26 + $0x13a] sm:$0xff] }
 0x229   : > { %v2625_v16 = vpop.f32.mrf.mxu0  ;;  %v2350_v58 = vpop.f32.mrf.mxu3  ;;  %v2162_v36 = vadd.f32 %v2072_v48, %v1883_v6 }
 0x22a   : > { %2852 = vst.msk [vmem:[#allocation2 + $0x8] sm:$0xff] %vm380_vm0, %v2820_v13  ;;  %v2884_v4 = vsel %vm380_vm0, %v2820_v13, 0.0  ;;  %v2717_v18 = vadd.f32 %v2625_v16, %v2439_v63  ;;  %v8540_v8 = vpop.f32.mrf.mxu1  ;;  %v6527_v16 = vld [vmem:[%s7226_s26 + $0x12b] sm:$0xff] }
 0x22b   : > { %v2885_v12 = vadd.f32 %v2884_v4, %v2883_v38  ;;  %v2440_v20 = vadd.f32 %v2350_v58, %v2162_v36 }
 0x22c   : > { %v2753_v44 = vmul.f32 %v8491_v23, %v2717_v18  ;;  %6562 = vmatmul.msk.f32.gmra.mxu0 %vm380_vm0, %v6526_v52  ;;  %6602 = vmatmul.msk.f32.gmra.mxu1 %vm380_vm0, %v8377_v9  ;;  %v1884_v52 = vadd.f32 %v7972_v33, %v1606_v7  ;;  %v1607_v33 = vadd.f32 %v7991_v26, %v7975_v30  ;;  %v6394_v26 = vld [vmem:[%s7226_s26 + $0x151] sm:$0xff] }
 0x22d   : > { %6428 = vmatmul.msk.f32.gmra.mxu2 %vm380_vm0, %v6392_v15  ;;  %v8566_v15 = vld [vmem:[%s7226_s26 + $0x142] sm:$0xff] }
 0x22e   : > { %v2789_v11 = vadd.f32 %v8498_v56, %v2753_v44  ;;  %6496 = vmatmul.msk.f32.gmra.mxu3 %vm380_vm0, %v8546_v42 }
 0x230   : > { %v2821_v63 = vmax.f32 %v2789_v11, 0.0  ;;  %v2075_v13 = vpop.f32.mrf.mxu2 }
 0x231   : > { %v2628_v48 = vpop.f32.mrf.mxu0  ;;  %v2353_v6 = vpop.f32.mrf.mxu3  ;;  %v2163_v18 = vadd.f32 %v2075_v13, %v1884_v52 }
 0x232   : > { %2853 = vst.msk [vmem:[#allocation2 + $0x10] sm:$0xff] %vm380_vm0, %v2821_v63  ;;  %v2886_v9 = vsel %vm380_vm0, %v2821_v63, 0.0  ;;  %v2718_v38 = vadd.f32 %v2628_v48, %v2440_v20  ;;  %v8560_v31 = vpop.f32.mrf.mxu1  ;;  %v6528_v20 = vld [vmem:[%s7226_s26 + $0x13b] sm:$0xff]  ;;  %v1885_v63 = vadd.f32 %v7993_v41, %v1607_v33  ;;  %v1608_v41 = vadd.f32 %v8006_v35, %v7996_v27  ;;  %v6529_v33 = vld [vmem:[%s7226_s26 + $0x143] sm:$0xff] }
 0x233   : > { %v2887_v4 = vadd.f32 %v2886_v9, %v2885_v12  ;;  %v2441_v12 = vadd.f32 %v2353_v6, %v2163_v18  ;;  %v8586_v6 = vld [vmem:[%s7226_s26 + $0x152] sm:$0xff]  ;;  %v6648_v27 = vld [vmem:[%s10377_s1 + $0x160] sm:$0xff] }
 0x234   : > { %v2754_v58 = vmul.f32 %v8491_v23, %v2718_v38  ;;  %6563 = vmatmul.msk.f32.gmra.mxu0 %vm380_vm0, %v6527_v16  ;;  %6603 = vmatmul.msk.f32.gmra.mxu1 %vm380_vm0, %v8398_v17  ;;  %v1886_v35 = vadd.f32 %v8008_v46, %v1608_v41  ;;  %v1609_v46 = vadd.f32 %v8021_v40, %v8011_v47  ;;  %v6530_v41 = vld [vmem:[%s7226_s26 + $0x153] sm:$0xff]  ;;  %v6784_v47 = vld [vmem:[%s10377_s1 + $0x1a0] sm:$0xff] }
 0x235   : > { %6429 = vmatmul.msk.f32.gmra.mxu2 %vm380_vm0, %v6393_v34  ;;  %3593 = vmatpush.msrb.mxu3 %v6648_v27 }
 0x236   : > { %v2790_v36 = vadd.f32 %v8498_v56, %v2754_v58  ;;  %6497 = vmatmul.msk.f32.gmra.mxu3 %vm380_vm0, %v8566_v15  ;;  %v1887_v40 = vadd.f32 %v8023_v22, %v1609_v46  ;;  %4149 = vmatpush.msrb.mxu1 %v6784_v47  ;;  %v1610_v22 = vadd.f32 %v8036_v29, %v8026_v51  ;;  %v6397_v29 = vld [vmem:[%s7226_s26 + $0x171] sm:$0xff] }
 0x238   : > { %v2822_v44 = vmax.f32 %v2790_v36, 0.0  ;;  %v2078_v7 = vpop.f32.mrf.mxu2  ;;  %v6576_v36 = vld [vmem:[%s10377_s1 + $0x120] sm:$0xff] }
 0x239   : > { %v2631_v11 = vpop.f32.mrf.mxu0  ;;  %v2356_v13 = vpop.f32.mrf.mxu3  ;;  %v2164_v52 = vadd.f32 %v2078_v7, %v1885_v63  ;;  %3347 = vmatpush.msrb.mxu2 %v6576_v36 }
 0x23a   : > { %2854 = vst.msk [vmem:[#allocation2 + $0x18] sm:$0xff] %vm380_vm0, %v2822_v44  ;;  %v2888_v17 = vsel %vm380_vm0, %v2822_v44, 0.0  ;;  %v2719_v48 = vadd.f32 %v2631_v11, %v2441_v12  ;;  %v8580_v30 = vpop.f32.mrf.mxu1  ;;  %v6395_v11 = vld [vmem:[%s7226_s26 + $0x159] sm:$0xff] }
 0x23b   : > { %v2889_v16 = vadd.f32 %v2888_v17, %v2887_v4  ;;  %v2442_v34 = vadd.f32 %v2356_v13, %v2164_v52  ;;  %v8612_v13 = vld [vmem:[%s7226_s26 + $0x15a] sm:$0xff] }
 0x23c   : > { %v2755_v9 = vmul.f32 %v8491_v23, %v2719_v48  ;;  %6564 = vmatmul.msk.f32.gmra.mxu0 %vm380_vm0, %v6528_v20  ;;  %6604 = vmatmul.msk.f32.gmra.mxu1 %vm380_vm0, %v8419_v57 }
 0x23d   : > { %6430 = vmatmul.msk.f32.gmra.mxu2 %vm380_vm0, %v6394_v26 }
 0x23e   : > { %v2791_v38 = vadd.f32 %v8498_v56, %v2755_v9  ;;  %6498 = vmatmul.msk.f32.gmra.mxu3 %vm380_vm0, %v8586_v6 }
 0x240   : > { %v2823_v4 = vmax.f32 %v2791_v38, 0.0  ;;  %v2081_v18 = vpop.f32.mrf.mxu2  ;;  %v6716_v38 = vld [vmem:[%s10377_s1 + $0x180] sm:$0xff] }
 0x241   : > { %v2634_v58 = vpop.f32.mrf.mxu0  ;;  %v2359_v12 = vpop.f32.mrf.mxu3  ;;  %v2165_v63 = vadd.f32 %v2081_v18, %v1886_v35  ;;  %3871 = vmatpush.msrb.mxu0 %v6716_v38  ;;  %v8638_v35 = vld [vmem:[%s7226_s26 + $0x16a] sm:$0xff] }
 0x242   : > { %2855 = vst.msk [vmem:[#allocation2 + $0x20] sm:$0xff] %vm380_vm0, %v2823_v4  ;;  %v2890_v57 = vsel %vm380_vm0, %v2823_v4, 0.0  ;;  %v2720_v44 = vadd.f32 %v2634_v58, %v2442_v34  ;;  %v8606_v7 = vpop.f32.mrf.mxu1  ;;  %v6396_v58 = vld [vmem:[%s7226_s26 + $0x169] sm:$0xff] }
 0x243   : > { %v2891_v20 = vadd.f32 %v2890_v57, %v2889_v16  ;;  %v2443_v26 = vadd.f32 %v2359_v12, %v2165_v63  ;;  %v6531_v63 = vld [vmem:[%s7226_s26 + $0x15b] sm:$0xff] }
 0x244   : > { %v2756_v17 = vmul.f32 %v8491_v23, %v2720_v44  ;;  %6565 = vmatmul.msk.f32.gmra.mxu0 %vm380_vm0, %v6529_v33  ;;  %6605 = vmatmul.msk.f32.gmra.mxu1 %vm380_vm0, %v8437_v10 }
 0x245   : > { %6431 = vmatmul.msk.f32.gmra.mxu2 %vm380_vm0, %v6395_v11 }
 0x246   : > { %v2792_v48 = vadd.f32 %v8498_v56, %v2756_v17  ;;  %6499 = vmatmul.msk.f32.gmra.mxu3 %vm380_vm0, %v8612_v13  ;;  %v1888_v17 = vadd.f32 %v8038_v19, %v1610_v22  ;;  %v1611_v19 = vadd.f32 %v8051_v25, %v8041_v55  ;;  %v6398_v25 = vld [vmem:[%s7226_s26 + $0x181] sm:$0xff] }
 0x248   : > { %v2824_v16 = vmax.f32 %v2792_v48, 0.0  ;;  %v2084_v52 = vpop.f32.mrf.mxu2 }
 0x249   : > { %v2637_v9 = vpop.f32.mrf.mxu0  ;;  %v2362_v34 = vpop.f32.mrf.mxu3  ;;  %v2166_v36 = vadd.f32 %v2084_v52, %v1887_v40 }
 0x24a   : > { %2856 = vst.msk [vmem:[#allocation2 + $0x28] sm:$0xff] %vm380_vm0, %v2824_v16  ;;  %v2892_v10 = vsel %vm380_vm0, %v2824_v16, 0.0  ;;  %v2721_v4 = vadd.f32 %v2637_v9, %v2443_v26  ;;  %v8632_v18 = vpop.f32.mrf.mxu1  ;;  %v8658_v9 = vld [vmem:[%s7226_s26 + $0x172] sm:$0xff] }
 0x24b   : > { %v2893_v33 = vadd.f32 %v2892_v10, %v2891_v20  ;;  %v2444_v12 = vadd.f32 %v2362_v34, %v2166_v36  ;;  %v6532_v34 = vld [vmem:[%s7226_s26 + $0x16b] sm:$0xff] }
 0x24c   : > { %v2757_v27 = vmul.f32 %v8491_v23, %v2721_v4  ;;  %6566 = vmatmul.msk.f32.gmra.mxu0 %vm380_vm0, %v6530_v41  ;;  %6606 = vmatmul.msk.f32.gmra.mxu1 %vm380_vm0, %v8461_v45  ;;  %v1889_v4 = vadd.f32 %v8053_v54, %v1611_v19  ;;  %v1612_v54 = vadd.f32 %v8066_v43, %v8056_v62  ;;  %v6399_v62 = vld [vmem:[%s7226_s26 + $0x189] sm:$0xff] }
 0x24d   : > { %6432 = vmatmul.msk.f32.gmra.mxu2 %vm380_vm0, %v6396_v58 }
 0x24e   : > { %v2793_v57 = vadd.f32 %v8498_v56, %v2757_v27  ;;  %6500 = vmatmul.msk.f32.gmra.mxu3 %vm380_vm0, %v8638_v35 }
 0x250   : > { %v2825_v44 = vmax.f32 %v2793_v57, 0.0  ;;  %v2087_v11 = vpop.f32.mrf.mxu2  ;;  %v6466_v57 = vld [vmem:[%s7226_s26 + $0x182] sm:$0xff] }
 0x251   : > { %v2640_v20 = vpop.f32.mrf.mxu0  ;;  %v2365_v46 = vpop.f32.mrf.mxu3  ;;  %v2167_v16 = vadd.f32 %v2087_v11, %v1888_v17  ;;  %v6533_v17 = vld [vmem:[%s7226_s26 + $0x173] sm:$0xff] }
 0x252   : > { %2857 = vst.msk [vmem:[#allocation2 + $0x30] sm:$0xff] %vm380_vm0, %v2825_v44  ;;  %v2894_v45 = vsel %vm380_vm0, %v2825_v44, 0.0  ;;  %v2722_v48 = vadd.f32 %v2640_v20, %v2444_v12  ;;  %v8652_v51 = vpop.f32.mrf.mxu1 }
 0x253   : > { %v2895_v26 = vadd.f32 %v2894_v45, %v2893_v33  ;;  %v2445_v38 = vadd.f32 %v2365_v46, %v2167_v16  ;;  %v1890_v45 = vadd.f32 %v8068_v61, %v1612_v54  ;;  %v1613_v61 = vadd.f32 %v8081_v2, %v8071_v3  ;;  %v6400_v3 = vld [vmem:[%s7226_s26 + $0x199] sm:$0xff] }
 0x254   : > { %v2758_v52 = vmul.f32 %v8491_v23, %v2722_v48  ;;  %6567 = vmatmul.msk.f32.gmra.mxu0 %vm380_vm0, %v6531_v63  ;;  %6607 = vmatmul.msk.f32.gmra.mxu1 %vm380_vm0, %v8479_v53 }
 0x255   : > { %6433 = vmatmul.msk.f32.gmra.mxu2 %vm380_vm0, %v6397_v29 }
 0x256   : > { %v2794_v41 = vadd.f32 %v8498_v56, %v2758_v52  ;;  %6501 = vmatmul.msk.f32.gmra.mxu3 %vm380_vm0, %v8658_v9  ;;  %v6467_v52 = vld [vmem:[%s7226_s26 + $0x18a] sm:$0xff] }
 0x258   : > { %v2826_v47 = vmax.f32 %v2794_v41, 0.0  ;;  %v2090_v40 = vpop.f32.mrf.mxu2 }
 0x259   : > { %v2643_v10 = vpop.f32.mrf.mxu0  ;;  %v2368_v58 = vpop.f32.mrf.mxu3  ;;  %v2168_v27 = vadd.f32 %v2090_v40, %v1889_v4 }
 0x25a   : > { %2858 = vst.msk [vmem:[#allocation2 + $0x38] sm:$0xff] %vm380_vm0, %v2826_v47  ;;  %v2896_v53 = vsel %vm380_vm0, %v2826_v47, 0.0  ;;  %v2723_v33 = vadd.f32 %v2643_v10, %v2445_v38  ;;  %v8672_v55 = vpop.f32.mrf.mxu1  ;;  %v6534_v10 = vld [vmem:[%s7226_s26 + $0x183] sm:$0xff] }
 0x25b   : > { %v2897_v36 = vadd.f32 %v2896_v53, %v2895_v26  ;;  %v2446_v44 = vadd.f32 %v2368_v58, %v2168_v27 }
 0x25c   : > { %v2759_v22 = vmul.f32 %v8491_v23, %v2723_v33  ;;  %6568 = vmatmul.msk.f32.gmra.mxu0 %vm380_vm0, %v6532_v34  ;;  %6608 = vmatmul.msk.f32.gmra.mxu1 %vm380_vm0, %v8506_v37  ;;  %v1891_v34 = vadd.f32 %v8083_v1, %v1613_v61  ;;  %v1614_v1 = vadd.f32 %v8102_v32, %v8086_v39  ;;  %v6401_v39 = vld [vmem:[%s7226_s26 + $0x1a1] sm:$0xff] }
 0x25d   : > { %6434 = vmatmul.msk.f32.gmra.mxu2 %vm380_vm0, %v6398_v25 }
 0x25e   : > { %v2795_v12 = vadd.f32 %v8498_v56, %v2759_v22  ;;  %6502 = vmatmul.msk.f32.gmra.mxu3 %vm380_vm0, %v6466_v57 }
 0x260   : > { %v2827_v11 = vmax.f32 %v2795_v12, 0.0  ;;  %v2093_v20 = vpop.f32.mrf.mxu2 }
 0x261   : > { %v2646_v63 = vpop.f32.mrf.mxu0  ;;  %v2371_v37 = vpop.f32.mrf.mxu3  ;;  %v2169_v26 = vadd.f32 %v2093_v20, %v1890_v45 }
 0x262   : > { %2859 = vst.msk [vmem:[#allocation2 + $0x40] sm:$0xff] %vm380_vm0, %v2827_v11  ;;  %v2898_v46 = vsel %vm380_vm0, %v2827_v11, 0.0  ;;  %v2724_v48 = vadd.f32 %v2646_v63, %v2446_v44  ;;  %v8689_v29 = vpop.f32.mrf.mxu1  ;;  %v6535_v44 = vld [vmem:[%s7226_s26 + $0x18b] sm:$0xff]  ;;  %v1892_v11 = vadd.f32 %v8104_v24, %v1614_v1  ;;  %v1615_v24 = vadd.f32 %v8123_v28, %v8107_v50  ;;  %v10560_v1 = vld [vmem:[#allocation6_spill] sm:$0xff] }
 0x263   : > { %v2899_v43 = vadd.f32 %v2898_v46, %v2897_v36  ;;  %v2447_v41 = vadd.f32 %v2371_v37, %v2169_v26  ;;  %v6468_v36 = vld [vmem:[%s7226_s26 + $0x19a] sm:$0xff]  ;;  %v6469_v37 = vld [vmem:[%s7226_s26 + $0x1a2] sm:$0xff]  ;;  %v6402_v50 = vld [vmem:[%s7226_s26 + $0x1b1] sm:$0xff] }
 0x264   : > { %v2760_v16 = vmul.f32 %v8491_v23, %v2724_v48  ;;  %6569 = vmatmul.msk.f32.gmra.mxu0 %vm380_vm0, %v6533_v17  ;;  %6609 = vmatmul.msk.f32.gmra.mxu1 %vm380_vm0, %v8525_v14  ;;  %v1893_v61 = vadd.f32 %v8125_v5, %v1615_v24  ;;  %v10558_v5 = vld [vmem:[#allocation4_spill] sm:$0xff] }
 0x265   : > { %6435 = vmatmul.msk.f32.gmra.mxu2 %vm380_vm0, %v6399_v62 }
 0x266   : > { %v2796_v19 = vadd.f32 %v8498_v56, %v2760_v16  ;;  %6503 = vmatmul.msk.f32.gmra.mxu3 %vm380_vm0, %v6467_v52  ;;  %v6536_v52 = vld [vmem:[%s7226_s26 + $0x19b] sm:$0xff] }
 0x268   : > { %v2828_v38 = vmax.f32 %v2796_v19, 0.0  ;;  %v2096_v47 = vpop.f32.mrf.mxu2 }
 0x269   : > { %v2649_v40 = vpop.f32.mrf.mxu0  ;;  %v2374_v14 = vpop.f32.mrf.mxu3  ;;  %v2170_v33 = vadd.f32 %v2096_v47, %v1891_v34  ;;  %v10559_v34 = vld [vmem:[#allocation3_spill] sm:$0xff] }
 0x26a   : > { %2860 = vst.msk [vmem:[#allocation2 + $0x48] sm:$0xff] %vm380_vm0, %v2828_v38  ;;  %v2900_v4 = vsel %vm380_vm0, %v2828_v38, 0.0  ;;  %v2725_v53 = vadd.f32 %v2649_v40, %v2447_v41  ;;  %v8706_v58 = vpop.f32.mrf.mxu1 }
 0x26b   : > { %v2901_v2 = vadd.f32 %v2900_v4, %v2899_v43  ;;  %v2448_v22 = vadd.f32 %v2374_v14, %v2170_v33  ;;  %v1616_v4 = vadd.f32 %v10559_v34, %v10558_v5  ;;  %v10564_v5 = vld [vmem:[#allocation9_spill] sm:$0xff]  ;;  %v10565_v34 = vld [vmem:[#allocation10_spill] sm:$0xff] }
 0x26c   : > { %v2761_v25 = vmul.f32 %v8491_v23, %v2725_v53  ;;  %6570 = vmatmul.msk.f32.gmra.mxu0 %vm380_vm0, %v6534_v10  ;;  %6610 = vmatmul.msk.f32.gmra.mxu1 %vm380_vm0, %v8546_v42  ;;  %v6470_v10 = vld [vmem:[%s7226_s26 + $0x1b2] sm:$0xff] }
 0x26d   : > { %6436 = vmatmul.msk.f32.gmra.mxu2 %vm380_vm0, %v6400_v3 }
 0x26e   : > { %v2797_v27 = vadd.f32 %v8498_v56, %v2761_v25  ;;  %6504 = vmatmul.msk.f32.gmra.mxu3 %vm380_vm0, %v6468_v36  ;;  %v6537_v25 = vld [vmem:[%s7226_s26 + $0x1a3] sm:$0xff]  ;;  %v6855_v36 = vld [vmem:[%s10377_s1 + $0x1d8] sm:$0xff] }
 0x26f   : > { %4424 = vmatpush.msra.mxu2 %v6855_v36  ;;  %v10566_v36 = vld [vmem:[#allocation36_spill] sm:$0xff] }
 0x270   : > { %v2829_v57 = vmax.f32 %v2797_v27, 0.0  ;;  %v2099_v54 = vpop.f32.mrf.mxu2  ;;  %v1894_v27 = vadd.f32 %v10560_v1, %v1616_v4  ;;  %v1618_v4 = vadd.f32 %v10565_v34, %v10564_v5 }
 0x271   : > { %v2652_v12 = vpop.f32.mrf.mxu0  ;;  %v2377_v42 = vpop.f32.mrf.mxu3  ;;  %v2171_v45 = vadd.f32 %v2099_v54, %v1892_v11 }
 0x272   : > { %2861 = vst.msk [vmem:[#allocation2 + $0x50] sm:$0xff] %vm380_vm0, %v2829_v57  ;;  %v2902_v20 = vsel %vm380_vm0, %v2829_v57, 0.0  ;;  %v2726_v63 = vadd.f32 %v2652_v12, %v2448_v22  ;;  %v8723_v17 = vpop.f32.mrf.mxu1 }
 0x273   : > { %v2903_v32 = vadd.f32 %v2902_v20, %v2901_v2  ;;  %v2449_v62 = vadd.f32 %v2377_v42, %v2171_v45 }
 0x274   : > { %v2762_v46 = vmul.f32 %v8491_v23, %v2726_v63  ;;  %6571 = vmatmul.msk.f32.gmra.mxu0 %vm380_vm0, %v6535_v44  ;;  %6611 = vmatmul.msk.f32.gmra.mxu1 %vm380_vm0, %v8566_v15  ;;  %v6403_v44 = vld [vmem:[%s7226_s26 + $0x1b9] sm:$0xff] }
 0x275   : > { %6437 = vmatmul.msk.f32.gmra.mxu2 %vm380_vm0, %v6401_v39  ;;  %v6471_v63 = vld [vmem:[%s7226_s26 + $0x1ba] sm:$0xff]  ;;  %v10561_v39 = vld [vmem:[#allocation5_spill] sm:$0xff] }
 0x276   : > { %v2798_v48 = vadd.f32 %v8498_v56, %v2762_v46  ;;  %6505 = vmatmul.msk.f32.gmra.mxu3 %vm380_vm0, %v6469_v37 }
 0x278   : > { %v2830_v43 = vmax.f32 %v2798_v48, 0.0  ;;  %v2102_v26 = vpop.f32.mrf.mxu2 }
 0x279   : > { %v2655_v16 = vpop.f32.mrf.mxu0  ;;  %v2380_v15 = vpop.f32.mrf.mxu3  ;;  %v2172_v47 = vadd.f32 %v2102_v26, %v1893_v61  ;;  %v6991_v26 = vld [vmem:[%s10377_s1 + $0x218] sm:$0xff] }
 0x27a   : > { %2862 = vst.msk [vmem:[#allocation2 + $0x58] sm:$0xff] %vm380_vm0, %v2830_v43  ;;  %v2904_v19 = vsel %vm380_vm0, %v2830_v43, 0.0  ;;  %v2727_v41 = vadd.f32 %v2655_v16, %v2449_v62  ;;  %v8740_v38 = vpop.f32.mrf.mxu1  ;;  %v6538_v43 = vld [vmem:[%s7226_s26 + $0x1b3] sm:$0xff]  ;;  %v10563_v16 = vld [vmem:[#allocation7_spill] sm:$0xff]  ;;  %4981 = vmatpush.msra.mxu0 %v6991_v26 }
 0x27b   : > { %v2905_v28 = vadd.f32 %v2904_v19, %v2903_v32  ;;  %v2450_v53 = vadd.f32 %v2380_v15, %v2172_v47  ;;  %v10562_v32 = vld [vmem:[#allocation8_spill] sm:$0xff] }
 0x27c   : > { %v2763_v40 = vmul.f32 %v8491_v23, %v2727_v41  ;;  %6572 = vmatmul.msk.f32.gmra.mxu0 %vm380_vm0, %v6536_v52  ;;  %6612 = vmatmul.msk.f32.gmra.mxu1 %vm380_vm0, %v8586_v6  ;;  %v6923_v6 = vld [vmem:[%s10377_s1 + $0x1f8] sm:$0xff]  ;;  %v1617_v45 = vadd.f32 %v10562_v32, %v10561_v39 }
 0x27d   : > { %6438 = vmatmul.msk.f32.gmra.mxu2 %vm380_vm0, %v6402_v50  ;;  %4703 = vmatpush.msra.mxu3 %v6923_v6  ;;  %v2953_v50 = vld [vmem:[%s7226_s26] sm:$0xff]  ;;  %v1896_v6 = vadd.f32 %v10566_v36, %v1618_v4 }
 0x27e   : > { %v2799_v14 = vadd.f32 %v8498_v56, %v2763_v40  ;;  %6506 = vmatmul.msk.f32.gmra.mxu3 %vm380_vm0, %v6470_v10  ;;  %v1895_v52 = vadd.f32 %v10563_v16, %v1617_v45  ;;  %v3445_v10 = vld [vmem:[%s7226_s26 + $0x4] sm:$0xff] }
 0x280   : > { %v2831_v3 = vmax.f32 %v2799_v14, 0.0  ;;  %v2105_v2 = vpop.f32.mrf.mxu2 }
 0x281   : > { %v2658_v33 = vpop.f32.mrf.mxu0  ;;  %v2383_v57 = vpop.f32.mrf.mxu3  ;;  %v2173_v20 = vadd.f32 %v2105_v2, %v1894_v27 }
 0x282   : > { %2863 = vst.msk [vmem:[#allocation2 + $0x60] sm:$0xff] %vm380_vm0, %v2831_v3  ;;  %v2906_v22 = vsel %vm380_vm0, %v2831_v3, 0.0  ;;  %v2728_v54 = vadd.f32 %v2658_v33, %v2450_v53  ;;  %v8763_v12 = vpop.f32.mrf.mxu1 }
 0x283   : > { %v2907_v11 = vadd.f32 %v2906_v22, %v2905_v28  ;;  %v2451_v37 = vadd.f32 %v2383_v57, %v2173_v20  ;;  %v2954_v57 = vld [vmem:[%s7226_s26 + $0x8] sm:$0xff] }
 0x284   : > { %v2764_v42 = vmul.f32 %v8491_v23, %v2728_v54  ;;  %6573 = vmatmul.msk.f32.gmra.mxu0 %vm380_vm0, %v6537_v25  ;;  %6613 = vmatmul.msk.f32.gmra.mxu1 %vm380_vm0, %v8612_v13  ;;  %v7059_v13 = vld [vmem:[%s10377_s1 + $0x238] sm:$0xff]  ;;  %v3446_v20 = vld [vmem:[%s7226_s26 + $0xc] sm:$0xff] }
 0x285   : > { %6439 = vmatmul.msk.f32.gmra.mxu2 %vm380_vm0, %v6403_v44  ;;  %5259 = vmatpush.msra.mxu1 %v7059_v13  ;;  %v6539_v25 = vld [vmem:[%s7226_s26 + $0x1bb] sm:$0xff] }
 0x286   : > { %v2800_v46 = vadd.f32 %v8498_v56, %v2764_v42  ;;  %6507 = vmatmul.msk.f32.gmra.mxu3 %vm380_vm0, %v6471_v63  ;;  %v10567_v42 = vld [vmem:[#allocation37_spill] sm:$0xff]  ;;  %v10568_v63 = vld [vmem:[#allocation11_spill] sm:$0xff] }
 0x287   : > { %v1619_v39 = vadd.f32 %v10568_v63, %v10567_v42  ;;  %v10574_v42 = vld [vmem:[#allocation15_spill] sm:$0xff] }
 0x288   : > { %v2832_v24 = vmax.f32 %v2800_v46, 0.0  ;;  %v2108_v48 = vpop.f32.mrf.mxu2 }
 0x289   : > { %v2661_v62 = vpop.f32.mrf.mxu0  ;;  %v2386_v19 = vpop.f32.mrf.mxu3  ;;  %v2174_v47 = vadd.f32 %v2108_v48, %v1895_v52  ;;  %v6684_v48 = vld [vmem:[%s7226_s26 + $0x30] sm:$0xff]  ;;  %v2955_v52 = vld [vmem:[%s7226_s26 + $0x18] sm:$0xff] }
 0x28a   : > { %2864 = vst.msk [vmem:[#allocation2 + $0x68] sm:$0xff] %vm380_vm0, %v2832_v24  ;;  %v2908_v61 = vsel %vm380_vm0, %v2832_v24, 0.0  ;;  %v2729_v15 = vadd.f32 %v2661_v62, %v2451_v37  ;;  %v8786_v41 = vpop.f32.mrf.mxu1  ;;  %v10569_v62 = vld [vmem:[#allocation38_spill] sm:$0xff] }
 0x28b   : > { %v2909_v28 = vadd.f32 %v2908_v61, %v2907_v11  ;;  %v2452_v53 = vadd.f32 %v2386_v19, %v2174_v47  ;;  %v6752_v61 = vld [vmem:[%s7226_s26 + $0x32] sm:$0xff]  ;;  %v10570_v47 = vld [vmem:[#allocation39_spill] sm:$0xff] }
 0x28c   : > { %v2765_v40 = vmul.f32 %v8491_v23, %v2729_v15  ;;  %6574 = vmatmul.msk.f32.gmra.mxu0 %vm380_vm0, %v6538_v43  ;;  %6614 = vmatmul.msk.f32.gmra.mxu1 %vm380_vm0, %v8638_v35  ;;  %v1897_v43 = vadd.f32 %v10569_v62, %v1619_v39  ;;  %v10575_v62 = vld [vmem:[#allocation14_spill] sm:$0xff] }
 0x28d   : > { %6616 = vmatmul.msk.f32.vlgmr.msrb.gmra.mxu2 %vm380_vm0, %v2953_v50 }
 0x28e   : > { %v2801_v14 = vadd.f32 %v8498_v56, %v2765_v40  ;;  %6652 = vmatmul.msk.f32.vlgmr.msrb.gmra.mxu3 %vm380_vm0, %v3445_v10  ;;  %v10571_v40 = vld [vmem:[#allocation13_spill] sm:$0xff] }
 0x28f   : > { %v1620_v10 = vadd.f32 %v10571_v40, %v10570_v47  ;;  %v10576_v47 = vld [vmem:[#allocation41_spill] sm:$0xff] }
 0x290   : > { %v2833_v3 = vmax.f32 %v2801_v14, 0.0  ;;  %v2111_v2 = vpop.f32.mrf.mxu2  ;;  %v10577_v40 = vld [vmem:[#allocation17_spill] sm:$0xff] }
 0x291   : > { %v2664_v33 = vpop.f32.mrf.mxu0  ;;  %v2389_v35 = vpop.f32.mrf.mxu3  ;;  %v2175_v44 = vadd.f32 %v2111_v2, %v1896_v6  ;;  %v10572_v2 = vld [vmem:[#allocation12_spill] sm:$0xff] }
 0x292   : > { %2865 = vst.msk [vmem:[#allocation2 + $0x70] sm:$0xff] %vm380_vm0, %v2833_v3  ;;  %v2910_v1 = vsel %vm380_vm0, %v2833_v3, 0.0  ;;  %v2730_v27 = vadd.f32 %v2664_v33, %v2452_v53  ;;  %v8803_v22 = vpop.f32.mrf.mxu1  ;;  %v6685_v3 = vld [vmem:[%s7226_s26 + $0x38] sm:$0xff]  ;;  %v1898_v33 = vadd.f32 %v10572_v2, %v1620_v10  ;;  %v1622_v10 = vadd.f32 %v10577_v40, %v10576_v47  ;;  %v6687_v2 = vld [vmem:[%s7226_s26 + $0x50] sm:$0xff]  ;;  %v10582_v40 = vld [vmem:[#allocation43_spill] sm:$0xff] }
 0x293   : > { %v2911_v54 = vadd.f32 %v2910_v1, %v2909_v28  ;;  %v2453_v45 = vadd.f32 %v2389_v35, %v2175_v44  ;;  %v3447_v28 = vld [vmem:[%s7226_s26 + $0x1c] sm:$0xff]  ;;  %v3451_v47 = vld [vmem:[%s7226_s26 + $0x4c] sm:$0xff] }
 0x294   : > { %v2766_v11 = vmul.f32 %v8491_v23, %v2730_v27  ;;  %6575 = vmatmul.msk.f32.gmra.mxu0 %vm380_vm0, %v6539_v25  ;;  %6615 = vmatmul.msk.f32.gmra.mxu1 %vm380_vm0, %v8658_v9  ;;  %v2956_v35 = vld [vmem:[%s7226_s26 + $0x20] sm:$0xff] }
 0x295   : > { %6617 = vmatmul.msk.f32.gmra.mxu2 %vm380_vm0, %v2954_v57  ;;  %v6753_v27 = vld [vmem:[%s7226_s26 + $0x3a] sm:$0xff] }
 0x296   : > { %v2802_v32 = vadd.f32 %v8498_v56, %v2766_v11  ;;  %6653 = vmatmul.msk.f32.gmra.mxu3 %vm380_vm0, %v3446_v20  ;;  %v3448_v11 = vld [vmem:[%s7226_s26 + $0x24] sm:$0xff] }
 0x297   : > { %v10573_v20 = vld [vmem:[#allocation40_spill] sm:$0xff] }
 0x298   : > { %v2834_v46 = vmax.f32 %v2802_v32, 0.0  ;;  %v2114_v37 = vpop.f32.mrf.mxu2  ;;  %v1621_v63 = vadd.f32 %v10574_v42, %v10573_v20  ;;  %v10579_v20 = vld [vmem:[#allocation42_spill] sm:$0xff]  ;;  %v10580_v42 = vld [vmem:[#allocation19_spill] sm:$0xff] }
 0x299   : > { %v2667_v24 = vpop.f32.mrf.mxu0  ;;  %v2392_v26 = vpop.f32.mrf.mxu3  ;;  %v2176_v15 = vadd.f32 %v2114_v37, %v1897_v43 }
 0x29a   : > { %2866 = vst.msk [vmem:[#allocation2 + $0x78] sm:$0xff] %vm380_vm0, %v2834_v46  ;;  %v2912_v9 = vsel %vm380_vm0, %v2834_v46, 0.0  ;;  %v2731_v13 = vadd.f32 %v2667_v24, %v2453_v45  ;;  %v8820_v16 = vpop.f32.mrf.mxu1  ;;  %v6686_v24 = vld [vmem:[%s7226_s26 + $0x48] sm:$0xff]  ;;  %v1899_v43 = vadd.f32 %v10575_v62, %v1621_v63  ;;  %v1623_v63 = vadd.f32 %v10580_v42, %v10579_v20  ;;  %v8883_v62 = vld [vmem:[%s7226_s26 + $0x60] sm:$0xff] }
 0x29b   : > { %v2913_v19 = vadd.f32 %v2912_v9, %v2911_v54  ;;  %v2454_v34 = vadd.f32 %v2392_v26, %v2176_v15 }
 0x29c   : > { %v2767_v50 = vmul.f32 %v8491_v23, %v2731_v13  ;;  %6720 = vmatmul.msk.f32.vlgmr.msrb.gmra.mxu0 %vm380_vm0, %v6684_v48  ;;  %6788 = vmatmul.msk.f32.vlgmr.msrb.gmra.mxu1 %vm380_vm0, %v6752_v61  ;;  %v6754_v61 = vld [vmem:[%s7226_s26 + $0x4a] sm:$0xff] }
 0x29d   : > { %6618 = vmatmul.msk.f32.gmra.mxu2 %vm380_vm0, %v2955_v52 }
 0x29e   : > { %v2803_v5 = vadd.f32 %v8498_v56, %v2767_v50  ;;  %6654 = vmatmul.msk.f32.gmra.mxu3 %vm380_vm0, %v3447_v28  ;;  %v3449_v28 = vld [vmem:[%s7226_s26 + $0x34] sm:$0xff] }
 0x2a0   : > { %v2835_v4 = vmax.f32 %v2803_v5, 0.0  ;;  %v2117_v14 = vpop.f32.mrf.mxu2 }
 0x2a1   : > { %v2670_v53 = vpop.f32.mrf.mxu0  ;;  %v2395_v36 = vpop.f32.mrf.mxu3  ;;  %v2177_v54 = vadd.f32 %v2117_v14, %v1898_v33  ;;  %v10578_v33 = vld [vmem:[#allocation16_spill] sm:$0xff] }
 0x2a2   : > { %2867 = vst.msk [vmem:[#allocation2 + $0x80] sm:$0xff] %vm380_vm0, %v2835_v4  ;;  %v2914_v25 = vsel %vm380_vm0, %v2835_v4, 0.0  ;;  %v2732_v6 = vadd.f32 %v2670_v53, %v2454_v34  ;;  %v8837_v1 = vpop.f32.mrf.mxu1 }
 0x2a3   : > { %v2915_v57 = vadd.f32 %v2914_v25, %v2913_v19  ;;  %v2455_v32 = vadd.f32 %v2395_v36, %v2177_v54  ;;  %v1900_v25 = vadd.f32 %v10578_v33, %v1622_v10  ;;  %v10583_v10 = vld [vmem:[#allocation21_spill] sm:$0xff] }
 0x2a4   : > { %v2768_v44 = vmul.f32 %v8491_v23, %v2732_v6  ;;  %6721 = vmatmul.msk.f32.gmra.mxu0 %vm380_vm0, %v6685_v3  ;;  %6789 = vmatmul.msk.f32.gmra.mxu1 %vm380_vm0, %v6753_v27  ;;  %v6755_v27 = vld [vmem:[%s7226_s26 + $0x52] sm:$0xff] }
 0x2a5   : > { %6619 = vmatmul.msk.f32.gmra.mxu2 %vm380_vm0, %v2956_v35 }
 0x2a6   : > { %v2804_v39 = vadd.f32 %v8498_v56, %v2768_v44  ;;  %6655 = vmatmul.msk.f32.gmra.mxu3 %vm380_vm0, %v3448_v11  ;;  %v3450_v11 = vld [vmem:[%s7226_s26 + $0x3c] sm:$0xff] }
 0x2a8   : > { %v2836_v45 = vmax.f32 %v2804_v39, 0.0  ;;  %v2120_v46 = vpop.f32.mrf.mxu2 }
 0x2a9   : > { %v2673_v37 = vpop.f32.mrf.mxu0  ;;  %v2398_v26 = vpop.f32.mrf.mxu3  ;;  %v2178_v15 = vadd.f32 %v2120_v46, %v1899_v43  ;;  %v10581_v43 = vld [vmem:[#allocation18_spill] sm:$0xff] }
 0x2aa   : > { %2868 = vst.msk [vmem:[#allocation2 + $0x88] sm:$0xff] %vm380_vm0, %v2836_v45  ;;  %v2916_v9 = vsel %vm380_vm0, %v2836_v45, 0.0  ;;  %v2733_v13 = vadd.f32 %v2673_v37, %v2455_v32  ;;  %v8854_v52 = vpop.f32.mrf.mxu1 }
 0x2ab   : > { %v2917_v19 = vadd.f32 %v2916_v9, %v2915_v57  ;;  %v2456_v34 = vadd.f32 %v2398_v26, %v2178_v15  ;;  %v1901_v9 = vadd.f32 %v10581_v43, %v1623_v63 }
 0x2ac   : > { %v2769_v50 = vmul.f32 %v8491_v23, %v2733_v13  ;;  %6722 = vmatmul.msk.f32.gmra.mxu0 %vm380_vm0, %v6686_v24  ;;  %6790 = vmatmul.msk.f32.gmra.mxu1 %vm380_vm0, %v6754_v61 }
 0x2ad   : > { %6620 = vmatmul.msk.f32.gmra.mxu2 %vm380_vm0, %v6684_v48 }
 0x2ae   : > { %v2805_v5 = vadd.f32 %v8498_v56, %v2769_v50  ;;  %6656 = vmatmul.msk.f32.gmra.mxu3 %vm380_vm0, %v3449_v28 }
 0x2b0   : > { %v2837_v4 = vmax.f32 %v2805_v5, 0.0  ;;  %v2123_v14 = vpop.f32.mrf.mxu2  ;;  %v1624_v5 = vadd.f32 %v10583_v10, %v10582_v40  ;;  %v6758_v40 = vld [vmem:[%s7226_s26 + $0x7a] sm:$0xff] }
 0x2b1   : > { %v2676_v53 = vpop.f32.mrf.mxu0  ;;  %v2401_v36 = vpop.f32.mrf.mxu3  ;;  %v2179_v54 = vadd.f32 %v2123_v14, %v1900_v25  ;;  %v8902_v25 = vld [vmem:[%s7226_s26 + $0x68] sm:$0xff] }
 0x2b2   : > { %2869 = vst.msk [vmem:[#allocation2 + $0x90] sm:$0xff] %vm380_vm0, %v2837_v4  ;;  %v2918_v48 = vsel %vm380_vm0, %v2837_v4, 0.0  ;;  %v2734_v6 = vadd.f32 %v2676_v53, %v2456_v34  ;;  %v8870_v35 = vpop.f32.mrf.mxu1 }
 0x2b3   : > { %v2919_v57 = vadd.f32 %v2918_v48, %v2917_v19  ;;  %v2457_v32 = vadd.f32 %v2401_v36, %v2179_v54  ;;  %v6756_v19 = vld [vmem:[%s7226_s26 + $0x62] sm:$0xff]  ;;  %v6922_v48 = vld [vmem:[%s10377_s1 + $0x1f0] sm:$0xff] }
 0x2b4   : > { %v2770_v44 = vmul.f32 %v8491_v23, %v2734_v6  ;;  %6723 = vmatmul.msk.f32.gmra.mxu0 %vm380_vm0, %v6687_v2  ;;  %6791 = vmatmul.msk.f32.gmra.mxu1 %vm380_vm0, %v6755_v27  ;;  %v10584_v36 = vld [vmem:[#allocation20_spill] sm:$0xff] }
 0x2b5   : > { %6621 = vmatmul.msk.f32.gmra.mxu2 %vm380_vm0, %v6685_v3  ;;  %v1902_v6 = vadd.f32 %v10584_v36, %v1624_v5  ;;  %4704 = vmatpush.msra.mxu3 %v6922_v48  ;;  %v8960_v48 = vld [vmem:[%s10379_s3] ss:$0 sm:$0xff] }
 0x2b6   : > { %v2806_v39 = vadd.f32 %v8498_v56, %v2770_v44  ;;  %6657 = vmatmul.msk.f32.gmra.mxu3 %vm380_vm0, %v3450_v11  ;;  %v6757_v11 = vld [vmem:[%s7226_s26 + $0x6a] sm:$0xff] }
 0x2b8   : > { %v2838_v45 = vmax.f32 %v2806_v39, 0.0  ;;  %v2126_v46 = vpop.f32.mrf.mxu2  ;;  %v3452_v39 = vld [vmem:[%s7226_s26 + $0x54] sm:$0xff] }
 0x2b9   : > { %v2679_v37 = vpop.f32.mrf.mxu0  ;;  %v2404_v26 = vpop.f32.mrf.mxu3  ;;  %v2180_v50 = vadd.f32 %v2126_v46, %v1901_v9 }
 0x2ba   : > { %2870 = vst.msk [vmem:[#allocation2 + $0x98] sm:$0xff] %vm380_vm0, %v2838_v45  ;;  %v2920_v3 = vsel %vm380_vm0, %v2838_v45, 0.0  ;;  %v2735_v13 = vadd.f32 %v2679_v37, %v2457_v32  ;;  %v8888_v61 = vpop.f32.mrf.mxu1  ;;  %v10585_v32 = vld [vmem:[#allocation44_spill] sm:$0xff]  ;;  %v10586_v45 = vld [vmem:[#allocation23_spill] sm:$0xff] }
 0x2bb   : > { %v2921_v15 = vadd.f32 %v2920_v3, %v2919_v57  ;;  %v2458_v4 = vadd.f32 %v2404_v26, %v2180_v50  ;;  %v1625_v46 = vadd.f32 %v10586_v45, %v10585_v32  ;;  %v8927_v26 = vld [vmem:[%s7226_s26 + $0x78] sm:$0xff]  ;;  %v6759_v45 = vld [vmem:[%s7226_s26 + $0x82] sm:$0xff] }
 0x2bc   : > { %v2771_v28 = vmul.f32 %v8491_v23, %v2735_v13  ;;  %6724 = vmatmul.msk.f32.gmra.mxu0 %vm380_vm0, %v8883_v62  ;;  %6792 = vmatmul.msk.f32.gmra.mxu1 %vm380_vm0, %v6756_v19  ;;  %v7058_v13 = vld [vmem:[%s10377_s1 + $0x230] sm:$0xff]  ;;  %v10587_v19 = vld [vmem:[#allocation22_spill] sm:$0xff] }
 0x2bd   : > { %6622 = vmatmul.msk.f32.gmra.mxu2 %vm380_vm0, %v6686_v24  ;;  %v6854_v24 = vld [vmem:[%s10377_s1 + $0x1d0] sm:$0xff]  ;;  %5260 = vmatpush.msra.mxu1 %v7058_v13 }
 0x2be   : > { %v2807_v34 = vadd.f32 %v8498_v56, %v2771_v28  ;;  %6658 = vmatmul.msk.f32.gmra.mxu3 %vm380_vm0, %v3451_v47  ;;  %4425 = vmatpush.msra.mxu2 %v6854_v24 }
 0x2c0   : > { %v2839_v14 = vmax.f32 %v2807_v34, 0.0  ;;  %v2129_v53 = vpop.f32.mrf.mxu2  ;;  %v8944_v34 = vld [vmem:[%s10378_s2] ss:$0 sm:$0xff] }
 0x2c1   : > { %v2682_v33 = vpop.f32.mrf.mxu0  ;;  %v2407_v57 = vpop.f32.mrf.mxu3  ;;  %v2181_v42 = vadd.f32 %v2129_v53, %v1902_v6  ;;  %v10588_v53 = vld [vmem:[#allocation45_spill] sm:$0xff] }
 0x2c2   : > { %2871 = vst.msk [vmem:[#allocation2 + $0xa0] sm:$0xff] %vm380_vm0, %v2839_v14  ;;  %v2922_v27 = vsel %vm380_vm0, %v2839_v14, 0.0  ;;  %v2736_v54 = vadd.f32 %v2682_v33, %v2458_v4  ;;  %v8913_v44 = vpop.f32.mrf.mxu1  ;;  %v8950_v14 = vld [vmem:[%s7226_s26 + $0x64] sm:$0xff]  ;;  %v10589_v33 = vld [vmem:[#allocation25_spill] sm:$0xff] }
 0x2c3   : > { %v2923_v20 = vadd.f32 %v2922_v27, %v2921_v15  ;;  %v2459_v43 = vadd.f32 %v2407_v57, %v2181_v42  ;;  %v1903_v15 = vadd.f32 %v10587_v19, %v1625_v46  ;;  %v1626_v24 = vadd.f32 %v10589_v33, %v10588_v53 }
 0x2c4   : > { %v2772_v63 = vmul.f32 %v8491_v23, %v2736_v54  ;;  %6725 = vmatmul.msk.f32.gmra.mxu0 %vm380_vm0, %v8902_v25  ;;  %6793 = vmatmul.msk.f32.gmra.mxu1 %vm380_vm0, %v6757_v11  ;;  %v8966_v54 = vld [vmem:[%s7226_s26 + $0x80] sm:$0xff]  ;;  %v10590_v11 = vld [vmem:[#allocation24_spill] sm:$0xff] }
 0x2c5   : > { %6623 = vmatmul.msk.f32.gmra.mxu2 %vm380_vm0, %v6687_v2  ;;  %v6990_v2 = vld [vmem:[%s10377_s1 + $0x210] sm:$0xff] }
 0x2c6   : > { %v2808_v37 = vadd.f32 %v8498_v56, %v2772_v63  ;;  %6659 = vmatmul.msk.f32.gmra.mxu3 %vm380_vm0, %v3452_v39  ;;  %4982 = vmatpush.msra.mxu0 %v6990_v2 }
 0x2c8   : > { %v2840_v9 = vmax.f32 %v2808_v37, 0.0  ;;  %v2132_v3 = vpop.f32.mrf.mxu2 }
 0x2c9   : > { %v2685_v23 = vpop.f32.mrf.mxu0  ;;  %v2410_v50 = vpop.f32.mrf.mxu3  ;;  %v2182_v5 = vadd.f32 %v2132_v3, %v1903_v15  ;;  %v10591_v3 = vld [vmem:[#allocation46_spill] sm:$0xff] }
 0x2ca   : > { %2872 = vst.msk [vmem:[#allocation2 + $0xa8] sm:$0xff] %vm380_vm0, %v2840_v9  ;;  %v2924_v56 = vsel %vm380_vm0, %v2840_v9, 0.0  ;;  %v2737_v28 = vadd.f32 %v2685_v23, %v2459_v43  ;;  %v8938_v47 = vpop.f32.mrf.mxu1  ;;  %v8978_v9 = vld [vmem:[%s7226_s26 + $0x6c] sm:$0xff]  ;;  %v10592_v23 = vld [vmem:[#allocation27_spill] sm:$0xff] }
 0x2cb   : > { %v2925_v10 = vadd.f32 %v2924_v56, %v2923_v20  ;;  %v2460_v6 = vadd.f32 %v2410_v50, %v2182_v5  ;;  %v1904_v20 = vadd.f32 %v10590_v11, %v1626_v24  ;;  %v1627_v2 = vadd.f32 %v10592_v23, %v10591_v3  ;;  %v8997_v24 = vld [vmem:[%s7226_s26 + $0x92] sm:$0xff] }
 0x2cc   : > { %v2773_v4 = vmul.f32 %v8944_v34, %v2737_v28  ;;  %6726 = vmatmul.msk.f32.gmra.mxu0 %vm380_vm0, %v8927_v26  ;;  %6794 = vmatmul.msk.f32.gmra.mxu1 %vm380_vm0, %v6758_v40  ;;  %v8989_v28 = vld [vmem:[%s7226_s26 + $0x90] sm:$0xff]  ;;  %v10593_v40 = vld [vmem:[#allocation26_spill] sm:$0xff] }
 0x2cd   : > { %6624 = vmatmul.msk.f32.gmra.mxu2 %vm380_vm0, %v8883_v62  ;;  %v10595_v11 = vld [vmem:[#allocation29_spill] sm:$0xff] }
 0x2ce   : > { %v2809_v36 = vadd.f32 %v8960_v48, %v2773_v4  ;;  %6660 = vmatmul.msk.f32.gmra.mxu3 %vm380_vm0, %v8950_v14 }
 0x2d0   : > { %v2841_v27 = vmax.f32 %v2809_v36, 0.0  ;;  %v2135_v62 = vpop.f32.mrf.mxu2 }
 0x2d1   : > { %v2688_v57 = vpop.f32.mrf.mxu0  ;;  %v2413_v63 = vpop.f32.mrf.mxu3  ;;  %v2183_v37 = vadd.f32 %v2135_v62, %v1904_v20  ;;  %v9003_v62 = vld [vmem:[%s7226_s26 + $0x7c] sm:$0xff] }
 0x2d2   : > { %2873 = vst.msk [vmem:[#allocation2 + $0xb0] sm:$0xff] %vm380_vm0, %v2841_v27  ;;  %v2926_v42 = vsel %vm380_vm0, %v2841_v27, 0.0  ;;  %v2738_v39 = vadd.f32 %v2688_v57, %v2460_v6  ;;  %v8971_v32 = vpop.f32.mrf.mxu1  ;;  %v10594_v57 = vld [vmem:[#allocation47_spill] sm:$0xff] }
 0x2d3   : > { %v2927_v46 = vadd.f32 %v2926_v42, %v2925_v10  ;;  %v2461_v19 = vadd.f32 %v2413_v63, %v2183_v37  ;;  %v1905_v10 = vadd.f32 %v10593_v40, %v1627_v2  ;;  %v1628_v20 = vadd.f32 %v10595_v11, %v10594_v57  ;;  %v9015_v37 = vld [vmem:[%s7226_s26 + $0x98] sm:$0xff] }
 0x2d4   : > { %v2774_v43 = vmul.f32 %v8944_v34, %v2738_v39  ;;  %6727 = vmatmul.msk.f32.gmra.mxu0 %vm380_vm0, %v8966_v54  ;;  %6795 = vmatmul.msk.f32.gmra.mxu1 %vm380_vm0, %v6759_v45 }
 0x2d5   : > { %6625 = vmatmul.msk.f32.gmra.mxu2 %vm380_vm0, %v8902_v25 }
 0x2d6   : > { %v2810_v13 = vadd.f32 %v8960_v48, %v2774_v43  ;;  %6661 = vmatmul.msk.f32.gmra.mxu3 %vm380_vm0, %v8978_v9  ;;  %v10596_v43 = vld [vmem:[#allocation28_spill] sm:$0xff] }
 0x2d7   : > { %v1906_v3 = vadd.f32 %v10596_v43, %v1628_v20  ;;  %v9041_v20 = vld [vmem:[%s7226_s26 + $0xa8] sm:$0xff] }
 0x2d8   : > { %v2842_v15 = vmax.f32 %v2810_v13, 0.0  ;;  %v2138_v56 = vpop.f32.mrf.mxu2 }
 0x2d9   : > { %v2691_v50 = vpop.f32.mrf.mxu0  ;;  %v2416_v4 = vpop.f32.mrf.mxu3  ;;  %v2184_v6 = vadd.f32 %v2138_v56, %v1905_v10  ;;  %v9029_v10 = vld [vmem:[%s7226_s26 + $0x84] sm:$0xff] }
 0x2da   : > { %2874 = vst.msk [vmem:[#allocation2 + $0xb8] sm:$0xff] %vm380_vm0, %v2842_v15  ;;  %v2928_v5 = vsel %vm380_vm0, %v2842_v15, 0.0  ;;  %v2739_v53 = vadd.f32 %v2691_v50, %v2461_v19  ;;  %v8994_v33 = vpop.f32.mrf.mxu1  ;;  %v9023_v15 = vld [vmem:[%s7226_s26 + $0x9a] sm:$0xff] }
 0x2db   : > { %v2929_v36 = vadd.f32 %v2928_v5, %v2927_v46  ;;  %v2462_v63 = vadd.f32 %v2416_v4, %v2184_v6  ;;  %v10598_v5 = vld [vmem:[#allocation48_spill] sm:$0xff]  ;;  %v10599_v4 = vld [vmem:[#allocation31_spill] sm:$0xff] }
 0x2dc   : > { %v2775_v27 = vmul.f32 %v8944_v34, %v2739_v53  ;;  %6728 = vmatmul.msk.f32.gmra.mxu0 %vm380_vm0, %v8989_v28  ;;  %6796 = vmatmul.msk.f32.gmra.mxu1 %vm380_vm0, %v8997_v24  ;;  %v1629_v53 = vadd.f32 %v10599_v4, %v10598_v5  ;;  %v10603_v5 = vld [vmem:[#allocation33_spill] sm:$0xff] }
 0x2dd   : > { %6626 = vmatmul.msk.f32.gmra.mxu2 %vm380_vm0, %v8927_v26 }
 0x2de   : > { %v2811_v42 = vadd.f32 %v8960_v48, %v2775_v27  ;;  %6662 = vmatmul.msk.f32.gmra.mxu3 %vm380_vm0, %v9003_v62 }
 0x2e0   : > { %v2843_v39 = vmax.f32 %v2811_v42, 0.0  ;;  %v2141_v45 = vpop.f32.mrf.mxu2  ;;  %v10600_v42 = vld [vmem:[#allocation30_spill] sm:$0xff] }
 0x2e1   : > { %v2694_v46 = vpop.f32.mrf.mxu0  ;;  %v2419_v2 = vpop.f32.mrf.mxu3  ;;  %v2185_v50 = vadd.f32 %v2141_v45, %v1906_v3  ;;  %v9049_v3 = vld [vmem:[%s7226_s26 + $0xaa] sm:$0xff] }
 0x2e2   : > { %2875 = vst.msk [vmem:[#allocation2 + $0xc0] sm:$0xff] %vm380_vm0, %v2843_v39  ;;  %v2930_v23 = vsel %vm380_vm0, %v2843_v39, 0.0  ;;  %v2740_v13 = vadd.f32 %v2694_v46, %v2462_v63  ;;  %v9020_v19 = vpop.f32.mrf.mxu1  ;;  %v1907_v63 = vadd.f32 %v10600_v42, %v1629_v53 }
 0x2e3   : > { %10597 = vst [vmem:[#allocation4_spill] sm:$0xff] %v9020_v19  ;;  %v2931_v56 = vadd.f32 %v2930_v23, %v2929_v36  ;;  %v2463_v6 = vadd.f32 %v2419_v2, %v2185_v50  ;;  %v9055_v50 = vld [vmem:[%s7226_s26 + $0x94] sm:$0xff] }
 0x2e4   : > { %v2776_v40 = vmul.f32 %v8944_v34, %v2740_v13  ;;  %6729 = vmatmul.msk.f32.gmra.mxu0 %vm380_vm0, %v9015_v37  ;;  %6797 = vmatmul.msk.f32.gmra.mxu1 %vm380_vm0, %v9023_v15 }
 0x2e5   : > { %6627 = vmatmul.msk.f32.gmra.mxu2 %vm380_vm0, %v8966_v54 }
 0x2e6   : > { %v2812_v36 = vadd.f32 %v8960_v48, %v2776_v40  ;;  %6663 = vmatmul.msk.f32.gmra.mxu3 %vm380_vm0, %v9029_v10  ;;  %v10602_v40 = vld [vmem:[#allocation49_spill] sm:$0xff] }
 0x2e7   : > { %v1630_v4 = vadd.f32 %v10603_v5, %v10602_v40 }
 0x2e8   : > { %v2844_v27 = vmax.f32 %v2812_v36, 0.0  ;;  %v2144_v57 = vpop.f32.mrf.mxu2 }
 0x2e9   : > { %v2697_v11 = vpop.f32.mrf.mxu0  ;;  %v2422_v45 = vpop.f32.mrf.mxu3  ;;  %v2186_v2 = vadd.f32 %v2144_v57, %v1907_v63  ;;  %v9067_v57 = vld [vmem:[%s7226_s26 + $0xb0] sm:$0xff] }
 0x2ea   : > { %2876 = vst.msk [vmem:[#allocation2 + $0xc8] sm:$0xff] %vm380_vm0, %v2844_v27  ;;  %v2932_v39 = vsel %vm380_vm0, %v2844_v27, 0.0  ;;  %v2741_v46 = vadd.f32 %v2697_v11, %v2463_v6  ;;  %v9046_v43 = vpop.f32.mrf.mxu1  ;;  %v10604_v11 = vld [vmem:[#allocation32_spill] sm:$0xff] }
 0x2eb   : > { %10601 = vst [vmem:[#allocation3_spill] sm:$0xff] %v9046_v43  ;;  %v2933_v23 = vadd.f32 %v2932_v39, %v2931_v56  ;;  %v2464_v53 = vadd.f32 %v2422_v45, %v2186_v2  ;;  %v1908_v42 = vadd.f32 %v10604_v11, %v1630_v4  ;;  %v1631_v4 = vadd.f32 %v8427_v49, %v8415_v21  ;;  %v9093_v11 = vld [vmem:[%s7226_s26 + $0xc0] sm:$0xff]  ;;  %v9107_v43 = vld [vmem:[%s7226_s26 + $0xac] sm:$0xff] }
 0x2ec   : > { %v2777_v13 = vmul.f32 %v8944_v34, %v2741_v46  ;;  %6730 = vmatmul.msk.f32.gmra.mxu0 %vm380_vm0, %v9041_v20  ;;  %6798 = vmatmul.msk.f32.gmra.mxu1 %vm380_vm0, %v9049_v3 }
 0x2ed   : > { %6628 = vmatmul.msk.f32.gmra.mxu2 %vm380_vm0, %v8989_v28 }
 0x2ee   : > { %v2813_v56 = vadd.f32 %v8960_v48, %v2777_v13  ;;  %6664 = vmatmul.msk.f32.gmra.mxu3 %vm380_vm0, %v9055_v50  ;;  %v9075_v13 = vld [vmem:[%s7226_s26 + $0xb2] sm:$0xff] }
 0x2ef   : > { %10606 = vst [vmem:[#allocation5_spill] sm:$0xff] %v9075_v13 }
 0x2f0   : > { %v2845_v36 = vmax.f32 %v2813_v56, 0.0  ;;  %v2147_v6 = vpop.f32.mrf.mxu2  ;;  %v9081_v56 = vld [vmem:[%s7226_s26 + $0x9c] sm:$0xff] }
 0x2f1   : > { %v2700_v27 = vpop.f32.mrf.mxu0  ;;  %v2425_v39 = vpop.f32.mrf.mxu3  ;;  %v2187_v2 = vadd.f32 %v2147_v6, %v1908_v42  ;;  %v10607_v42 = vld [vmem:[#allocation34_spill] sm:$0xff] }
 0x2f2   : > { %2877 = vst.msk [vmem:[#allocation2 + $0xd0] sm:$0xff] %vm380_vm0, %v2845_v36  ;;  %v2934_v63 = vsel %vm380_vm0, %v2845_v36, 0.0  ;;  %v2742_v46 = vadd.f32 %v2700_v27, %v2464_v53  ;;  %v9072_v40 = vpop.f32.mrf.mxu1 }
 0x2f3   : > { %10605 = vst [vmem:[#allocation6_spill] sm:$0xff] %v9072_v40  ;;  %v2935_v45 = vadd.f32 %v2934_v63, %v2933_v23  ;;  %v2465_v53 = vadd.f32 %v2425_v39, %v2187_v2  ;;  %v1909_v63 = vadd.f32 %v10607_v42, %v1631_v4  ;;  %v10610_v4 = vld [vmem:[#allocation50_spill] sm:$0xff] }
 0x2f4   : > { %v2778_v5 = vmul.f32 %v8944_v34, %v2742_v46  ;;  %6731 = vmatmul.msk.f32.gmra.mxu0 %vm380_vm0, %v9067_v57  ;;  %6799 = vmatmul.msk.f32.gmra.mxu1 %vm380_vm0, %v9075_v13 }
 0x2f5   : > { %6629 = vmatmul.msk.f32.gmra.mxu2 %vm380_vm0, %v9015_v37 }
 0x2f6   : > { %v2814_v23 = vadd.f32 %v8960_v48, %v2778_v5  ;;  %6665 = vmatmul.msk.f32.gmra.mxu3 %vm380_vm0, %v9081_v56  ;;  %v9101_v5 = vld [vmem:[%s7226_s26 + $0xc2] sm:$0xff] }
 0x2f7   : > { %10609 = vst [vmem:[#allocation7_spill] sm:$0xff] %v9101_v5 }
 0x2f8   : > { %v2846_v36 = vmax.f32 %v2814_v23, 0.0  ;;  %v2150_v6 = vpop.f32.mrf.mxu2 }
 0x2f9   : > { %v2703_v27 = vpop.f32.mrf.mxu0  ;;  %v2428_v40 = vpop.f32.mrf.mxu3  ;;  %v2188_v2 = vadd.f32 %v2150_v6, %v1909_v63  ;;  %v9119_v63 = vld [vmem:[%s7226_s26 + $0xc8] sm:$0xff] }
 0x2fa   : > { %2878 = vst.msk [vmem:[#allocation2 + $0xd8] sm:$0xff] %vm380_vm0, %v2846_v36  ;;  %v2936_v46 = vsel %vm380_vm0, %v2846_v36, 0.0  ;;  %v2743_v21 = vadd.f32 %v2703_v27, %v2465_v53  ;;  %v9098_v49 = vpop.f32.mrf.mxu1  ;;  %v1632_v53 = vadd.f32 %v8445_v60, %v10610_v4 }
 0x2fb   : > { %10608 = vst [vmem:[#allocation8_spill] sm:$0xff] %v9098_v49  ;;  %v2937_v39 = vadd.f32 %v2936_v46, %v2935_v45  ;;  %v2466_v36 = vadd.f32 %v2428_v40, %v2188_v2 }
 0x2fc   : > { %v2779_v23 = vmul.f32 %v8944_v34, %v2743_v21  ;;  %6732 = vmatmul.msk.f32.gmra.mxu0 %vm380_vm0, %v9093_v11  ;;  %6800 = vmatmul.msk.f32.gmra.mxu1 %vm380_vm0, %v9101_v5  ;;  %v1910_v46 = vadd.f32 %v8453_v59, %v1632_v53  ;;  %v10614_v59 = vld [vmem:[#allocation35_spill] sm:$0xff] }
 0x2fd   : > { %6630 = vmatmul.msk.f32.gmra.mxu2 %vm380_vm0, %v9041_v20  ;;  %v10615_v53 = vld [vmem:[#allocation51_spill] sm:$0xff] }
 0x2fe   : > { %v2815_v45 = vadd.f32 %v8960_v48, %v2779_v23  ;;  %6666 = vmatmul.msk.f32.gmra.mxu3 %vm380_vm0, %v9107_v43  ;;  %v9127_v23 = vld [vmem:[%s7226_s26 + $0xca] sm:$0xff] }
 0x2ff   : > { %10612 = vst [vmem:[#allocation10_spill] sm:$0xff] %v9127_v23 }
 0x300   : > { %v2847_v6 = vmax.f32 %v2815_v45, 0.0  ;;  %v2153_v27 = vpop.f32.mrf.mxu2  ;;  %v9133_v45 = vld [vmem:[%s7226_s26 + $0xb4] sm:$0xff] }
 0x301   : > { %v2706_v42 = vpop.f32.mrf.mxu0  ;;  %v2431_v49 = vpop.f32.mrf.mxu3  ;;  %v2189_v40 = vadd.f32 %v2153_v27, %v1910_v46  ;;  %10613 = vst [vmem:[#allocation36_spill] sm:$0xff] %v9133_v45  ;;  %v6921_v27 = vld [vmem:[%s10377_s1 + $0x1e8] sm:$0xff] }
 0x302   : > { %2879 = vst.msk [vmem:[#allocation2 + $0xe0] sm:$0xff] %vm380_vm0, %v2847_v6  ;;  %v2938_v21 = vsel %vm380_vm0, %v2847_v6, 0.0  ;;  %v2744_v60 = vadd.f32 %v2706_v42, %v2466_v36  ;;  %v9124_v4 = vpop.f32.mrf.mxu1  ;;  %v1633_v36 = vadd.f32 %v10615_v53, %v10614_v59  ;;  %v6853_v6 = vld [vmem:[%s10377_s1 + $0x1c8] sm:$0xff]  ;;  %4705 = vmatpush.msra.mxu3 %v6921_v27  ;;  %v9157_v53 = vld [vmem:[%s7226_s26 + $0xd8] sm:$0xff] }
 0x303   : > { %10611 = vst [vmem:[#allocation9_spill] sm:$0xff] %v9124_v4  ;;  %v2939_v5 = vadd.f32 %v2938_v21, %v2937_v39  ;;  %v6989_v42 = vld [vmem:[%s10377_s1 + $0x208] sm:$0xff]  ;;  %v2467_v46 = vadd.f32 %v2431_v49, %v2189_v40  ;;  %4426 = vmatpush.msra.mxu2 %v6853_v6  ;;  %v9165_v27 = vld [vmem:[%s7226_s26 + $0xda] sm:$0xff] }
 0x304   : > { %v2780_v2 = vmul.f32 %v8944_v34, %v2744_v60  ;;  %6733 = vmatmul.msk.f32.gmra.mxu0 %vm380_vm0, %v9119_v63  ;;  %6801 = vmatmul.msk.f32.gmra.mxu1 %vm380_vm0, %v9127_v23  ;;  %v10616_v4 = vld [vmem:[#allocation52_spill] sm:$0xff] }
 0x305   : > { %6631 = vmatmul.msk.f32.gmra.mxu2 %vm380_vm0, %v9067_v57  ;;  %4983 = vmatpush.msra.mxu0 %v6989_v42  ;;  %v1911_v23 = vadd.f32 %v10616_v4, %v1633_v36  ;;  %v9171_v42 = vld [vmem:[%s7226_s26 + $0xc4] sm:$0xff] }
 0x306   : > { %v2816_v39 = vadd.f32 %v8960_v48, %v2780_v2  ;;  %6667 = vmatmul.msk.f32.gmra.mxu3 %vm380_vm0, %v9133_v45  ;;  %v7057_v2 = vld [vmem:[%s10377_s1 + $0x228] sm:$0xff] }
 0x307   : > { %5261 = vmatpush.msra.mxu1 %v7057_v2  ;;  %v9182_v2 = vld [vmem:[%s7226_s26 + $0xe0] sm:$0xff] }
 0x308   : > { %v2848_v21 = vmax.f32 %v2816_v39, 0.0  ;;  %v2156_v60 = vpop.f32.mrf.mxu2 }
 0x309   : > { %v2709_v59 = vpop.f32.mrf.mxu0  ;;  %v2434_v40 = vpop.f32.mrf.mxu3  ;;  %v2190_v45 = vadd.f32 %v2156_v60, %v1911_v23 }
 0x30a   : > { %2880 = vst.msk [vmem:[#allocation2 + $0xe8] sm:$0xff] %vm380_vm0, %v2848_v21  ;;  %v2940_v49 = vsel %vm380_vm0, %v2848_v21, 0.0  ;;  %v2745_v39 = vadd.f32 %v2709_v59, %v2467_v46  ;;  %v9162_v6 = vpop.f32.mrf.mxu1  ;;  %v10618_v46 = vld [vmem:[#allocation53_spill] sm:$0xff] }
 0x30b   : > { %10617 = vst [vmem:[#allocation37_spill] sm:$0xff] %v9162_v6  ;;  %v2941_v19 = vadd.f32 %v2940_v49, %v2939_v5  ;;  %v2468_v5 = vadd.f32 %v2434_v40, %v2190_v45  ;;  %v9189_v6 = vld [vmem:[%s7226_s26 + $0xe2] sm:$0xff] }
 0x30c   : > { %v2781_v13 = vmul.f32 %v8944_v34, %v2745_v39  ;;  %6734 = vmatmul.msk.f32.gmra.mxu0 %vm380_vm0, %v9157_v53  ;;  %6802 = vmatmul.msk.f32.gmra.mxu1 %vm380_vm0, %v9165_v27 }
 0x30d   : > { %6632 = vmatmul.msk.f32.gmra.mxu2 %vm380_vm0, %v9093_v11 }
 0x30e   : > { %v2817_v4 = vadd.f32 %v8960_v48, %v2781_v13  ;;  %6668 = vmatmul.msk.f32.gmra.mxu3 %vm380_vm0, %v9171_v42 }
 0x310   : > { %v2849_v23 = vmax.f32 %v2817_v4, 0.0  ;;  %v3349_v36 = vpop.f32.mrf.mxu2 }
 0x311   : > { %v3350_v21 = vadd.f32 %v3349_v36, %v10618_v46  ;;  %v2712_v60 = vpop.f32.mrf.mxu0  ;;  %v3595_v39 = vpop.f32.mrf.mxu3  ;;  %v9197_v36 = vld [vmem:[%s7226_s26 + $0xcc] sm:$0xff] }
 0x312   : > { %2881 = vst.msk [vmem:[#allocation2 + $0xf0] sm:$0xff] %vm380_vm0, %v2849_v23  ;;  %v2942_v59 = vsel %vm380_vm0, %v2849_v23, 0.0  ;;  %v2746_v49 = vadd.f32 %v2712_v60, %v2468_v5  ;;  %v9186_v13 = vpop.f32.mrf.mxu1 }
 0x313   : > { %10619 = vst [vmem:[#allocation11_spill] sm:$0xff] %v9186_v13  ;;  %v2943_v45 = vadd.f32 %v2942_v59, %v2941_v19  ;;  %v9191_v40 = vadd.f32 %v3595_v39, %v3350_v21  ;;  %v9210_v21 = vld [vmem:[%s7226_s26 + $0xf0] sm:$0xff] }
 0x314   : > { %v2782_v4 = vmul.f32 %v8944_v34, %v2746_v49  ;;  %6735 = vmatmul.msk.f32.gmra.mxu0 %vm380_vm0, %v9182_v2  ;;  %6803 = vmatmul.msk.f32.gmra.mxu1 %vm380_vm0, %v9189_v6 }
 0x315   : > { %10620 = vst [vmem:[#allocation38_spill] sm:$0xff] %v9191_v40  ;;  %6633 = vmatmul.msk.f32.gmra.mxu2 %vm380_vm0, %v9119_v63 }
 0x316   : > { %v2818_v5 = vadd.f32 %v8960_v48, %v2782_v4  ;;  %6669 = vmatmul.msk.f32.gmra.mxu3 %vm380_vm0, %v9197_v36  ;;  %v9217_v48 = vld [vmem:[%s7226_s26 + $0xf2] sm:$0xff] }
 0x318   : > { %v2850_v19 = vmax.f32 %v2818_v5, 0.0  ;;  %v3352_v34 = vpop.f32.mrf.mxu2 }
 0x319   : > { %v3353_v23 = vadd.f32 %v3352_v34, %v8519_v0  ;;  %v9207_v46 = vpop.f32.mrf.mxu0  ;;  %v3598_v59 = vpop.f32.mrf.mxu3  ;;  %v9226_v0 = vld [vmem:[%s7226_s26 + $0xdc] sm:$0xff] }
 0x31a   : > { %10621 = vst [vmem:[#allocation39_spill] sm:$0xff] %v9207_v46  ;;  %v2944_v60 = vsel %vm380_vm0, %v2850_v19, 0.0  ;;  %v9214_v49 = vpop.f32.mrf.mxu1  ;;  %v9238_v34 = vld [vmem:[%s7226_s26 + $0xf8] sm:$0xff] }
 0x31b   : > { %2882 = vst.msk [vmem:[#allocation2 + $0xf8] sm:$0xff] %vm380_vm0, %v2850_v19  ;;  %v9219_v39 = vadd.f32 %v2944_v60, %v2943_v45  ;;  %v9221_v4 = vadd.f32 %v3598_v59, %v3353_v23  ;;  %v9243_v59 = vld [vmem:[%s7226_s26 + $0xfa] sm:$0xff] }
 0x31c   : > { %10622 = vst [vmem:[#allocation13_spill] sm:$0xff] %v9214_v49  ;;  %6736 = vmatmul.msk.f32.gmra.mxu0 %vm380_vm0, %v9210_v21  ;;  %6804 = vmatmul.msk.f32.gmra.mxu1 %vm380_vm0, %v9217_v48  ;;  %v9274_v46 = vld [vmem:[%s7226_s26 + $0xf4] sm:$0xff] }
 0x31d   : > { %10623 = vst [vmem:[#allocation12_spill] sm:$0xff] %v9219_v39  ;;  %6634 = vmatmul.msk.f32.gmra.mxu2 %vm380_vm0, %v9157_v53 }
 0x31e   : > { %10624 = vst [vmem:[#allocation40_spill] sm:$0xff] %v9221_v4  ;;  %6670 = vmatmul.msk.f32.gmra.mxu3 %vm380_vm0, %v9226_v0  ;;  %v9250_v4 = vld [vmem:[%s7226_s26 + $0xe4] sm:$0xff] }
 0x320   : > { %v3355_v5 = vpop.f32.mrf.mxu2 }
 0x321   : > { %v3356_v45 = vadd.f32 %v3355_v5, %v8540_v8  ;;  %v9235_v19 = vpop.f32.mrf.mxu0  ;;  %v3601_v23 = vpop.f32.mrf.mxu3 }
 0x322   : > { %10625 = vst [vmem:[#allocation15_spill] sm:$0xff] %v9235_v19  ;;  %v9240_v60 = vpop.f32.mrf.mxu1  ;;  %v9267_v19 = vld [vmem:[%s7226_s26 + $0x10a] sm:$0xff] }
 0x323   : > { %10626 = vst [vmem:[#allocation14_spill] sm:$0xff] %v9240_v60  ;;  %v9245_v39 = vadd.f32 %v3601_v23, %v3356_v45  ;;  %v9262_v23 = vld [vmem:[%s7226_s26 + $0x108] sm:$0xff] }
 0x324   : > { %6737 = vmatmul.msk.f32.gmra.mxu0 %vm380_vm0, %v9238_v34  ;;  %6805 = vmatmul.msk.f32.gmra.mxu1 %vm380_vm0, %v9243_v59  ;;  %10630 = vst [vmem:[#allocation42_spill] sm:$0xff] %v9267_v19 }
 0x325   : > { %10627 = vst [vmem:[#allocation41_spill] sm:$0xff] %v9245_v39  ;;  %6635 = vmatmul.msk.f32.gmra.mxu2 %vm380_vm0, %v9182_v2 }
 0x326   : > { %6671 = vmatmul.msk.f32.gmra.mxu3 %vm380_vm0, %v9250_v4 }
 0x328   : > { %v3358_v8 = vpop.f32.mrf.mxu2 }
 0x329   : > { %v3359_v5 = vadd.f32 %v3358_v8, %v8560_v31  ;;  %v9259_v45 = vpop.f32.mrf.mxu0  ;;  %v3604_v39 = vpop.f32.mrf.mxu3 }
 0x32a   : > { %10628 = vst [vmem:[#allocation17_spill] sm:$0xff] %v9259_v45  ;;  %v9264_v60 = vpop.f32.mrf.mxu1  ;;  %v9291_v45 = vld [vmem:[%s7226_s26 + $0x112] sm:$0xff] }
 0x32b   : > { %10629 = vst [vmem:[#allocation16_spill] sm:$0xff] %v9264_v60  ;;  %v9269_v49 = vadd.f32 %v3604_v39, %v3359_v5  ;;  %v9286_v5 = vld [vmem:[%s7226_s26 + $0x110] sm:$0xff] }
 0x32c   : > { %6738 = vmatmul.msk.f32.gmra.mxu0 %vm380_vm0, %v9262_v23  ;;  %6806 = vmatmul.msk.f32.gmra.mxu1 %vm380_vm0, %v9267_v19  ;;  %10633 = vst [vmem:[#allocation43_spill] sm:$0xff] %v9286_v5  ;;  %v6852_v19 = vld [vmem:[%s10377_s1 + $0x1c0] sm:$0xff] }
 0x32d   : > { %10631 = vst [vmem:[#allocation19_spill] sm:$0xff] %v9269_v49  ;;  %6636 = vmatmul.msk.f32.gmra.mxu2 %vm380_vm0, %v9210_v21 }
 0x32e   : > { %6672 = vmatmul.msk.f32.gmra.mxu3 %vm380_vm0, %v9274_v46  ;;  %10635 = vst [vmem:[#allocation20_spill] sm:$0xff] %v9291_v45  ;;  %4427 = vmatpush.msra.mxu2 %v6852_v19  ;;  %v9316_v19 = vld [vmem:[%s7226_s26 + $0x120] sm:$0xff] }
 0x330   : > { %v3361_v31 = vpop.f32.mrf.mxu2 }
 0x331   : > { %v3362_v8 = vadd.f32 %v3361_v31, %v8580_v30  ;;  %v9283_v39 = vpop.f32.mrf.mxu0  ;;  %v3607_v49 = vpop.f32.mrf.mxu3  ;;  %v9301_v30 = vld [vmem:[%s7226_s26 + $0xfc] sm:$0xff] }
 0x332   : > { %10632 = vst [vmem:[#allocation18_spill] sm:$0xff] %v9283_v39  ;;  %v9288_v60 = vpop.f32.mrf.mxu1 }
 0x333   : > { %10634 = vst [vmem:[#allocation21_spill] sm:$0xff] %v9288_v60  ;;  %v9293_v40 = vadd.f32 %v3607_v49, %v3362_v8  ;;  %v6920_v49 = vld [vmem:[%s10377_s1 + $0x1e0] sm:$0xff] }
 0x334   : > { %6739 = vmatmul.msk.f32.gmra.mxu0 %vm380_vm0, %v9286_v5  ;;  %6807 = vmatmul.msk.f32.gmra.mxu1 %vm380_vm0, %v9291_v45  ;;  %v9321_v45 = vld [vmem:[%s7226_s26 + $0x122] sm:$0xff] }
 0x335   : > { %10636 = vst [vmem:[#allocation44_spill] sm:$0xff] %v9293_v40  ;;  %6637 = vmatmul.msk.f32.gmra.mxu2 %vm380_vm0, %v9238_v34  ;;  %4706 = vmatpush.msra.mxu3 %v6920_v49  ;;  %v9328_v49 = vld [vmem:[%s7226_s26 + $0x10c] sm:$0xff] }
 0x336   : > { %6673 = vmatmul.msk.f32.gmra.mxu3 %vm380_vm0, %v9301_v30  ;;  %10639 = vst [vmem:[#allocation45_spill] sm:$0xff] %v9321_v45 }
 0x337   : > { %10641 = vst [vmem:[#allocation24_spill] sm:$0xff] %v9328_v49 }
 0x338   : > { %v3364_v31 = vpop.f32.mrf.mxu2 }
 0x339   : > { %v3365_v8 = vadd.f32 %v3364_v31, %v8606_v7  ;;  %v9313_v40 = vpop.f32.mrf.mxu0  ;;  %v3610_v60 = vpop.f32.mrf.mxu3  ;;  %v6988_v7 = vld [vmem:[%s10377_s1 + $0x200] sm:$0xff] }
 0x33a   : > { %10637 = vst [vmem:[#allocation23_spill] sm:$0xff] %v9313_v40  ;;  %v9318_v39 = vpop.f32.mrf.mxu1  ;;  %4984 = vmatpush.msra.mxu0 %v6988_v7  ;;  %v9351_v7 = vld [vmem:[%s7226_s26 + $0x12a] sm:$0xff] }
 0x33b   : > { %10638 = vst [vmem:[#allocation22_spill] sm:$0xff] %v9318_v39  ;;  %v9323_v13 = vadd.f32 %v3610_v60, %v3365_v8  ;;  %v7056_v60 = vld [vmem:[%s10377_s1 + $0x220] sm:$0xff]  ;;  %v9346_v39 = vld [vmem:[%s7226_s26 + $0x128] sm:$0xff] }
 0x33c   : > { %6740 = vmatmul.msk.f32.gmra.mxu0 %vm380_vm0, %v9316_v19  ;;  %6808 = vmatmul.msk.f32.gmra.mxu1 %vm380_vm0, %v9321_v45  ;;  %10644 = vst [vmem:[#allocation26_spill] sm:$0xff] %v9351_v7 }
 0x33d   : > { %10640 = vst [vmem:[#allocation25_spill] sm:$0xff] %v9323_v13  ;;  %6638 = vmatmul.msk.f32.gmra.mxu2 %vm380_vm0, %v9262_v23  ;;  %5262 = vmatpush.msra.mxu1 %v7056_v60  ;;  %v9358_v60 = vld [vmem:[%s7226_s26 + $0x114] sm:$0xff] }
 0x33e   : > { %6674 = vmatmul.msk.f32.gmra.mxu3 %vm380_vm0, %v9328_v49  ;;  %10646 = vst [vmem:[#allocation29_spill] sm:$0xff] %v9358_v60 }
 0x340   : > { %v3367_v31 = vpop.f32.mrf.mxu2 }
 0x341   : > { %v3368_v8 = vadd.f32 %v3367_v31, %v8632_v18  ;;  %v9343_v13 = vpop.f32.mrf.mxu0  ;;  %v3613_v40 = vpop.f32.mrf.mxu3 }
 0x342   : > { %10642 = vst [vmem:[#allocation46_spill] sm:$0xff] %v9343_v13  ;;  %v9348_v45 = vpop.f32.mrf.mxu1  ;;  %v9375_v13 = vld [vmem:[%s7226_s26 + $0x13a] sm:$0xff] }
 0x343   : > { %10643 = vst [vmem:[#allocation27_spill] sm:$0xff] %v9348_v45  ;;  %v9353_v49 = vadd.f32 %v3613_v40, %v3368_v8  ;;  %v9370_v8 = vld [vmem:[%s7226_s26 + $0x138] sm:$0xff] }
 0x344   : > { %6741 = vmatmul.msk.f32.gmra.mxu0 %vm380_vm0, %v9346_v39  ;;  %6809 = vmatmul.msk.f32.gmra.mxu1 %vm380_vm0, %v9351_v7  ;;  %10649 = vst [vmem:[#allocation31_spill] sm:$0xff] %v9375_v13  ;;  %v9382_v7 = vld [vmem:[%s7226_s26 + $0x124] sm:$0xff] }
 0x345   : > { %10645 = vst [vmem:[#allocation47_spill] sm:$0xff] %v9353_v49  ;;  %6639 = vmatmul.msk.f32.gmra.mxu2 %vm380_vm0, %v9286_v5 }
 0x346   : > { %6675 = vmatmul.msk.f32.gmra.mxu3 %vm380_vm0, %v9358_v60  ;;  %10651 = vst [vmem:[#allocation49_spill] sm:$0xff] %v9382_v7 }
 0x348   : > { %v3370_v18 = vpop.f32.mrf.mxu2 }
 0x349   : > { %v3371_v31 = vadd.f32 %v3370_v18, %v8652_v51  ;;  %v9367_v40 = vpop.f32.mrf.mxu0  ;;  %v3616_v49 = vpop.f32.mrf.mxu3 }
 0x34a   : > { %10647 = vst [vmem:[#allocation28_spill] sm:$0xff] %v9367_v40  ;;  %v9372_v45 = vpop.f32.mrf.mxu1  ;;  %v9399_v40 = vld [vmem:[%s7226_s26 + $0x142] sm:$0xff] }
 0x34b   : > { %10648 = vst [vmem:[#allocation48_spill] sm:$0xff] %v9372_v45  ;;  %v9377_v5 = vadd.f32 %v3616_v49, %v3371_v31  ;;  %v9394_v31 = vld [vmem:[%s7226_s26 + $0x140] sm:$0xff] }
 0x34c   : > { %6742 = vmatmul.msk.f32.gmra.mxu0 %vm380_vm0, %v9370_v8  ;;  %6810 = vmatmul.msk.f32.gmra.mxu1 %vm380_vm0, %v9375_v13  ;;  %10654 = vst [vmem:[#allocation34_spill] sm:$0xff] %v9399_v40  ;;  %v9406_v13 = vld [vmem:[%s7226_s26 + $0x12c] sm:$0xff] }
 0x34d   : > { %10650 = vst [vmem:[#allocation30_spill] sm:$0xff] %v9377_v5  ;;  %6640 = vmatmul.msk.f32.gmra.mxu2 %vm380_vm0, %v9316_v19 }
 0x34e   : > { %6676 = vmatmul.msk.f32.gmra.mxu3 %vm380_vm0, %v9382_v7  ;;  %10656 = vst [vmem:[#allocation35_spill] sm:$0xff] %v9406_v13 }
 0x350   : > { %v3373_v51 = vpop.f32.mrf.mxu2 }
 0x351   : > { %v3374_v18 = vadd.f32 %v3373_v51, %v8672_v55  ;;  %v9391_v49 = vpop.f32.mrf.mxu0  ;;  %v3619_v5 = vpop.f32.mrf.mxu3 }
 0x352   : > { %10652 = vst [vmem:[#allocation33_spill] sm:$0xff] %v9391_v49  ;;  %v9396_v45 = vpop.f32.mrf.mxu1  ;;  %v9423_v49 = vld [vmem:[%s7226_s26 + $0x152] sm:$0xff] }
 0x353   : > { %10653 = vst [vmem:[#allocation32_spill] sm:$0xff] %v9396_v45  ;;  %v9401_v60 = vadd.f32 %v3619_v5, %v3374_v18  ;;  %v9418_v18 = vld [vmem:[%s7226_s26 + $0x150] sm:$0xff] }
 0x354   : > { %6743 = vmatmul.msk.f32.gmra.mxu0 %vm380_vm0, %v9394_v31  ;;  %6811 = vmatmul.msk.f32.gmra.mxu1 %vm380_vm0, %v9399_v40  ;;  %10659 = vst [vmem:[#allocation53_spill] sm:$0xff] %v9423_v49  ;;  %v9430_v40 = vld [vmem:[%s7226_s26 + $0x13c] sm:$0xff] }
 0x355   : > { %10655 = vst [vmem:[#allocation50_spill] sm:$0xff] %v9401_v60  ;;  %6641 = vmatmul.msk.f32.gmra.mxu2 %vm380_vm0, %v9346_v39 }
 0x356   : > { %6677 = vmatmul.msk.f32.gmra.mxu3 %vm380_vm0, %v9406_v13  ;;  %10661 = vst [vmem:[#allocation55_spill] sm:$0xff] %v9430_v40 }
 0x358   : > { %v3376_v55 = vpop.f32.mrf.mxu2 }
 0x359   : > { %v3377_v51 = vadd.f32 %v3376_v55, %v8689_v29  ;;  %v9415_v5 = vpop.f32.mrf.mxu0  ;;  %v3622_v60 = vpop.f32.mrf.mxu3 }
 0x35a   : > { %10657 = vst [vmem:[#allocation51_spill] sm:$0xff] %v9415_v5  ;;  %v9420_v45 = vpop.f32.mrf.mxu1  ;;  %v9447_v5 = vld [vmem:[%s7226_s26 + $0x15a] sm:$0xff] }
 0x35b   : > { %10658 = vst [vmem:[#allocation52_spill] sm:$0xff] %v9420_v45  ;;  %v9425_v7 = vadd.f32 %v3622_v60, %v3377_v51  ;;  %v9442_v51 = vld [vmem:[%s7226_s26 + $0x158] sm:$0xff] }
 0x35c   : > { %6744 = vmatmul.msk.f32.gmra.mxu0 %vm380_vm0, %v9418_v18  ;;  %6812 = vmatmul.msk.f32.gmra.mxu1 %vm380_vm0, %v9423_v49  ;;  %10664 = vst [vmem:[#allocation58_spill] sm:$0xff] %v9447_v5  ;;  %v9454_v49 = vld [vmem:[%s7226_s26 + $0x144] sm:$0xff] }
 0x35d   : > { %10660 = vst [vmem:[#allocation54_spill] sm:$0xff] %v9425_v7  ;;  %6642 = vmatmul.msk.f32.gmra.mxu2 %vm380_vm0, %v9370_v8 }
 0x35e   : > { %6678 = vmatmul.msk.f32.gmra.mxu3 %vm380_vm0, %v9430_v40  ;;  %10666 = vst [vmem:[#allocation60_spill] sm:$0xff] %v9454_v49 }
 0x360   : > { %v3379_v29 = vpop.f32.mrf.mxu2 }
 0x361   : > { %v3380_v55 = vadd.f32 %v3379_v29, %v8706_v58  ;;  %v9439_v60 = vpop.f32.mrf.mxu0  ;;  %v3625_v7 = vpop.f32.mrf.mxu3 }
 0x362   : > { %10662 = vst [vmem:[#allocation56_spill] sm:$0xff] %v9439_v60  ;;  %v9444_v45 = vpop.f32.mrf.mxu1  ;;  %v9471_v60 = vld [vmem:[%s7226_s26 + $0x16a] sm:$0xff] }
 0x363   : > { %10663 = vst [vmem:[#allocation57_spill] sm:$0xff] %v9444_v45  ;;  %v9449_v13 = vadd.f32 %v3625_v7, %v3380_v55  ;;  %v9466_v55 = vld [vmem:[%s7226_s26 + $0x168] sm:$0xff] }
 0x364   : > { %6745 = vmatmul.msk.f32.gmra.mxu0 %vm380_vm0, %v9442_v51  ;;  %6813 = vmatmul.msk.f32.gmra.mxu1 %vm380_vm0, %v9447_v5  ;;  %10669 = vst [vmem:[#allocation63_spill] sm:$0xff] %v9471_v60  ;;  %v9478_v5 = vld [vmem:[%s7226_s26 + $0x154] sm:$0xff] }
 0x365   : > { %10665 = vst [vmem:[#allocation59_spill] sm:$0xff] %v9449_v13  ;;  %6643 = vmatmul.msk.f32.gmra.mxu2 %vm380_vm0, %v9394_v31 }
 0x366   : > { %6679 = vmatmul.msk.f32.gmra.mxu3 %vm380_vm0, %v9454_v49  ;;  %10671 = vst [vmem:[#allocation65_spill] sm:$0xff] %v9478_v5 }
 0x368   : > { %v3382_v58 = vpop.f32.mrf.mxu2 }
 0x369   : > { %v3383_v29 = vadd.f32 %v3382_v58, %v8723_v17  ;;  %v9463_v7 = vpop.f32.mrf.mxu0  ;;  %v3628_v13 = vpop.f32.mrf.mxu3 }
 0x36a   : > { %10667 = vst [vmem:[#allocation61_spill] sm:$0xff] %v9463_v7  ;;  %v9468_v45 = vpop.f32.mrf.mxu1  ;;  %v9495_v7 = vld [vmem:[%s7226_s26 + $0x172] sm:$0xff] }
 0x36b   : > { %10668 = vst [vmem:[#allocation62_spill] sm:$0xff] %v9468_v45  ;;  %v9473_v40 = vadd.f32 %v3628_v13, %v3383_v29  ;;  %v9490_v29 = vld [vmem:[%s7226_s26 + $0x170] sm:$0xff] }
 0x36c   : > { %6746 = vmatmul.msk.f32.gmra.mxu0 %vm380_vm0, %v9466_v55  ;;  %6814 = vmatmul.msk.f32.gmra.mxu1 %vm380_vm0, %v9471_v60  ;;  %10674 = vst [vmem:[#allocation68_spill] sm:$0xff] %v9495_v7  ;;  %v9502_v60 = vld [vmem:[%s7226_s26 + $0x15c] sm:$0xff] }
 0x36d   : > { %10670 = vst [vmem:[#allocation64_spill] sm:$0xff] %v9473_v40  ;;  %6644 = vmatmul.msk.f32.gmra.mxu2 %vm380_vm0, %v9418_v18 }
 0x36e   : > { %6680 = vmatmul.msk.f32.gmra.mxu3 %vm380_vm0, %v9478_v5 }
 0x370   : > { %v3385_v17 = vpop.f32.mrf.mxu2 }
 0x371   : > { %v3386_v58 = vadd.f32 %v3385_v17, %v8740_v38  ;;  %v9487_v13 = vpop.f32.mrf.mxu0  ;;  %v3631_v40 = vpop.f32.mrf.mxu3 }
 0x372   : > { %10672 = vst [vmem:[#allocation66_spill] sm:$0xff] %v9487_v13  ;;  %v9492_v45 = vpop.f32.mrf.mxu1  ;;  %v9519_v13 = vld [vmem:[%s7226_s26 + $0x182] sm:$0xff] }
 0x373   : > { %10673 = vst [vmem:[#allocation67_spill] sm:$0xff] %v9492_v45  ;;  %v9497_v49 = vadd.f32 %v3631_v40, %v3386_v58  ;;  %v9514_v58 = vld [vmem:[%s7226_s26 + $0x180] sm:$0xff] }
 0x374   : > { %6747 = vmatmul.msk.f32.gmra.mxu0 %vm380_vm0, %v9490_v29  ;;  %6815 = vmatmul.msk.f32.gmra.mxu1 %vm380_vm0, %v9495_v7  ;;  %10677 = vst [vmem:[#allocation71_spill] sm:$0xff] %v9514_v58  ;;  %v9526_v7 = vld [vmem:[%s7226_s26 + $0x16c] sm:$0xff] }
 0x375   : > { %10675 = vst [vmem:[#allocation69_spill] sm:$0xff] %v9497_v49  ;;  %6645 = vmatmul.msk.f32.gmra.mxu2 %vm380_vm0, %v9442_v51 }
 0x376   : > { %6681 = vmatmul.msk.f32.gmra.mxu3 %vm380_vm0, %v9502_v60  ;;  %10679 = vst [vmem:[#allocation73_spill] sm:$0xff] %v9519_v13 }
 0x377   : > { %10681 = vst [vmem:[#allocation75_spill] sm:$0xff] %v9526_v7 }
 0x378   : > { %v3388_v38 = vpop.f32.mrf.mxu2 }
 0x379   : > { %v3389_v17 = vadd.f32 %v3388_v38, %v8763_v12  ;;  %v9511_v40 = vpop.f32.mrf.mxu0  ;;  %v3634_v49 = vpop.f32.mrf.mxu3 }
 0x37a   : > { %10676 = vst [vmem:[#allocation70_spill] sm:$0xff] %v9511_v40  ;;  %v9516_v45 = vpop.f32.mrf.mxu1  ;;  %v6781_v40 = vld [vmem:[%s7226_s26 + $0x18a] sm:$0xff] }
 0x37b   : > { %10678 = vst [vmem:[#allocation72_spill] sm:$0xff] %v9516_v45  ;;  %v9521_v5 = vadd.f32 %v3634_v49, %v3389_v17  ;;  %v9538_v17 = vld [vmem:[%s7226_s26 + $0x188] sm:$0xff] }
 0x37c   : > { %6748 = vmatmul.msk.f32.gmra.mxu0 %vm380_vm0, %v9514_v58  ;;  %6816 = vmatmul.msk.f32.gmra.mxu1 %vm380_vm0, %v9519_v13  ;;  %10683 = vst [vmem:[#allocation77_spill] sm:$0xff] %v9538_v17  ;;  %v9548_v13 = vld [vmem:[%s7226_s26 + $0x174] sm:$0xff] }
 0x37d   : > { %10680 = vst [vmem:[#allocation74_spill] sm:$0xff] %v9521_v5  ;;  %6646 = vmatmul.msk.f32.gmra.mxu2 %vm380_vm0, %v9466_v55 }
 0x37e   : > { %6682 = vmatmul.msk.f32.gmra.mxu3 %vm380_vm0, %v9526_v7  ;;  %10686 = vst [vmem:[#allocation80_spill] sm:$0xff] %v9548_v13 }
 0x380   : > { %v3391_v12 = vpop.f32.mrf.mxu2 }
 0x381   : > { %v3392_v38 = vadd.f32 %v3391_v12, %v8786_v41  ;;  %v9535_v49 = vpop.f32.mrf.mxu0  ;;  %v3637_v5 = vpop.f32.mrf.mxu3 }
 0x382   : > { %10682 = vst [vmem:[#allocation76_spill] sm:$0xff] %v9535_v49  ;;  %v9540_v45 = vpop.f32.mrf.mxu1  ;;  %v6820_v49 = vld [vmem:[%s7226_s26 + $0x34] sm:$0xff] }
 0x383   : > { %10684 = vst [vmem:[#allocation78_spill] sm:$0xff] %v9540_v45  ;;  %v9543_v58 = vadd.f32 %v3637_v5, %v3392_v38  ;;  %v9559_v38 = vld [vmem:[%s7226_s26 + $0x198] sm:$0xff] }
 0x384   : > { %6749 = vmatmul.msk.f32.gmra.mxu0 %vm380_vm0, %v9538_v17  ;;  %6817 = vmatmul.msk.f32.gmra.mxu1 %vm380_vm0, %v6781_v40  ;;  %10688 = vst [vmem:[#allocation82_spill] sm:$0xff] %v9559_v38  ;;  %v6782_v17 = vld [vmem:[%s7226_s26 + $0x19a] sm:$0xff] }
 0x385   : > { %10685 = vst [vmem:[#allocation79_spill] sm:$0xff] %v9543_v58  ;;  %6647 = vmatmul.msk.f32.gmra.mxu2 %vm380_vm0, %v9490_v29  ;;  %v6888_v40 = vld [vmem:[%s7226_s26 + $0x60] sm:$0xff] }
 0x386   : > { %6683 = vmatmul.msk.f32.gmra.mxu3 %vm380_vm0, %v9548_v13 }
 0x388   : > { %v3394_v41 = vpop.f32.mrf.mxu2 }
 0x389   : > { %v3395_v12 = vadd.f32 %v3394_v41, %v8803_v22  ;;  %v9556_v5 = vpop.f32.mrf.mxu0  ;;  %v3640_v58 = vpop.f32.mrf.mxu3 }
 0x38a   : > { %10687 = vst [vmem:[#allocation81_spill] sm:$0xff] %v9556_v5  ;;  %v9561_v45 = vpop.f32.mrf.mxu1  ;;  %v9577_v5 = vld [vmem:[%s7226_s26 + $0x1a0] sm:$0xff] }
 0x38b   : > { %10689 = vst [vmem:[#allocation83_spill] sm:$0xff] %v9561_v45  ;;  %v9565_v7 = vadd.f32 %v3640_v58, %v3395_v12 }
 0x38c   : > { %6750 = vmatmul.msk.f32.gmra.mxu0 %vm380_vm0, %v9559_v38  ;;  %6818 = vmatmul.msk.f32.gmra.mxu1 %vm380_vm0, %v6782_v17  ;;  %v6783_v38 = vld [vmem:[%s7226_s26 + $0x1a2] sm:$0xff] }
 0x38d   : > { %10690 = vst [vmem:[#allocation84_spill] sm:$0xff] %v9565_v7  ;;  %6856 = vmatmul.msk.f32.vlgmr.msra.gmra.mxu2 %vm380_vm0, %v6820_v49  ;;  %v6821_v7 = vld [vmem:[%s7226_s26 + $0x3c] sm:$0xff] }
 0x38e   : > { %6924 = vmatmul.msk.f32.vlgmr.msra.gmra.mxu3 %vm380_vm0, %v6888_v40  ;;  %v6956_v40 = vld [vmem:[%s7226_s26 + $0x62] sm:$0xff] }
 0x390   : > { %v3397_v22 = vpop.f32.mrf.mxu2 }
 0x391   : > { %v3398_v41 = vadd.f32 %v3397_v22, %v8820_v16  ;;  %v9574_v45 = vpop.f32.mrf.mxu0  ;;  %v3643_v58 = vpop.f32.mrf.mxu3 }
 0x392   : > { %v9579_v12 = vpop.f32.mrf.mxu1 }
 0x393   : > { %v9583_v13 = vadd.f32 %v3643_v58, %v3398_v41  ;;  %v6822_v58 = vld [vmem:[%s7226_s26 + $0x4c] sm:$0xff] }
 0x394   : > { %6751 = vmatmul.msk.f32.gmra.mxu0 %vm380_vm0, %v9577_v5  ;;  %6819 = vmatmul.msk.f32.gmra.mxu1 %vm380_vm0, %v6783_v38  ;;  %v6957_v38 = vld [vmem:[%s7226_s26 + $0x6a] sm:$0xff] }
 0x395   : > { %10691 = vst [vmem:[#allocation85_spill] sm:$0xff] %v9583_v13  ;;  %6857 = vmatmul.msk.f32.gmra.mxu2 %vm380_vm0, %v6821_v7 }
 0x396   : > { %6925 = vmatmul.msk.f32.gmra.mxu3 %vm380_vm0, %v8902_v25 }
 0x398   : > { %v3400_v16 = vpop.f32.mrf.mxu2 }
 0x399   : > { %v3401_v49 = vadd.f32 %v3400_v16, %v8837_v1  ;;  %v9592_v17 = vpop.f32.mrf.mxu0  ;;  %v3646_v22 = vpop.f32.mrf.mxu3 }
 0x39a   : > { %v9595_v41 = vpop.f32.mrf.mxu1 }
 0x39b   : > { %v9598_v13 = vadd.f32 %v3646_v22, %v3401_v49 }
 0x39c   : > { %6992 = vmatmul.msk.f32.vlgmr.msra.gmra.mxu0 %vm380_vm0, %v6956_v40  ;;  %7060 = vmatmul.msk.f32.vlgmr.msra.gmra.mxu1 %vm380_vm0, %v8950_v14  ;;  %v6823_v40 = vld [vmem:[%s7226_s26 + $0x54] sm:$0xff] }
 0x39d   : > { %6858 = vmatmul.msk.f32.gmra.mxu2 %vm380_vm0, %v6822_v58  ;;  %v6958_v58 = vld [vmem:[%s7226_s26 + $0x7a] sm:$0xff] }
 0x39e   : > { %6926 = vmatmul.msk.f32.gmra.mxu3 %vm380_vm0, %v8927_v26 }
 0x3a0   : > { %v3403_v1 = vpop.f32.mrf.mxu2 }
 0x3a1   : > { %v3404_v25 = vadd.f32 %v3403_v1, %v8854_v52  ;;  %v9607_v7 = vpop.f32.mrf.mxu0  ;;  %v3649_v16 = vpop.f32.mrf.mxu3 }
 0x3a2   : > { %v9610_v49 = vpop.f32.mrf.mxu1 }
 0x3a3   : > { %v9613_v22 = vadd.f32 %v3649_v16, %v3404_v25 }
 0x3a4   : > { %6993 = vmatmul.msk.f32.gmra.mxu0 %vm380_vm0, %v6957_v38  ;;  %7061 = vmatmul.msk.f32.gmra.mxu1 %vm380_vm0, %v8978_v9  ;;  %v6824_v38 = vld [vmem:[%s7226_s26 + $0x64] sm:$0xff] }
 0x3a5   : > { %6859 = vmatmul.msk.f32.gmra.mxu2 %vm380_vm0, %v6823_v40  ;;  %v6959_v40 = vld [vmem:[%s7226_s26 + $0x82] sm:$0xff] }
 0x3a6   : > { %6927 = vmatmul.msk.f32.gmra.mxu3 %vm380_vm0, %v8966_v54 }
 0x3a8   : > { %v3406_v52 = vpop.f32.mrf.mxu2 }
 0x3a9   : > { %v3407_v26 = vadd.f32 %v3406_v52, %v8870_v35  ;;  %v9622_v14 = vpop.f32.mrf.mxu0  ;;  %v3652_v1 = vpop.f32.mrf.mxu3 }
 0x3aa   : > { %v9625_v25 = vpop.f32.mrf.mxu1 }
 0x3ab   : > { %10692 = vst [vmem:[#allocation86_spill] sm:$0xff] %v9625_v25  ;;  %v9628_v16 = vadd.f32 %v3652_v1, %v3407_v26  ;;  %v6825_v26 = vld [vmem:[%s7226_s26 + $0x6c] sm:$0xff] }
 0x3ac   : > { %6994 = vmatmul.msk.f32.gmra.mxu0 %vm380_vm0, %v6958_v58  ;;  %7062 = vmatmul.msk.f32.gmra.mxu1 %vm380_vm0, %v9003_v62 }
 0x3ad   : > { %6860 = vmatmul.msk.f32.gmra.mxu2 %vm380_vm0, %v6824_v38 }
 0x3ae   : > { %6928 = vmatmul.msk.f32.gmra.mxu3 %vm380_vm0, %v8989_v28 }
 0x3b0   : > { %v3409_v35 = vpop.f32.mrf.mxu2 }
 0x3b1   : > { %v3410_v54 = vadd.f32 %v3409_v35, %v8888_v61  ;;  %v9637_v9 = vpop.f32.mrf.mxu0  ;;  %v3655_v52 = vpop.f32.mrf.mxu3 }
 0x3b2   : > { %v9640_v25 = vpop.f32.mrf.mxu1 }
 0x3b3   : > { %v9643_v1 = vadd.f32 %v3655_v52, %v3410_v54 }
 0x3b4   : > { %6995 = vmatmul.msk.f32.gmra.mxu0 %vm380_vm0, %v6959_v40  ;;  %7063 = vmatmul.msk.f32.gmra.mxu1 %vm380_vm0, %v9029_v10 }
 0x3b5   : > { %6861 = vmatmul.msk.f32.gmra.mxu2 %vm380_vm0, %v6825_v26 }
 0x3b6   : > { %6929 = vmatmul.msk.f32.gmra.mxu3 %vm380_vm0, %v9015_v37 }
 0x3b8   : > { %v3412_v61 = vpop.f32.mrf.mxu2 }
 0x3b9   : > { %v3413_v28 = vadd.f32 %v3412_v61, %v8913_v44  ;;  %v9652_v58 = vpop.f32.mrf.mxu0  ;;  %v3658_v38 = vpop.f32.mrf.mxu3 }
 0x3ba   : > { %v9654_v35 = vpop.f32.mrf.mxu1 }
 0x3bb   : > { %v9656_v54 = vadd.f32 %v3658_v38, %v3413_v28 }
 0x3bc   : > { %6996 = vmatmul.msk.f32.gmra.mxu0 %vm380_vm0, %v8997_v24  ;;  %7064 = vmatmul.msk.f32.gmra.mxu1 %vm380_vm0, %v9055_v50 }
 0x3bd   : > { %6862 = vmatmul.msk.f32.gmra.mxu2 %vm380_vm0, %v9003_v62 }
 0x3be   : > { %6930 = vmatmul.msk.f32.gmra.mxu3 %vm380_vm0, %v9041_v20 }
 0x3c0   : > { %v3415_v44 = vpop.f32.mrf.mxu2 }
 0x3c1   : > { %v3416_v37 = vadd.f32 %v3415_v44, %v8938_v47  ;;  %v9667_v40 = vpop.f32.mrf.mxu0  ;;  %v3661_v52 = vpop.f32.mrf.mxu3 }
 0x3c2   : > { %v9669_v26 = vpop.f32.mrf.mxu1 }
 0x3c3   : > { %v9671_v61 = vadd.f32 %v3661_v52, %v3416_v37 }
 0x3c4   : > { %6997 = vmatmul.msk.f32.gmra.mxu0 %vm380_vm0, %v9023_v15  ;;  %7065 = vmatmul.msk.f32.gmra.mxu1 %vm380_vm0, %v9081_v56 }
 0x3c5   : > { %6863 = vmatmul.msk.f32.gmra.mxu2 %vm380_vm0, %v9029_v10 }
 0x3c6   : > { %6931 = vmatmul.msk.f32.gmra.mxu3 %vm380_vm0, %v9067_v57 }
 0x3c8   : > { %v3418_v47 = vpop.f32.mrf.mxu2 }
 0x3c9   : > { %v3419_v24 = vadd.f32 %v3418_v47, %v8971_v32  ;;  %v9682_v62 = vpop.f32.mrf.mxu0  ;;  %v3664_v20 = vpop.f32.mrf.mxu3 }
 0x3ca   : > { %v9684_v28 = vpop.f32.mrf.mxu1 }
 0x3cb   : > { %v9686_v38 = vadd.f32 %v3664_v20, %v3419_v24 }
 0x3cc   : > { %6998 = vmatmul.msk.f32.gmra.mxu0 %vm380_vm0, %v9049_v3  ;;  %7066 = vmatmul.msk.f32.gmra.mxu1 %vm380_vm0, %v9107_v43  ;;  %v10693_v3 = vld [vmem:[#allocation5_spill] sm:$0xff] }
 0x3cd   : > { %6864 = vmatmul.msk.f32.gmra.mxu2 %vm380_vm0, %v9055_v50  ;;  %v10694_v50 = vld [vmem:[#allocation36_spill] sm:$0xff] }
 0x3ce   : > { %6932 = vmatmul.msk.f32.gmra.mxu3 %vm380_vm0, %v9093_v11  ;;  %v10695_v11 = vld [vmem:[#allocation4_spill] sm:$0xff] }
 0x3d0   : > { %v3421_v32 = vpop.f32.mrf.mxu2 }
 0x3d1   : > { %v3422_v15 = vadd.f32 %v3421_v32, %v8994_v33  ;;  %v9697_v10 = vpop.f32.mrf.mxu0  ;;  %v3667_v57 = vpop.f32.mrf.mxu3 }
 0x3d2   : > { %v9699_v44 = vpop.f32.mrf.mxu1 }
 0x3d3   : > { %v9701_v37 = vadd.f32 %v3667_v57, %v3422_v15  ;;  %v10696_v15 = vld [vmem:[#allocation7_spill] sm:$0xff] }
 0x3d4   : > { %6999 = vmatmul.msk.f32.gmra.mxu0 %vm380_vm0, %v10693_v3  ;;  %7067 = vmatmul.msk.f32.gmra.mxu1 %vm380_vm0, %v10694_v50 }
 0x3d5   : > { %6865 = vmatmul.msk.f32.gmra.mxu2 %vm380_vm0, %v9081_v56 }
 0x3d6   : > { %6933 = vmatmul.msk.f32.gmra.mxu3 %vm380_vm0, %v9119_v63  ;;  %v10697_v63 = vld [vmem:[#allocation3_spill] sm:$0xff] }
 0x3d8   : > { %v3424_v33 = vpop.f32.mrf.mxu2 }
 0x3d9   : > { %v3425_v52 = vadd.f32 %v3424_v33, %v10695_v11  ;;  %v9712_v47 = vpop.f32.mrf.mxu0  ;;  %v3670_v24 = vpop.f32.mrf.mxu3 }
 0x3da   : > { %v9714_v20 = vpop.f32.mrf.mxu1 }
 0x3db   : > { %v9716_v32 = vadd.f32 %v3670_v24, %v3425_v52  ;;  %v10698_v24 = vld [vmem:[#allocation10_spill] sm:$0xff] }
 0x3dc   : > { %7000 = vmatmul.msk.f32.gmra.mxu0 %vm380_vm0, %v10696_v15  ;;  %7068 = vmatmul.msk.f32.gmra.mxu1 %vm380_vm0, %v9171_v42 }
 0x3dd   : > { %6866 = vmatmul.msk.f32.gmra.mxu2 %vm380_vm0, %v9107_v43 }
 0x3de   : > { %6934 = vmatmul.msk.f32.gmra.mxu3 %vm380_vm0, %v9157_v53  ;;  %v10699_v53 = vld [vmem:[#allocation6_spill] sm:$0xff] }
 0x3e0   : > { %v3427_v56 = vpop.f32.mrf.mxu2 }
 0x3e1   : > { %v3428_v57 = vadd.f32 %v3427_v56, %v10697_v63  ;;  %v9727_v3 = vpop.f32.mrf.mxu0  ;;  %v3673_v33 = vpop.f32.mrf.mxu3 }
 0x3e2   : > { %v9729_v11 = vpop.f32.mrf.mxu1 }
 0x3e3   : > { %v9731_v52 = vadd.f32 %v3673_v33, %v3428_v57 }
 0x3e4   : > { %7001 = vmatmul.msk.f32.gmra.mxu0 %vm380_vm0, %v10698_v24  ;;  %7069 = vmatmul.msk.f32.gmra.mxu1 %vm380_vm0, %v9197_v36 }
 0x3e5   : > { %6867 = vmatmul.msk.f32.gmra.mxu2 %vm380_vm0, %v10694_v50  ;;  %v10700_v50 = vld [vmem:[#allocation8_spill] sm:$0xff] }
 0x3e6   : > { %6935 = vmatmul.msk.f32.gmra.mxu3 %vm380_vm0, %v9182_v2 }
 0x3e8   : > { %v3430_v43 = vpop.f32.mrf.mxu2 }
 0x3e9   : > { %v3431_v15 = vadd.f32 %v3430_v43, %v10699_v53  ;;  %v9742_v56 = vpop.f32.mrf.mxu0  ;;  %v3676_v63 = vpop.f32.mrf.mxu3 }
 0x3ea   : > { %v9744_v57 = vpop.f32.mrf.mxu1 }
 0x3eb   : > { %v9746_v33 = vadd.f32 %v3676_v63, %v3431_v15 }
 0x3ec   : > { %7002 = vmatmul.msk.f32.gmra.mxu0 %vm380_vm0, %v9165_v27  ;;  %7070 = vmatmul.msk.f32.gmra.mxu1 %vm380_vm0, %v9226_v0 }
 0x3ed   : > { %6868 = vmatmul.msk.f32.gmra.mxu2 %vm380_vm0, %v9171_v42  ;;  %v10704_v42 = vld [vmem:[#allocation9_spill] sm:$0xff] }
 0x3ee   : > { %6936 = vmatmul.msk.f32.gmra.mxu3 %vm380_vm0, %v9210_v21 }
 0x3f0   : > { %v3433_v2 = vpop.f32.mrf.mxu2 }
 0x3f1   : > { %v3434_v24 = vadd.f32 %v3433_v2, %v10700_v50  ;;  %v9757_v43 = vpop.f32.mrf.mxu0  ;;  %v3679_v53 = vpop.f32.mrf.mxu3 }
 0x3f2   : > { %10701 = vst [vmem:[#allocation5_spill] sm:$0xff] %v9757_v43  ;;  %v9759_v15 = vpop.f32.mrf.mxu1 }
 0x3f3   : > { %10702 = vst [vmem:[#allocation36_spill] sm:$0xff] %v9759_v15  ;;  %v9761_v63 = vadd.f32 %v3679_v53, %v3434_v24 }
 0x3f4   : > { %7003 = vmatmul.msk.f32.gmra.mxu0 %vm380_vm0, %v9189_v6  ;;  %7071 = vmatmul.msk.f32.gmra.mxu1 %vm380_vm0, %v9250_v4 }
 0x3f5   : > { %10703 = vst [vmem:[#allocation4_spill] sm:$0xff] %v9761_v63  ;;  %6869 = vmatmul.msk.f32.gmra.mxu2 %vm380_vm0, %v9197_v36  ;;  %v10708_v36 = vld [vmem:[#allocation37_spill] sm:$0xff] }
 0x3f6   : > { %6937 = vmatmul.msk.f32.gmra.mxu3 %vm380_vm0, %v9238_v34 }
 0x3f8   : > { %v3436_v27 = vpop.f32.mrf.mxu2 }
 0x3f9   : > { %v3437_v21 = vadd.f32 %v3436_v27, %v10704_v42  ;;  %v9772_v2 = vpop.f32.mrf.mxu0  ;;  %v3682_v50 = vpop.f32.mrf.mxu3 }
 0x3fa   : > { %10705 = vst [vmem:[#allocation7_spill] sm:$0xff] %v9772_v2  ;;  %v9774_v24 = vpop.f32.mrf.mxu1 }
 0x3fb   : > { %10706 = vst [vmem:[#allocation3_spill] sm:$0xff] %v9774_v24  ;;  %v9776_v53 = vadd.f32 %v3682_v50, %v3437_v21 }
 0x3fc   : > { %7004 = vmatmul.msk.f32.gmra.mxu0 %vm380_vm0, %v9217_v48  ;;  %7072 = vmatmul.msk.f32.gmra.mxu1 %vm380_vm0, %v9274_v46  ;;  %v10712_v48 = vld [vmem:[#allocation43_spill] sm:$0xff] }
 0x3fd   : > { %10707 = vst [vmem:[#allocation10_spill] sm:$0xff] %v9776_v53  ;;  %6870 = vmatmul.msk.f32.gmra.mxu2 %vm380_vm0, %v9226_v0 }
 0x3fe   : > { %6938 = vmatmul.msk.f32.gmra.mxu3 %vm380_vm0, %v9262_v23  ;;  %v10713_v23 = vld [vmem:[#allocation11_spill] sm:$0xff] }
 0x400   : > { %v3439_v6 = vpop.f32.mrf.mxu2 }
 0x401   : > { %v3440_v34 = vadd.f32 %v3439_v6, %v10708_v36  ;;  %v9787_v27 = vpop.f32.mrf.mxu0  ;;  %v3685_v42 = vpop.f32.mrf.mxu3 }
 0x402   : > { %10709 = vst [vmem:[#allocation6_spill] sm:$0xff] %v9787_v27  ;;  %v9789_v21 = vpop.f32.mrf.mxu1 }
 0x403   : > { %10710 = vst [vmem:[#allocation8_spill] sm:$0xff] %v9789_v21  ;;  %v9791_v50 = vadd.f32 %v3685_v42, %v3440_v34 }
 0x404   : > { %7005 = vmatmul.msk.f32.gmra.mxu0 %vm380_vm0, %v9243_v59  ;;  %7073 = vmatmul.msk.f32.gmra.mxu1 %vm380_vm0, %v9301_v30  ;;  %v10717_v59 = vld [vmem:[#allocation42_spill] sm:$0xff] }
 0x405   : > { %10711 = vst [vmem:[#allocation9_spill] sm:$0xff] %v9791_v50  ;;  %6871 = vmatmul.msk.f32.gmra.mxu2 %vm380_vm0, %v9250_v4  ;;  %v10718_v4 = vld [vmem:[#allocation24_spill] sm:$0xff]  ;;  %v10720_v50 = vld [vmem:[#allocation39_spill] sm:$0xff] }
 0x406   : > { %6939 = vmatmul.msk.f32.gmra.mxu3 %vm380_vm0, %v10712_v48  ;;  %v10719_v48 = vld [vmem:[#allocation38_spill] sm:$0xff] }
 0x407   : > { %v3969_v27 = vadd.f32 %v10720_v50, %v10719_v48  ;;  %v10726_v50 = vld [vmem:[#allocation40_spill] sm:$0xff] }
 0x408   : > { %v3442_v0 = vpop.f32.mrf.mxu2 }
 0x409   : > { %v3443_v6 = vadd.f32 %v3442_v0, %v10713_v23  ;;  %v9802_v36 = vpop.f32.mrf.mxu0  ;;  %v3688_v21 = vpop.f32.mrf.mxu3 }
 0x40a   : > { %10714 = vst [vmem:[#allocation37_spill] sm:$0xff] %v9802_v36  ;;  %v9804_v34 = vpop.f32.mrf.mxu1  ;;  %v10724_v36 = vld [vmem:[#allocation20_spill] sm:$0xff] }
 0x40b   : > { %10715 = vst [vmem:[#allocation43_spill] sm:$0xff] %v9804_v34  ;;  %v9806_v42 = vadd.f32 %v3688_v21, %v3443_v6  ;;  %v10722_v21 = vld [vmem:[#allocation13_spill] sm:$0xff] }
 0x40c   : > { %7006 = vmatmul.msk.f32.gmra.mxu0 %vm380_vm0, %v10717_v59  ;;  %7074 = vmatmul.msk.f32.gmra.mxu1 %vm380_vm0, %v10718_v4  ;;  %v4247_v6 = vadd.f32 %v10722_v21, %v3969_v27 }
 0x40d   : > { %10716 = vst [vmem:[#allocation11_spill] sm:$0xff] %v9806_v42  ;;  %6872 = vmatmul.msk.f32.gmra.mxu2 %vm380_vm0, %v9274_v46  ;;  %v10725_v46 = vld [vmem:[#allocation29_spill] sm:$0xff] }
 0x40e   : > { %6940 = vmatmul.msk.f32.gmra.mxu3 %vm380_vm0, %v9316_v19  ;;  %v10727_v19 = vld [vmem:[#allocation15_spill] sm:$0xff] }
 0x40f   : > { %v3970_v48 = vadd.f32 %v10727_v19, %v10726_v50  ;;  %v5605_v50 = vld [vmem:[%s10380_s4 + $0x18] sm:$0xff] }
 0x410   : > { %v4429_v0 = vpop.f32.mrf.mxu2  ;;  %5621 = vmatpush.msrb.mxu2 %v5605_v50  ;;  %v10733_v50 = vld [vmem:[#allocation16_spill] sm:$0xff] }
 0x411   : > { %v9818_v23 = vpop.f32.mrf.mxu0  ;;  %v4708_v42 = vpop.f32.mrf.mxu3  ;;  %v4525_v59 = vadd.f32 %v4429_v0, %v4247_v6 }
 0x412   : > { %10721 = vst [vmem:[#allocation42_spill] sm:$0xff] %v9818_v23  ;;  %v9821_v34 = vpop.f32.mrf.mxu1 }
 0x413   : > { %10723 = vst [vmem:[#allocation24_spill] sm:$0xff] %v9821_v34  ;;  %v4804_v27 = vadd.f32 %v4708_v42, %v4525_v59  ;;  %v10728_v34 = vld [vmem:[#allocation14_spill] sm:$0xff]  ;;  %v10730_v42 = vld [vmem:[#allocation49_spill] sm:$0xff] }
 0x414   : > { %7007 = vmatmul.msk.f32.gmra.mxu0 %vm380_vm0, %v10724_v36  ;;  %7075 = vmatmul.msk.f32.gmra.mxu1 %vm380_vm0, %v10725_v46  ;;  %v4248_v0 = vadd.f32 %v10728_v34, %v3970_v48  ;;  %v10729_v34 = vld [vmem:[#allocation45_spill] sm:$0xff] }
 0x415   : > { %6873 = vmatmul.msk.f32.gmra.mxu2 %vm380_vm0, %v9301_v30  ;;  %v9837_v30 = vld [vmem:[%s10378_s2 + $0x1] ss:$0 sm:$0xff]  ;;  %v10732_v59 = vld [vmem:[#allocation17_spill] sm:$0xff] }
 0x416   : > { %6941 = vmatmul.msk.f32.gmra.mxu3 %vm380_vm0, %v9346_v39  ;;  %v9845_v39 = vld [vmem:[%s10379_s3 + $0x1] ss:$0 sm:$0xff] }
 0x418   : > { %v4432_v21 = vpop.f32.mrf.mxu2 }
 0x419   : > { %v4986_v23 = vpop.f32.mrf.mxu0  ;;  %v4711_v6 = vpop.f32.mrf.mxu3  ;;  %v4526_v19 = vadd.f32 %v4432_v21, %v4248_v0 }
 0x41a   : > { %v5082_v53 = vadd.f32 %v4986_v23, %v4804_v27  ;;  %v5264_v36 = vpop.f32.mrf.mxu1  ;;  %v10731_v23 = vld [vmem:[#allocation41_spill] sm:$0xff] }
 0x41b   : > { %v3971_v48 = vadd.f32 %v10732_v59, %v10731_v23  ;;  %v4805_v27 = vadd.f32 %v4711_v6, %v4526_v19  ;;  %v10734_v59 = vld [vmem:[#allocation26_spill] sm:$0xff] }
 0x41c   : > { %v5360_v24 = vadd.f32 %v5264_v36, %v5082_v53  ;;  %7008 = vmatmul.msk.f32.gmra.mxu0 %vm380_vm0, %v10729_v34  ;;  %7076 = vmatmul.msk.f32.gmra.mxu1 %vm380_vm0, %v10730_v42  ;;  %v10737_v6 = vld [vmem:[#allocation18_spill] sm:$0xff] }
 0x41d   : > { %6874 = vmatmul.msk.f32.gmra.mxu2 %vm380_vm0, %v10718_v4  ;;  %v4249_v34 = vadd.f32 %v10733_v50, %v3971_v48 }
 0x41e   : > { %v5397_v53 = vmul.f32 %v9837_v30, %v5360_v24  ;;  %6942 = vmatmul.msk.f32.gmra.mxu3 %vm380_vm0, %v9370_v8  ;;  %v10735_v8 = vld [vmem:[#allocation35_spill] sm:$0xff] }
 0x41f   : > { %v10736_v24 = vld [vmem:[#allocation19_spill] sm:$0xff] }
 0x420   : > { %v5434_v21 = vadd.f32 %v9845_v39, %v5397_v53  ;;  %v4435_v0 = vpop.f32.mrf.mxu2  ;;  %v3972_v19 = vadd.f32 %v10737_v6, %v10736_v24 }
 0x421   : > { %v4989_v36 = vpop.f32.mrf.mxu0  ;;  %v4714_v4 = vpop.f32.mrf.mxu3  ;;  %v4527_v43 = vadd.f32 %v4435_v0, %v4249_v34 }
 0x422   : > { %v5466_v2 = vmax.f32 %v5434_v21, 0.0  ;;  %v5083_v63 = vadd.f32 %v4989_v36, %v4805_v27  ;;  %v5267_v15 = vpop.f32.mrf.mxu1  ;;  %v10738_v21 = vld [vmem:[#allocation21_spill] sm:$0xff] }
 0x423   : > { %v4806_v53 = vadd.f32 %v4714_v4, %v4527_v43  ;;  %v4250_v0 = vadd.f32 %v10738_v21, %v3972_v19  ;;  %v10740_v4 = vld [vmem:[#allocation55_spill] sm:$0xff]  ;;  %v10741_v19 = vld [vmem:[#allocation44_spill] sm:$0xff] }
 0x424   : > { %5499 = vst.msk [vmem:[#allocation2 + $0x100] sm:$0xff] %vm380_vm0, %v5466_v2  ;;  %v5361_v23 = vadd.f32 %v5267_v15, %v5083_v63  ;;  %7009 = vmatmul.msk.f32.gmra.mxu0 %vm380_vm0, %v10734_v59  ;;  %7077 = vmatmul.msk.f32.gmra.mxu1 %vm380_vm0, %v10735_v8  ;;  %v5531_v59 = vsel %vm380_vm0, %v5466_v2, 0.0 }
 0x425   : > { %6875 = vmatmul.msk.f32.gmra.mxu2 %vm380_vm0, %v10725_v46 }
 0x426   : > { %v5398_v48 = vmul.f32 %v9837_v30, %v5361_v23  ;;  %6943 = vmatmul.msk.f32.gmra.mxu3 %vm380_vm0, %v9394_v31  ;;  %v10739_v31 = vld [vmem:[#allocation31_spill] sm:$0xff] }
 0x428   : > { %v5435_v15 = vadd.f32 %v9845_v39, %v5398_v48  ;;  %v4438_v63 = vpop.f32.mrf.mxu2  ;;  %v10742_v48 = vld [vmem:[#allocation23_spill] sm:$0xff] }
 0x429   : > { %v4992_v27 = vpop.f32.mrf.mxu0  ;;  %v4717_v46 = vpop.f32.mrf.mxu3  ;;  %v4528_v24 = vadd.f32 %v4438_v63, %v4250_v0  ;;  %v10743_v0 = vld [vmem:[#allocation22_spill] sm:$0xff] }
 0x42a   : > { %v5467_v36 = vmax.f32 %v5435_v15, 0.0  ;;  %v5084_v50 = vadd.f32 %v4992_v27, %v4806_v53  ;;  %v5270_v34 = vpop.f32.mrf.mxu1  ;;  %v3973_v53 = vadd.f32 %v10742_v48, %v10741_v19  ;;  %v10744_v19 = vld [vmem:[#allocation34_spill] sm:$0xff] }
 0x42b   : > { %v4807_v15 = vadd.f32 %v4717_v46, %v4528_v24  ;;  %v10745_v46 = vld [vmem:[#allocation60_spill] sm:$0xff]  ;;  %v10746_v24 = vld [vmem:[#allocation25_spill] sm:$0xff]  ;;  %v10747_v48 = vld [vmem:[#allocation46_spill] sm:$0xff] }
 0x42c   : > { %5500 = vst.msk [vmem:[#allocation2 + $0x108] sm:$0xff] %vm380_vm0, %v5467_v36  ;;  %v5532_v23 = vsel %vm380_vm0, %v5467_v36, 0.0  ;;  %v5362_v6 = vadd.f32 %v5270_v34, %v5084_v50  ;;  %7010 = vmatmul.msk.f32.gmra.mxu0 %vm380_vm0, %v10739_v31  ;;  %7078 = vmatmul.msk.f32.gmra.mxu1 %vm380_vm0, %v10740_v4  ;;  %v4251_v36 = vadd.f32 %v10743_v0, %v3973_v53 }
 0x42d   : > { %v5533_v43 = vadd.f32 %v5532_v23, %v5531_v59  ;;  %6876 = vmatmul.msk.f32.gmra.mxu2 %vm380_vm0, %v10730_v42  ;;  %v3974_v53 = vadd.f32 %v10747_v48, %v10746_v24  ;;  %v10752_v24 = vld [vmem:[#allocation28_spill] sm:$0xff] }
 0x42e   : > { %v5399_v2 = vmul.f32 %v9837_v30, %v5362_v6  ;;  %6944 = vmatmul.msk.f32.gmra.mxu3 %vm380_vm0, %v9418_v18 }
 0x430   : > { %v5436_v63 = vadd.f32 %v9845_v39, %v5399_v2  ;;  %v4441_v27 = vpop.f32.mrf.mxu2 }
 0x431   : > { %v4995_v21 = vpop.f32.mrf.mxu0  ;;  %v4720_v42 = vpop.f32.mrf.mxu3  ;;  %v4529_v31 = vadd.f32 %v4441_v27, %v4251_v36 }
 0x432   : > { %v5468_v50 = vmax.f32 %v5436_v63, 0.0  ;;  %v5085_v34 = vadd.f32 %v4995_v21, %v4807_v15  ;;  %v5273_v59 = vpop.f32.mrf.mxu1 }
 0x433   : > { %v4808_v15 = vadd.f32 %v4720_v42, %v4529_v31  ;;  %v10750_v42 = vld [vmem:[#allocation65_spill] sm:$0xff]  ;;  %v10751_v31 = vld [vmem:[#allocation47_spill] sm:$0xff] }
 0x434   : > { %5501 = vst.msk [vmem:[#allocation2 + $0x110] sm:$0xff] %vm380_vm0, %v5468_v50  ;;  %v5534_v23 = vsel %vm380_vm0, %v5468_v50, 0.0  ;;  %v5363_v6 = vadd.f32 %v5273_v59, %v5085_v34  ;;  %7011 = vmatmul.msk.f32.gmra.mxu0 %vm380_vm0, %v10744_v19  ;;  %7079 = vmatmul.msk.f32.gmra.mxu1 %vm380_vm0, %v10745_v46  ;;  %v10749_v19 = vld [vmem:[#allocation53_spill] sm:$0xff]  ;;  %v3975_v48 = vadd.f32 %v10752_v24, %v10751_v31 }
 0x435   : > { %v5535_v18 = vadd.f32 %v5534_v23, %v5533_v43  ;;  %6877 = vmatmul.msk.f32.gmra.mxu2 %vm380_vm0, %v10735_v8  ;;  %v10748_v43 = vld [vmem:[#allocation27_spill] sm:$0xff] }
 0x436   : > { %v5400_v2 = vmul.f32 %v9837_v30, %v5363_v6  ;;  %6945 = vmatmul.msk.f32.gmra.mxu3 %vm380_vm0, %v9442_v51  ;;  %v4252_v0 = vadd.f32 %v10748_v43, %v3974_v53 }
 0x438   : > { %v5437_v63 = vadd.f32 %v9845_v39, %v5400_v2  ;;  %v4444_v27 = vpop.f32.mrf.mxu2 }
 0x439   : > { %v4998_v21 = vpop.f32.mrf.mxu0  ;;  %v4723_v8 = vpop.f32.mrf.mxu3  ;;  %v4530_v23 = vadd.f32 %v4444_v27, %v4252_v0 }
 0x43a   : > { %v5469_v36 = vmax.f32 %v5437_v63, 0.0  ;;  %v5086_v50 = vadd.f32 %v4998_v21, %v4808_v15  ;;  %v5276_v34 = vpop.f32.mrf.mxu1 }
 0x43b   : > { %v4809_v2 = vadd.f32 %v4723_v8, %v4530_v23  ;;  %v10755_v8 = vld [vmem:[#allocation30_spill] sm:$0xff]  ;;  %v10756_v23 = vld [vmem:[#allocation33_spill] sm:$0xff] }
 0x43c   : > { %5502 = vst.msk [vmem:[#allocation2 + $0x118] sm:$0xff] %vm380_vm0, %v5469_v36  ;;  %v5536_v59 = vsel %vm380_vm0, %v5469_v36, 0.0  ;;  %v5364_v6 = vadd.f32 %v5276_v34, %v5086_v50  ;;  %7012 = vmatmul.msk.f32.gmra.mxu0 %vm380_vm0, %v10749_v19  ;;  %7080 = vmatmul.msk.f32.gmra.mxu1 %vm380_vm0, %v10750_v42  ;;  %v3976_v19 = vadd.f32 %v10756_v23, %v10755_v8  ;;  %v10762_v8 = vld [vmem:[#allocation71_spill] sm:$0xff] }
 0x43d   : > { %v5537_v51 = vadd.f32 %v5536_v59, %v5535_v18  ;;  %6878 = vmatmul.msk.f32.gmra.mxu2 %vm380_vm0, %v10740_v4  ;;  %v10753_v18 = vld [vmem:[#allocation48_spill] sm:$0xff] }
 0x43e   : > { %v5401_v53 = vmul.f32 %v9837_v30, %v5364_v6  ;;  %6946 = vmatmul.msk.f32.gmra.mxu3 %vm380_vm0, %v9466_v55  ;;  %v4253_v21 = vadd.f32 %v10753_v18, %v3975_v48  ;;  %v10754_v6 = vld [vmem:[#allocation58_spill] sm:$0xff] }
 0x440   : > { %v5438_v15 = vadd.f32 %v9845_v39, %v5401_v53  ;;  %v4447_v63 = vpop.f32.mrf.mxu2 }
 0x441   : > { %v5001_v27 = vpop.f32.mrf.mxu0  ;;  %v4726_v4 = vpop.f32.mrf.mxu3  ;;  %v4531_v34 = vadd.f32 %v4447_v63, %v4253_v21 }
 0x442   : > { %v5470_v43 = vmax.f32 %v5438_v15, 0.0  ;;  %v5087_v0 = vadd.f32 %v5001_v27, %v4809_v2  ;;  %v5279_v36 = vpop.f32.mrf.mxu1 }
 0x443   : > { %v4810_v24 = vadd.f32 %v4726_v4, %v4531_v34  ;;  %v10759_v4 = vld [vmem:[#allocation75_spill] sm:$0xff] }
 0x444   : > { %5503 = vst.msk [vmem:[#allocation2 + $0x120] sm:$0xff] %vm380_vm0, %v5470_v43  ;;  %v5538_v50 = vsel %vm380_vm0, %v5470_v43, 0.0  ;;  %v5365_v59 = vadd.f32 %v5279_v36, %v5087_v0  ;;  %7013 = vmatmul.msk.f32.gmra.mxu0 %vm380_vm0, %v10754_v6  ;;  %7081 = vmatmul.msk.f32.gmra.mxu1 %vm380_vm0, %v9502_v60  ;;  %v10758_v36 = vld [vmem:[#allocation63_spill] sm:$0xff] }
 0x445   : > { %v5539_v55 = vadd.f32 %v5538_v50, %v5537_v51  ;;  %6879 = vmatmul.msk.f32.gmra.mxu2 %vm380_vm0, %v10745_v46  ;;  %v10757_v51 = vld [vmem:[#allocation32_spill] sm:$0xff]  ;;  %v10760_v50 = vld [vmem:[#allocation50_spill] sm:$0xff]  ;;  %v10761_v34 = vld [vmem:[#allocation51_spill] sm:$0xff] }
 0x446   : > { %v5402_v31 = vmul.f32 %v9837_v30, %v5365_v59  ;;  %6947 = vmatmul.msk.f32.gmra.mxu3 %vm380_vm0, %v9490_v29  ;;  %v4254_v15 = vadd.f32 %v10757_v51, %v3976_v19  ;;  %v3977_v59 = vadd.f32 %v10761_v34, %v10760_v50  ;;  %v10768_v34 = vld [vmem:[#allocation77_spill] sm:$0xff] }
 0x448   : > { %v5439_v48 = vadd.f32 %v9845_v39, %v5402_v31  ;;  %v4450_v53 = vpop.f32.mrf.mxu2 }
 0x449   : > { %v5004_v2 = vpop.f32.mrf.mxu0  ;;  %v4729_v46 = vpop.f32.mrf.mxu3  ;;  %v4532_v43 = vadd.f32 %v4450_v53, %v4254_v15 }
 0x44a   : > { %v5471_v63 = vmax.f32 %v5439_v48, 0.0  ;;  %v5088_v27 = vadd.f32 %v5004_v2, %v4810_v24  ;;  %v5282_v18 = vpop.f32.mrf.mxu1 }
 0x44b   : > { %v4811_v23 = vadd.f32 %v4729_v46, %v4532_v43  ;;  %v10766_v43 = vld [vmem:[#allocation54_spill] sm:$0xff] }
 0x44c   : > { %5504 = vst.msk [vmem:[#allocation2 + $0x128] sm:$0xff] %vm380_vm0, %v5471_v63  ;;  %v5540_v21 = vsel %vm380_vm0, %v5471_v63, 0.0  ;;  %v5366_v0 = vadd.f32 %v5282_v18, %v5088_v27  ;;  %7014 = vmatmul.msk.f32.gmra.mxu0 %vm380_vm0, %v10758_v36  ;;  %7082 = vmatmul.msk.f32.gmra.mxu1 %vm380_vm0, %v10759_v4  ;;  %v10764_v18 = vld [vmem:[#allocation68_spill] sm:$0xff] }
 0x44d   : > { %v5541_v29 = vadd.f32 %v5540_v21, %v5539_v55  ;;  %6880 = vmatmul.msk.f32.gmra.mxu2 %vm380_vm0, %v10750_v42  ;;  %v10763_v55 = vld [vmem:[#allocation52_spill] sm:$0xff] }
 0x44e   : > { %v5403_v6 = vmul.f32 %v9837_v30, %v5366_v0  ;;  %6948 = vmatmul.msk.f32.gmra.mxu3 %vm380_vm0, %v10762_v8  ;;  %v4255_v48 = vadd.f32 %v10763_v55, %v3977_v59  ;;  %v10765_v21 = vld [vmem:[#allocation80_spill] sm:$0xff] }
 0x44f   : > { %v10767_v0 = vld [vmem:[#allocation56_spill] sm:$0xff] }
 0x450   : > { %v5440_v19 = vadd.f32 %v9845_v39, %v5403_v6  ;;  %v4453_v31 = vpop.f32.mrf.mxu2  ;;  %v3978_v36 = vadd.f32 %v10767_v0, %v10766_v43  ;;  %v10773_v0 = vld [vmem:[#allocation82_spill] sm:$0xff] }
 0x451   : > { %v5007_v24 = vpop.f32.mrf.mxu0  ;;  %v4732_v42 = vpop.f32.mrf.mxu3  ;;  %v4533_v63 = vadd.f32 %v4453_v31, %v4255_v48  ;;  %v7048_v48 = vld [vmem:[%s7226_s26 + $0x184] sm:$0xff] }
 0x452   : > { %v5472_v53 = vmax.f32 %v5440_v19, 0.0  ;;  %v5089_v2 = vadd.f32 %v5007_v24, %v4811_v23  ;;  %v5285_v51 = vpop.f32.mrf.mxu1 }
 0x453   : > { %v4812_v59 = vadd.f32 %v4732_v42, %v4533_v63 }
 0x454   : > { %5505 = vst.msk [vmem:[#allocation2 + $0x130] sm:$0xff] %vm380_vm0, %v5472_v53  ;;  %v5542_v15 = vsel %vm380_vm0, %v5472_v53, 0.0  ;;  %v5367_v27 = vadd.f32 %v5285_v51, %v5089_v2  ;;  %7015 = vmatmul.msk.f32.gmra.mxu0 %vm380_vm0, %v10764_v18  ;;  %7083 = vmatmul.msk.f32.gmra.mxu1 %vm380_vm0, %v10765_v21  ;;  %v5604_v53 = vld [vmem:[%s10380_s4 + $0x10] sm:$0xff] }
 0x455   : > { %v5543_v46 = vadd.f32 %v5542_v15, %v5541_v29  ;;  %6881 = vmatmul.msk.f32.gmra.mxu2 %vm380_vm0, %v9502_v60  ;;  %v10769_v29 = vld [vmem:[#allocation57_spill] sm:$0xff] }
 0x456   : > { %v5404_v50 = vmul.f32 %v9837_v30, %v5367_v27  ;;  %6949 = vmatmul.msk.f32.gmra.mxu3 %vm380_vm0, %v10768_v34  ;;  %v4256_v19 = vadd.f32 %v10769_v29, %v3978_v36  ;;  %v10770_v15 = vld [vmem:[#allocation73_spill] sm:$0xff]  ;;  %5622 = vmatpush.msrb.mxu2 %v5604_v53  ;;  %v10771_v27 = vld [vmem:[#allocation59_spill] sm:$0xff] }
 0x457   : > { %v10772_v18 = vld [vmem:[#allocation61_spill] sm:$0xff] }
 0x458   : > { %v5441_v6 = vadd.f32 %v9845_v39, %v5404_v50  ;;  %v4456_v8 = vpop.f32.mrf.mxu2  ;;  %v3979_v21 = vadd.f32 %v10772_v18, %v10771_v27 }
 0x459   : > { %v5010_v23 = vpop.f32.mrf.mxu0  ;;  %v4735_v60 = vpop.f32.mrf.mxu3  ;;  %v4534_v2 = vadd.f32 %v4456_v8, %v4256_v19 }
 0x45a   : > { %v5473_v31 = vmax.f32 %v5441_v6, 0.0  ;;  %v5090_v24 = vadd.f32 %v5010_v23, %v4812_v59  ;;  %v5288_v55 = vpop.f32.mrf.mxu1  ;;  %v6981_v59 = vld [vmem:[%s7226_s26 + $0x18a] sm:$0xff]  ;;  %v10774_v6 = vld [vmem:[#allocation62_spill] sm:$0xff] }
 0x45b   : > { %v4813_v36 = vadd.f32 %v4735_v60, %v4534_v2  ;;  %v4257_v8 = vadd.f32 %v10774_v6, %v3979_v21  ;;  %v10775_v2 = vld [vmem:[#allocation64_spill] sm:$0xff] }
 0x45c   : > { %5506 = vst.msk [vmem:[#allocation2 + $0x138] sm:$0xff] %vm380_vm0, %v5473_v31  ;;  %v5544_v42 = vsel %vm380_vm0, %v5473_v31, 0.0  ;;  %v5368_v51 = vadd.f32 %v5288_v55, %v5090_v24  ;;  %7016 = vmatmul.msk.f32.gmra.mxu0 %vm380_vm0, %v10770_v15  ;;  %7084 = vmatmul.msk.f32.gmra.mxu1 %vm380_vm0, %v7048_v48  ;;  %v6847_v31 = vld [vmem:[%s7226_s26 + $0x174] sm:$0xff]  ;;  %v7049_v24 = vld [vmem:[%s7226_s26 + $0x18c] sm:$0xff] }
 0x45d   : > { %v5545_v63 = vadd.f32 %v5544_v42, %v5543_v46  ;;  %6882 = vmatmul.msk.f32.gmra.mxu2 %vm380_vm0, %v10759_v4 }
 0x45e   : > { %v5405_v43 = vmul.f32 %v9837_v30, %v5368_v51  ;;  %6950 = vmatmul.msk.f32.gmra.mxu3 %vm380_vm0, %v10773_v0  ;;  %v10776_v51 = vld [vmem:[#allocation66_spill] sm:$0xff] }
 0x45f   : > { %v3980_v15 = vadd.f32 %v10776_v51, %v10775_v2 }
 0x460   : > { %v5442_v50 = vadd.f32 %v9845_v39, %v5405_v43  ;;  %v4459_v34 = vpop.f32.mrf.mxu2 }
 0x461   : > { %v5013_v46 = vpop.f32.mrf.mxu0  ;;  %v4738_v23 = vpop.f32.mrf.mxu3  ;;  %v4535_v53 = vadd.f32 %v4459_v34, %v4257_v8  ;;  %v7050_v8 = vld [vmem:[%s7226_s26 + $0x19c] sm:$0xff] }
 0x462   : > { %v5474_v4 = vmax.f32 %v5442_v50, 0.0  ;;  %v5091_v29 = vadd.f32 %v5013_v46, %v4813_v36  ;;  %v5291_v19 = vpop.f32.mrf.mxu1  ;;  %v10777_v36 = vld [vmem:[#allocation67_spill] sm:$0xff] }
 0x463   : > { %v4814_v18 = vadd.f32 %v4738_v23, %v4535_v53  ;;  %v4258_v50 = vadd.f32 %v10777_v36, %v3980_v15  ;;  %v7051_v36 = vld [vmem:[%s7226_s26 + $0x1a4] sm:$0xff] }
 0x464   : > { %5507 = vst.msk [vmem:[#allocation2 + $0x140] sm:$0xff] %vm380_vm0, %v5474_v4  ;;  %v5546_v55 = vsel %vm380_vm0, %v5474_v4, 0.0  ;;  %v5369_v60 = vadd.f32 %v5291_v19, %v5091_v29  ;;  %7017 = vmatmul.msk.f32.gmra.mxu0 %vm380_vm0, %v6981_v59  ;;  %7085 = vmatmul.msk.f32.gmra.mxu1 %vm380_vm0, %v7049_v24  ;;  %v6916_v29 = vld [vmem:[%s7226_s26 + $0x1b0] sm:$0xff] }
 0x465   : > { %v5547_v42 = vadd.f32 %v5546_v55, %v5545_v63  ;;  %6883 = vmatmul.msk.f32.gmra.mxu2 %vm380_vm0, %v6847_v31  ;;  %v6982_v63 = vld [vmem:[%s7226_s26 + $0x19a] sm:$0xff]  ;;  %v10778_v31 = vld [vmem:[#allocation69_spill] sm:$0xff] }
 0x466   : > { %v5406_v27 = vmul.f32 %v9837_v30, %v5369_v60  ;;  %6951 = vmatmul.msk.f32.gmra.mxu3 %vm380_vm0, %v9577_v5  ;;  %v10779_v55 = vld [vmem:[#allocation70_spill] sm:$0xff] }
 0x467   : > { %v3981_v53 = vadd.f32 %v10779_v55, %v10778_v31 }
 0x468   : > { %v5443_v21 = vadd.f32 %v9845_v39, %v5406_v27  ;;  %v4462_v43 = vpop.f32.mrf.mxu2 }
 0x469   : > { %v5016_v0 = vpop.f32.mrf.mxu0  ;;  %v4741_v46 = vpop.f32.mrf.mxu3  ;;  %v4536_v5 = vadd.f32 %v4462_v43, %v4258_v50 }
 0x46a   : > { %v5475_v34 = vmax.f32 %v5443_v21, 0.0  ;;  %v5092_v59 = vadd.f32 %v5016_v0, %v4814_v18  ;;  %v5294_v6 = vpop.f32.mrf.mxu1  ;;  %v6983_v18 = vld [vmem:[%s7226_s26 + $0x1a2] sm:$0xff] }
 0x46b   : > { %v4815_v2 = vadd.f32 %v4741_v46, %v4536_v5  ;;  %v10782_v5 = vld [vmem:[#allocation76_spill] sm:$0xff] }
 0x46c   : > { %5508 = vst.msk [vmem:[#allocation2 + $0x148] sm:$0xff] %vm380_vm0, %v5475_v34  ;;  %v5548_v4 = vsel %vm380_vm0, %v5475_v34, 0.0  ;;  %v5370_v23 = vadd.f32 %v5294_v6, %v5092_v59  ;;  %7018 = vmatmul.msk.f32.gmra.mxu0 %vm380_vm0, %v6982_v63  ;;  %7086 = vmatmul.msk.f32.gmra.mxu1 %vm380_vm0, %v7050_v8  ;;  %v6917_v59 = vld [vmem:[%s7226_s26 + $0x1b8] sm:$0xff] }
 0x46d   : > { %v5549_v19 = vadd.f32 %v5548_v4, %v5547_v42  ;;  %6884 = vmatmul.msk.f32.gmra.mxu2 %vm380_vm0, %v7048_v48  ;;  %v10780_v42 = vld [vmem:[#allocation72_spill] sm:$0xff]  ;;  %v10781_v4 = vld [vmem:[#allocation74_spill] sm:$0xff] }
 0x46e   : > { %v5407_v60 = vmul.f32 %v9837_v30, %v5370_v23  ;;  %6952 = vmatmul.msk.f32.gmra.mxu3 %vm380_vm0, %v6916_v29  ;;  %v4259_v21 = vadd.f32 %v10780_v42, %v3981_v53  ;;  %v3982_v23 = vadd.f32 %v10782_v5, %v10781_v4  ;;  %v7052_v42 = vld [vmem:[%s7226_s26 + $0x1b4] sm:$0xff] }
 0x470   : > { %v5444_v51 = vadd.f32 %v9845_v39, %v5407_v60  ;;  %v4465_v15 = vpop.f32.mrf.mxu2 }
 0x471   : > { %v5019_v27 = vpop.f32.mrf.mxu0  ;;  %v4744_v48 = vpop.f32.mrf.mxu3  ;;  %v4537_v34 = vadd.f32 %v4465_v15, %v4259_v21 }
 0x472   : > { %v5476_v43 = vmax.f32 %v5444_v51, 0.0  ;;  %v5093_v0 = vadd.f32 %v5019_v27, %v4815_v2  ;;  %v5297_v63 = vpop.f32.mrf.mxu1  ;;  %v6984_v2 = vld [vmem:[%s7226_s26 + $0x1b2] sm:$0xff] }
 0x473   : > { %v4816_v31 = vadd.f32 %v4744_v48, %v4537_v34  ;;  %v10785_v34 = vld [vmem:[#allocation81_spill] sm:$0xff] }
 0x474   : > { %5509 = vst.msk [vmem:[#allocation2 + $0x150] sm:$0xff] %vm380_vm0, %v5476_v43  ;;  %v5550_v50 = vsel %vm380_vm0, %v5476_v43, 0.0  ;;  %v5371_v46 = vadd.f32 %v5297_v63, %v5093_v0  ;;  %7019 = vmatmul.msk.f32.gmra.mxu0 %vm380_vm0, %v6983_v18  ;;  %7087 = vmatmul.msk.f32.gmra.mxu1 %vm380_vm0, %v7051_v36  ;;  %v6918_v0 = vld [vmem:[%s7226_s26 + $0x1c8] sm:$0xff] }
 0x475   : > { %v5551_v6 = vadd.f32 %v5550_v50, %v5549_v19  ;;  %6885 = vmatmul.msk.f32.gmra.mxu2 %vm380_vm0, %v7049_v24  ;;  %v10783_v19 = vld [vmem:[#allocation78_spill] sm:$0xff]  ;;  %v10784_v50 = vld [vmem:[#allocation79_spill] sm:$0xff] }
 0x476   : > { %v5408_v29 = vmul.f32 %v9837_v30, %v5371_v46  ;;  %6953 = vmatmul.msk.f32.gmra.mxu3 %vm380_vm0, %v6917_v59  ;;  %v4260_v51 = vadd.f32 %v10783_v19, %v3982_v23  ;;  %v3983_v46 = vadd.f32 %v10785_v34, %v10784_v50  ;;  %v7053_v19 = vld [vmem:[%s7226_s26 + $0x1bc] sm:$0xff] }
 0x478   : > { %v5445_v55 = vadd.f32 %v9845_v39, %v5408_v29  ;;  %v4468_v53 = vpop.f32.mrf.mxu2 }
 0x479   : > { %v5022_v60 = vpop.f32.mrf.mxu0  ;;  %v4747_v24 = vpop.f32.mrf.mxu3  ;;  %v4538_v43 = vadd.f32 %v4468_v53, %v4260_v51 }
 0x47a   : > { %v5477_v15 = vmax.f32 %v5445_v55, 0.0  ;;  %v5094_v27 = vadd.f32 %v5022_v60, %v4816_v31  ;;  %v5300_v18 = vpop.f32.mrf.mxu1  ;;  %v6985_v31 = vld [vmem:[%s7226_s26 + $0x1ba] sm:$0xff] }
 0x47b   : > { %v4817_v4 = vadd.f32 %v4747_v24, %v4538_v43 }
 0x47c   : > { %5510 = vst.msk [vmem:[#allocation2 + $0x158] sm:$0xff] %vm380_vm0, %v5477_v15  ;;  %v5552_v21 = vsel %vm380_vm0, %v5477_v15, 0.0  ;;  %v5372_v48 = vadd.f32 %v5300_v18, %v5094_v27  ;;  %7020 = vmatmul.msk.f32.gmra.mxu0 %vm380_vm0, %v6984_v2  ;;  %7088 = vmatmul.msk.f32.gmra.mxu1 %vm380_vm0, %v7052_v42  ;;  %v6919_v27 = vld [vmem:[%s7226_s26 + $0x1d0] sm:$0xff]  ;;  %v10787_v42 = vld [vmem:[#allocation84_spill] sm:$0xff] }
 0x47d   : > { %v5553_v63 = vadd.f32 %v5552_v21, %v5551_v6  ;;  %6886 = vmatmul.msk.f32.gmra.mxu2 %vm380_vm0, %v7050_v8  ;;  %v10786_v6 = vld [vmem:[#allocation83_spill] sm:$0xff]  ;;  %v3984_v21 = vadd.f32 %v9574_v45, %v10787_v42 }
 0x47e   : > { %v5409_v59 = vmul.f32 %v9837_v30, %v5372_v48  ;;  %6954 = vmatmul.msk.f32.gmra.mxu3 %vm380_vm0, %v6918_v0  ;;  %v4261_v55 = vadd.f32 %v10786_v6, %v3983_v46  ;;  %v6986_v46 = vld [vmem:[%s7226_s26 + $0x1ca] sm:$0xff] }
 0x480   : > { %v5446_v5 = vadd.f32 %v9845_v39, %v5409_v59  ;;  %v4471_v23 = vpop.f32.mrf.mxu2 }
 0x481   : > { %v5025_v29 = vpop.f32.mrf.mxu0  ;;  %v4750_v8 = vpop.f32.mrf.mxu3  ;;  %v4539_v15 = vadd.f32 %v4471_v23, %v4261_v55  ;;  %v7054_v23 = vld [vmem:[%s7226_s26 + $0x1cc] sm:$0xff] }
 0x482   : > { %v5478_v53 = vmax.f32 %v5446_v5, 0.0  ;;  %v5095_v60 = vadd.f32 %v5025_v29, %v4817_v4  ;;  %v5303_v2 = vpop.f32.mrf.mxu1  ;;  %v10788_v55 = vld [vmem:[#allocation85_spill] sm:$0xff] }
 0x483   : > { %v4818_v48 = vadd.f32 %v4750_v8, %v4539_v15 }
 0x484   : > { %5511 = vst.msk [vmem:[#allocation2 + $0x160] sm:$0xff] %vm380_vm0, %v5478_v53  ;;  %v5554_v51 = vsel %vm380_vm0, %v5478_v53, 0.0  ;;  %v5373_v24 = vadd.f32 %v5303_v2, %v5095_v60  ;;  %7021 = vmatmul.msk.f32.gmra.mxu0 %vm380_vm0, %v6985_v31  ;;  %7089 = vmatmul.msk.f32.gmra.mxu1 %vm380_vm0, %v7053_v19 }
 0x485   : > { %v5555_v18 = vadd.f32 %v5554_v51, %v5553_v63  ;;  %6887 = vmatmul.msk.f32.gmra.mxu2 %vm380_vm0, %v7051_v36  ;;  %v4262_v63 = vadd.f32 %v9579_v12, %v3984_v21  ;;  %v3985_v12 = vadd.f32 %v9592_v17, %v10788_v55  ;;  %v6987_v51 = vld [vmem:[%s7226_s26 + $0x1d2] sm:$0xff]  ;;  %v3987_v55 = vadd.f32 %v9622_v14, %v9613_v22 }
 0x486   : > { %v5410_v43 = vmul.f32 %v9837_v30, %v5373_v24  ;;  %6955 = vmatmul.msk.f32.gmra.mxu3 %vm380_vm0, %v6919_v27 }
 0x487   : > { %v4263_v15 = vadd.f32 %v9595_v41, %v3985_v12 }
 0x488   : > { %v5447_v0 = vadd.f32 %v9845_v39, %v5410_v43  ;;  %v4474_v50 = vpop.f32.mrf.mxu2 }
 0x489   : > { %v5028_v34 = vpop.f32.mrf.mxu0  ;;  %v4753_v4 = vpop.f32.mrf.mxu3  ;;  %v4540_v29 = vadd.f32 %v4474_v50, %v4262_v63  ;;  %v3986_v50 = vadd.f32 %v9607_v7, %v9598_v13 }
 0x48a   : > { %v5479_v59 = vmax.f32 %v5447_v0, 0.0  ;;  %v5096_v36 = vadd.f32 %v5028_v34, %v4818_v48  ;;  %v5306_v5 = vpop.f32.mrf.mxu1 }
 0x48b   : > { %v4819_v8 = vadd.f32 %v4753_v4, %v4540_v29  ;;  %v4264_v4 = vadd.f32 %v9610_v49, %v3986_v50  ;;  %v5603_v29 = vld [vmem:[%s10380_s4 + $0x8] sm:$0xff] }
 0x48c   : > { %5512 = vst.msk [vmem:[#allocation2 + $0x168] sm:$0xff] %vm380_vm0, %v5479_v59  ;;  %v5556_v45 = vsel %vm380_vm0, %v5479_v59, 0.0  ;;  %v5374_v31 = vadd.f32 %v5306_v5, %v5096_v36  ;;  %7022 = vmatmul.msk.f32.gmra.mxu0 %vm380_vm0, %v6986_v46  ;;  %7090 = vmatmul.msk.f32.gmra.mxu1 %vm380_vm0, %v7054_v23 }
 0x48d   : > { %v5557_v6 = vadd.f32 %v5556_v45, %v5555_v18  ;;  %v7055_v18 = vld [vmem:[%s7226_s26 + $0x1d4] sm:$0xff]  ;;  %5623 = vmatpush.msrb.mxu2 %v5603_v29 }
 0x48e   : > { %v5411_v53 = vmul.f32 %v9837_v30, %v5374_v31 }
 0x490   : > { %v5448_v60 = vadd.f32 %v9845_v39, %v5411_v53  ;;  %v4477_v2 = vpop.f32.mrf.mxu2 }
 0x491   : > { %v5031_v19 = vpop.f32.mrf.mxu0  ;;  %v4756_v27 = vpop.f32.mrf.mxu3  ;;  %v4541_v17 = vadd.f32 %v4477_v2, %v4263_v15  ;;  %v10789_v2 = vld [vmem:[#allocation86_spill] sm:$0xff] }
 0x492   : > { %v5480_v24 = vmax.f32 %v5448_v60, 0.0  ;;  %v5097_v42 = vadd.f32 %v5031_v19, %v4819_v8  ;;  %v5309_v21 = vpop.f32.mrf.mxu1  ;;  %v4265_v19 = vadd.f32 %v10789_v2, %v3987_v55 }
 0x493   : > { %v4820_v34 = vadd.f32 %v4756_v27, %v4541_v17 }
 0x494   : > { %5513 = vst.msk [vmem:[#allocation2 + $0x170] sm:$0xff] %vm380_vm0, %v5480_v24  ;;  %v5558_v43 = vsel %vm380_vm0, %v5480_v24, 0.0  ;;  %v5375_v48 = vadd.f32 %v5309_v21, %v5097_v42  ;;  %7023 = vmatmul.msk.f32.gmra.mxu0 %vm380_vm0, %v6987_v51  ;;  %7091 = vmatmul.msk.f32.gmra.mxu1 %vm380_vm0, %v7055_v18  ;;  %v5637_v42 = vld [vmem:[%s10383_s7 + $0x18] sm:$0xff] }
 0x495   : > { %v5559_v0 = vadd.f32 %v5558_v43, %v5557_v6  ;;  %5653 = vmatpush.msrb.mxu3 %v5637_v42  ;;  %v3988_v43 = vadd.f32 %v9637_v9, %v9628_v16  ;;  %v3989_v9 = vadd.f32 %v9652_v58, %v9643_v1  ;;  %v3990_v58 = vadd.f32 %v9667_v40, %v9656_v54 }
 0x496   : > { %v5412_v41 = vmul.f32 %v9837_v30, %v5375_v48  ;;  %v3991_v40 = vadd.f32 %v9682_v62, %v9671_v61  ;;  %v3992_v62 = vadd.f32 %v9697_v10, %v9686_v38  ;;  %v3993_v10 = vadd.f32 %v9712_v47, %v9701_v37 }
 0x497   : > { %v3994_v47 = vadd.f32 %v9727_v3, %v9716_v32 }
 0x498   : > { %v5449_v46 = vadd.f32 %v9845_v39, %v5412_v41  ;;  %v4480_v63 = vpop.f32.mrf.mxu2 }
 0x499   : > { %v5034_v59 = vpop.f32.mrf.mxu0  ;;  %v4759_v5 = vpop.f32.mrf.mxu3  ;;  %v4542_v7 = vadd.f32 %v4480_v63, %v4264_v4 }
 0x49a   : > { %v5481_v36 = vmax.f32 %v5449_v46, 0.0  ;;  %v5098_v23 = vadd.f32 %v5034_v59, %v4820_v34  ;;  %v5312_v45 = vpop.f32.mrf.mxu1  ;;  %v4266_v34 = vadd.f32 %v9640_v25, %v3988_v43 }
 0x49b   : > { %v4821_v12 = vadd.f32 %v4759_v5, %v4542_v7 }
 0x49c   : > { %5514 = vst.msk [vmem:[#allocation2 + $0x178] sm:$0xff] %vm380_vm0, %v5481_v36  ;;  %v5560_v13 = vsel %vm380_vm0, %v5481_v36, 0.0  ;;  %v5376_v31 = vadd.f32 %v5312_v45, %v5098_v23 }
 0x49d   : > { %v5561_v6 = vadd.f32 %v5560_v13, %v5559_v0 }
 0x49e   : > { %v5413_v49 = vmul.f32 %v9837_v30, %v5376_v31  ;;  %v4267_v31 = vadd.f32 %v9654_v35, %v3989_v9 }
 0x4a0   : > { %v5450_v53 = vadd.f32 %v9845_v39, %v5413_v49  ;;  %v4483_v8 = vpop.f32.mrf.mxu2 }
 0x4a1   : > { %v5037_v60 = vpop.f32.mrf.mxu0  ;;  %v4762_v15 = vpop.f32.mrf.mxu3  ;;  %v4543_v14 = vadd.f32 %v4483_v8, %v4265_v19 }
 0x4a2   : > { %v5482_v51 = vmax.f32 %v5450_v53, 0.0  ;;  %v5099_v24 = vadd.f32 %v5037_v60, %v4821_v12  ;;  %v5315_v27 = vpop.f32.mrf.mxu1 }
 0x4a3   : > { %v4822_v48 = vadd.f32 %v4762_v15, %v4543_v14 }
 0x4a4   : > { %5515 = vst.msk [vmem:[#allocation2 + $0x180] sm:$0xff] %vm380_vm0, %v5482_v51  ;;  %v5562_v22 = vsel %vm380_vm0, %v5482_v51, 0.0  ;;  %v5377_v21 = vadd.f32 %v5315_v27, %v5099_v24  ;;  %v4268_v24 = vadd.f32 %v9669_v26, %v3990_v58 }
 0x4a5   : > { %v5563_v18 = vadd.f32 %v5562_v22, %v5561_v6 }
 0x4a6   : > { %v5414_v17 = vmul.f32 %v9837_v30, %v5377_v21 }
 0x4a8   : > { %v5451_v0 = vadd.f32 %v9845_v39, %v5414_v17  ;;  %v4486_v50 = vpop.f32.mrf.mxu2 }
 0x4a9   : > { %v5040_v41 = vpop.f32.mrf.mxu0  ;;  %v4765_v63 = vpop.f32.mrf.mxu3  ;;  %v4544_v5 = vadd.f32 %v4486_v50, %v4266_v34 }
 0x4aa   : > { %v5483_v46 = vmax.f32 %v5451_v0, 0.0  ;;  %v5100_v59 = vadd.f32 %v5040_v41, %v4822_v48  ;;  %v5318_v4 = vpop.f32.mrf.mxu1  ;;  %v4269_v41 = vadd.f32 %v9684_v28, %v3991_v40 }
 0x4ab   : > { %v4823_v29 = vadd.f32 %v4765_v63, %v4544_v5 }
 0x4ac   : > { %5516 = vst.msk [vmem:[#allocation2 + $0x188] sm:$0xff] %vm380_vm0, %v5483_v46  ;;  %v5564_v36 = vsel %vm380_vm0, %v5483_v46, 0.0  ;;  %v5378_v23 = vadd.f32 %v5318_v4, %v5100_v59 }
 0x4ad   : > { %v5565_v16 = vadd.f32 %v5564_v36, %v5563_v18 }
 0x4ae   : > { %v5415_v45 = vmul.f32 %v9837_v30, %v5378_v23 }
 0x4b0   : > { %v5452_v13 = vadd.f32 %v9845_v39, %v5415_v45  ;;  %v4489_v25 = vpop.f32.mrf.mxu2 }
 0x4b1   : > { %v5043_v7 = vpop.f32.mrf.mxu0  ;;  %v4768_v55 = vpop.f32.mrf.mxu3  ;;  %v4545_v8 = vadd.f32 %v4489_v25, %v4267_v31 }
 0x4b2   : > { %v5484_v6 = vmax.f32 %v5452_v13, 0.0  ;;  %v5101_v49 = vadd.f32 %v5043_v7, %v4823_v29  ;;  %v5321_v12 = vpop.f32.mrf.mxu1  ;;  %v4270_v29 = vadd.f32 %v9699_v44, %v3992_v62 }
 0x4b3   : > { %v4824_v19 = vadd.f32 %v4768_v55, %v4545_v8 }
 0x4b4   : > { %5517 = vst.msk [vmem:[#allocation2 + $0x190] sm:$0xff] %vm380_vm0, %v5484_v6  ;;  %v5566_v53 = vsel %vm380_vm0, %v5484_v6, 0.0  ;;  %v5379_v60 = vadd.f32 %v5321_v12, %v5101_v49 }
 0x4b5   : > { %v5567_v1 = vadd.f32 %v5566_v53, %v5565_v16 }
 0x4b6   : > { %v5416_v2 = vmul.f32 %v9837_v30, %v5379_v60 }
 0x4b8   : > { %v5453_v51 = vadd.f32 %v9845_v39, %v5416_v2  ;;  %v4492_v35 = vpop.f32.mrf.mxu2 }
 0x4b9   : > { %v5046_v15 = vpop.f32.mrf.mxu0  ;;  %v4771_v42 = vpop.f32.mrf.mxu3  ;;  %v4546_v18 = vadd.f32 %v4492_v35, %v4268_v24 }
 0x4ba   : > { %v5485_v27 = vmax.f32 %v5453_v51, 0.0  ;;  %v5102_v22 = vadd.f32 %v5046_v15, %v4824_v19  ;;  %v5324_v14 = vpop.f32.mrf.mxu1 }
 0x4bb   : > { %v4825_v48 = vadd.f32 %v4771_v42, %v4546_v18 }
 0x4bc   : > { %5518 = vst.msk [vmem:[#allocation2 + $0x198] sm:$0xff] %vm380_vm0, %v5485_v27  ;;  %v5568_v21 = vsel %vm380_vm0, %v5485_v27, 0.0  ;;  %v5380_v43 = vadd.f32 %v5324_v14, %v5102_v22 }
 0x4bd   : > { %v5569_v54 = vadd.f32 %v5568_v21, %v5567_v1  ;;  %v4271_v1 = vadd.f32 %v9714_v20, %v3993_v10  ;;  %v4272_v21 = vadd.f32 %v9729_v11, %v3994_v47 }
 0x4be   : > { %v5417_v17 = vmul.f32 %v9837_v30, %v5380_v43 }
 0x4c0   : > { %v5454_v0 = vadd.f32 %v9845_v39, %v5417_v17  ;;  %v4495_v26 = vpop.f32.mrf.mxu2  ;;  %v5602_v17 = vld [vmem:[%s10380_s4] sm:$0xff] }
 0x4c1   : > { %v5049_v50 = vpop.f32.mrf.mxu0  ;;  %v4774_v46 = vpop.f32.mrf.mxu3  ;;  %v4547_v36 = vadd.f32 %v4495_v26, %v4269_v41  ;;  %5624 = vmatpush.msrb.mxu2 %v5602_v17  ;;  %v3995_v26 = vadd.f32 %v9742_v56, %v9731_v52 }
 0x4c2   : > { %v5486_v34 = vmax.f32 %v5454_v0, 0.0  ;;  %v5103_v63 = vadd.f32 %v5049_v50, %v4825_v48  ;;  %v5327_v59 = vpop.f32.mrf.mxu1 }
 0x4c3   : > { %v4826_v16 = vadd.f32 %v4774_v46, %v4547_v36 }
 0x4c4   : > { %5519 = vst.msk [vmem:[#allocation2 + $0x1a0] sm:$0xff] %vm380_vm0, %v5486_v34  ;;  %v5570_v4 = vsel %vm380_vm0, %v5486_v34, 0.0  ;;  %v5381_v5 = vadd.f32 %v5327_v59, %v5103_v63  ;;  %v4273_v63 = vadd.f32 %v9744_v57, %v3995_v26 }
 0x4c5   : > { %v5571_v61 = vadd.f32 %v5570_v4, %v5569_v54 }
 0x4c6   : > { %v5418_v23 = vmul.f32 %v9837_v30, %v5381_v5 }
 0x4c8   : > { %v5455_v9 = vadd.f32 %v9845_v39, %v5418_v23  ;;  %v4498_v28 = vpop.f32.mrf.mxu2 }
 0x4c9   : > { %v5052_v45 = vpop.f32.mrf.mxu0  ;;  %v4777_v25 = vpop.f32.mrf.mxu3  ;;  %v4548_v55 = vadd.f32 %v4498_v28, %v4270_v29 }
 0x4ca   : > { %v5487_v13 = vmax.f32 %v5455_v9, 0.0  ;;  %v5104_v7 = vadd.f32 %v5052_v45, %v4826_v16  ;;  %v5330_v31 = vpop.f32.mrf.mxu1  ;;  %v10790_v16 = vld [vmem:[#allocation5_spill] sm:$0xff] }
 0x4cb   : > { %v4827_v53 = vadd.f32 %v4777_v25, %v4548_v55  ;;  %v3996_v9 = vadd.f32 %v10790_v16, %v9746_v33  ;;  %v10791_v25 = vld [vmem:[#allocation36_spill] sm:$0xff] }
 0x4cc   : > { %5520 = vst.msk [vmem:[#allocation2 + $0x1a8] sm:$0xff] %vm380_vm0, %v5487_v13  ;;  %v5572_v6 = vsel %vm380_vm0, %v5487_v13, 0.0  ;;  %v5382_v49 = vadd.f32 %v5330_v31, %v5104_v7 }
 0x4cd   : > { %v5573_v38 = vadd.f32 %v5572_v6, %v5571_v61  ;;  %v5636_v61 = vld [vmem:[%s10383_s7 + $0x10] sm:$0xff]  ;;  %v4274_v7 = vadd.f32 %v10791_v25, %v3996_v9 }
 0x4ce   : > { %v5419_v12 = vmul.f32 %v9837_v30, %v5382_v49  ;;  %5654 = vmatpush.msrb.mxu3 %v5636_v61 }
 0x4d0   : > { %v5456_v8 = vadd.f32 %v9845_v39, %v5419_v12  ;;  %v4501_v44 = vpop.f32.mrf.mxu2 }
 0x4d1   : > { %v5055_v60 = vpop.f32.mrf.mxu0  ;;  %v4780_v2 = vpop.f32.mrf.mxu3  ;;  %v4549_v15 = vadd.f32 %v4501_v44, %v4271_v1  ;;  %v10165_v44 = vld [vmem:[%s10378_s2 + $0x1] ss:$0 sm:$0xff] }
 0x4d2   : > { %v5488_v58 = vmax.f32 %v5456_v8, 0.0  ;;  %v5105_v19 = vadd.f32 %v5055_v60, %v4827_v53  ;;  %v5333_v51 = vpop.f32.mrf.mxu1  ;;  %v10792_v53 = vld [vmem:[#allocation4_spill] sm:$0xff] }
 0x4d3   : > { %v4828_v42 = vadd.f32 %v4780_v2, %v4549_v15 }
 0x4d4   : > { %5521 = vst.msk [vmem:[#allocation2 + $0x1b0] sm:$0xff] %vm380_vm0, %v5488_v58  ;;  %v5574_v35 = vsel %vm380_vm0, %v5488_v58, 0.0  ;;  %v5383_v24 = vadd.f32 %v5333_v51, %v5105_v19  ;;  %v10794_v51 = vld [vmem:[#allocation3_spill] sm:$0xff] }
 0x4d5   : > { %v5575_v37 = vadd.f32 %v5574_v35, %v5573_v38 }
 0x4d6   : > { %v5420_v27 = vmul.f32 %v9837_v30, %v5383_v24 }
 0x4d8   : > { %v5457_v22 = vadd.f32 %v9845_v39, %v5420_v27  ;;  %v4504_v20 = vpop.f32.mrf.mxu2 }
 0x4d9   : > { %v5058_v14 = vpop.f32.mrf.mxu0  ;;  %v4783_v43 = vpop.f32.mrf.mxu3  ;;  %v4550_v3 = vadd.f32 %v4504_v20, %v4272_v21  ;;  %v10796_v21 = vld [vmem:[#allocation6_spill] sm:$0xff] }
 0x4da   : > { %v5489_v18 = vmax.f32 %v5457_v22, 0.0  ;;  %v5106_v54 = vadd.f32 %v5058_v14, %v4828_v42  ;;  %v5336_v40 = vpop.f32.mrf.mxu1  ;;  %v10795_v14 = vld [vmem:[#allocation10_spill] sm:$0xff] }
 0x4db   : > { %v4829_v50 = vadd.f32 %v4783_v43, %v4550_v3  ;;  %v10797_v3 = vld [vmem:[#allocation8_spill] sm:$0xff] }
 0x4dc   : > { %5522 = vst.msk [vmem:[#allocation2 + $0x1b8] sm:$0xff] %vm380_vm0, %v5489_v18  ;;  %v5576_v32 = vsel %vm380_vm0, %v5489_v18, 0.0  ;;  %v5384_v48 = vadd.f32 %v5336_v40, %v5106_v54  ;;  %v3998_v18 = vadd.f32 %v10796_v21, %v10795_v14  ;;  %v10178_v54 = vld [vmem:[%s10379_s3 + $0x1] ss:$0 sm:$0xff] }
 0x4dd   : > { %v5577_v0 = vadd.f32 %v5576_v32, %v5575_v37 }
 0x4de   : > { %v5421_v11 = vmul.f32 %v9837_v30, %v5384_v48  ;;  %v4276_v48 = vadd.f32 %v10797_v3, %v3998_v18 }
 0x4e0   : > { %v5458_v41 = vadd.f32 %v9845_v39, %v5421_v11  ;;  %v4507_v34 = vpop.f32.mrf.mxu2 }
 0x4e1   : > { %v5061_v46 = vpop.f32.mrf.mxu0  ;;  %v4786_v4 = vpop.f32.mrf.mxu3  ;;  %v4551_v56 = vadd.f32 %v4507_v34, %v4273_v63 }
 0x4e2   : > { %v5490_v59 = vmax.f32 %v5458_v41, 0.0  ;;  %v5107_v36 = vadd.f32 %v5061_v46, %v4829_v50  ;;  %v5339_v5 = vpop.f32.mrf.mxu1 }
 0x4e3   : > { %v4830_v28 = vadd.f32 %v4786_v4, %v4551_v56  ;;  %v10799_v4 = vld [vmem:[#allocation37_spill] sm:$0xff] }
 0x4e4   : > { %5523 = vst.msk [vmem:[#allocation2 + $0x1c0] sm:$0xff] %vm380_vm0, %v5490_v59  ;;  %v5578_v52 = vsel %vm380_vm0, %v5490_v59, 0.0  ;;  %v5385_v62 = vadd.f32 %v5339_v5, %v5107_v36  ;;  %v10798_v59 = vld [vmem:[#allocation9_spill] sm:$0xff] }
 0x4e5   : > { %v5579_v23 = vadd.f32 %v5578_v52, %v5577_v0  ;;  %v3999_v36 = vadd.f32 %v10799_v4, %v10798_v59 }
 0x4e6   : > { %v5422_v57 = vmul.f32 %v9837_v30, %v5385_v62  ;;  %v10793_v30 = vld [vmem:[#allocation7_spill] sm:$0xff] }
 0x4e7   : > { %v3997_v8 = vadd.f32 %v10793_v30, %v10792_v53  ;;  %v10803_v53 = vld [vmem:[#allocation24_spill] sm:$0xff] }
 0x4e8   : > { %v5459_v45 = vadd.f32 %v9845_v39, %v5422_v57  ;;  %v4510_v29 = vpop.f32.mrf.mxu2 }
 0x4e9   : > { %v5064_v13 = vpop.f32.mrf.mxu0  ;;  %v4789_v6 = vpop.f32.mrf.mxu3  ;;  %v4552_v10 = vadd.f32 %v4510_v29, %v4274_v7  ;;  %v4275_v35 = vadd.f32 %v10794_v51, %v3997_v8 }
 0x4ea   : > { %v5491_v31 = vmax.f32 %v5459_v45, 0.0  ;;  %v5108_v55 = vadd.f32 %v5064_v13, %v4830_v28  ;;  %v5342_v49 = vpop.f32.mrf.mxu1 }
 0x4eb   : > { %v4831_v1 = vadd.f32 %v4789_v6, %v4552_v10  ;;  %v10802_v6 = vld [vmem:[#allocation42_spill] sm:$0xff] }
 0x4ec   : > { %5524 = vst.msk [vmem:[#allocation2 + $0x1c8] sm:$0xff] %vm380_vm0, %v5491_v31  ;;  %v5580_v38 = vsel %vm380_vm0, %v5491_v31, 0.0  ;;  %v5386_v12 = vadd.f32 %v5342_v49, %v5108_v55  ;;  %v10801_v31 = vld [vmem:[#allocation11_spill] sm:$0xff] }
 0x4ed   : > { %v5581_v33 = vadd.f32 %v5580_v38, %v5579_v23  ;;  %v10800_v23 = vld [vmem:[#allocation43_spill] sm:$0xff]  ;;  %v4000_v55 = vadd.f32 %v10802_v6, %v10801_v31 }
 0x4ee   : > { %v5423_v60 = vmul.f32 %v10165_v44, %v5386_v12  ;;  %v4277_v16 = vadd.f32 %v10800_v23, %v3999_v36  ;;  %v5629_v23 = vld [vmem:[%s10381_s5] sm:$0x1] }
 0x4ef   : > { %v4278_v30 = vadd.f32 %v10803_v53, %v4000_v55 }
 0x4f0   : > { %v5460_v58 = vadd.f32 %v9845_v39, %v5423_v60  ;;  %v4513_v2 = vpop.f32.mrf.mxu2 }
 0x4f1   : > { %v5067_v19 = vpop.f32.mrf.mxu0  ;;  %v4792_v24 = vpop.f32.mrf.mxu3  ;;  %v4553_v42 = vadd.f32 %v4513_v2, %v4275_v35 }
 0x4f2   : > { %v5492_v15 = vmax.f32 %v5460_v58, 0.0  ;;  %v5109_v37 = vadd.f32 %v5067_v19, %v4831_v1  ;;  %v5345_v47 = vpop.f32.mrf.mxu1 }
 0x4f3   : > { %v4832_v43 = vadd.f32 %v4792_v24, %v4553_v42  ;;  %v5635_v24 = vld [vmem:[%s10383_s7 + $0x8] sm:$0xff] }
 0x4f4   : > { %5525 = vst.msk [vmem:[#allocation2 + $0x1d0] sm:$0xff] %vm380_vm0, %v5492_v15  ;;  %v5582_v27 = vsel %vm380_vm0, %v5492_v15, 0.0  ;;  %v5387_v22 = vadd.f32 %v5345_v47, %v5109_v37  ;;  %v5634_v37 = vld [vmem:[%s10383_s7] sm:$0xff]  ;;  %v7099_v47 = vld [vmem:[%s10383_s7 + $0x38] sm:$0xff]  ;;  %5655 = vmatpush.msrb.mxu3 %v5635_v24 }
 0x4f5   : > { %v5583_v20 = vadd.f32 %v5582_v27, %v5581_v33  ;;  %5678 = vmatpush.msra.mxu2 %v7099_v47  ;;  %v5710_v47 = vld [vmem:[#allocation2 + $0x8] sm:$0xff] }
 0x4f6   : > { %v5424_v39 = vmul.f32 %v10165_v44, %v5387_v22  ;;  %5656 = vmatpush.msrb.mxu3 %v5634_v37  ;;  %v5709_v37 = vld [vmem:[#allocation2] sm:$0xff] }
 0x4f8   : > { %v5461_v40 = vadd.f32 %v10178_v54, %v5424_v39  ;;  %v4516_v17 = vpop.f32.mrf.mxu2 }
 0x4f9   : > { %v5070_v32 = vpop.f32.mrf.mxu0  ;;  %v4795_v26 = vpop.f32.mrf.mxu3  ;;  %v4554_v34 = vadd.f32 %v4516_v17, %v4276_v48 }
 0x4fa   : > { %v5493_v0 = vmax.f32 %v5461_v40, 0.0  ;;  %v5110_v11 = vadd.f32 %v5070_v32, %v4832_v43  ;;  %v5348_v50 = vpop.f32.mrf.mxu1  ;;  %v10804_v43 = vld [vmem:[#allocation12_spill] sm:$0xff] }
 0x4fb   : > { %v4833_v61 = vadd.f32 %v4795_v26, %v4554_v34  ;;  %v2946_v40 = vrot.slane %v10804_v43, 4 }
 0x4fc   : > { %5526 = vst.msk [vmem:[#allocation2 + $0x1d8] sm:$0xff] %vm380_vm0, %v5493_v0  ;;  %v5584_v41 = vsel %vm380_vm0, %v5493_v0, 0.0  ;;  %v5388_v46 = vadd.f32 %v5348_v50, %v5110_v11 }
 0x4fd   : > { %v5585_v63 = vadd.f32 %v5584_v41, %v5583_v20  ;;  %v2947_v48 = vadd.f32 %v2946_v40, %v10804_v43 }
 0x4fe   : > { %v5425_v5 = vmul.f32 %v10165_v44, %v5388_v46 }
 0x4ff   : > { %v2948_v11 = vrot.slane %v2947_v48, 2 }
 0x500   : > { %v5462_v52 = vadd.f32 %v10178_v54, %v5425_v5  ;;  %v4519_v56 = vpop.f32.mrf.mxu2 }
 0x501   : > { %v5073_v62 = vpop.f32.mrf.mxu0  ;;  %v4798_v45 = vpop.f32.mrf.mxu3  ;;  %v4555_v13 = vadd.f32 %v4519_v56, %v4277_v16  ;;  %v2949_v34 = vadd.f32 %v2948_v11, %v2947_v48  ;;  %v7097_v56 = vld [vmem:[%s10383_s7 + $0x28] sm:$0xff]  ;;  %v5779_v48 = vld [vmem:[#allocation2 + $0x120] sm:$0xff] }
 0x502   : > { %v5494_v9 = vmax.f32 %v5462_v52, 0.0  ;;  %v5111_v57 = vadd.f32 %v5073_v62, %v4833_v61  ;;  %v5351_v28 = vpop.f32.mrf.mxu1  ;;  %v7098_v52 = vld [vmem:[%s10383_s7 + $0x30] sm:$0xff]  ;;  %v7096_v62 = vld [vmem:[%s10383_s7 + $0x20] sm:$0xff]  ;;  %v5714_v11 = vld [vmem:[#allocation2 + $0x28] sm:$0xff] }
 0x503   : > { %v4834_v38 = vadd.f32 %v4798_v45, %v4555_v13  ;;  %v2950_v59 = vrot.slane %v2949_v34, 1  ;;  %5679 = vmatpush.msra.mxu2 %v7098_v52 }
 0x504   : > { %5527 = vst.msk [vmem:[#allocation2 + $0x1e0] sm:$0xff] %vm380_vm0, %v5494_v9  ;;  %v5586_v29 = vsel %vm380_vm0, %v5494_v9, 0.0  ;;  %v5389_v25 = vadd.f32 %v5351_v28, %v5111_v57  ;;  %v5631_v9 = vld [vmem:[%s10382_s6] sm:$0x1] }
 0x505   : > { %v5587_v7 = vadd.f32 %v5586_v29, %v5585_v63  ;;  %v2951_v5 = vadd.f32 %v2950_v59, %v2949_v34  ;;  %5680 = vmatpush.msra.mxu2 %v7097_v56 }
 0x506   : > { %v5426_v49 = vmul.f32 %v10165_v44, %v5389_v25 }
 0x507   : > { %5681 = vmatpush.msra.mxu2 %v7096_v62  ;;  %v5717_v62 = vld [vmem:[#allocation2 + $0x40] sm:$0xff] }
 0x508   : > { %v5463_v10 = vadd.f32 %v10178_v54, %v5426_v49  ;;  %v4522_v12 = vpop.f32.mrf.mxu2 }
 0x509   : > { %v5076_v33 = vpop.f32.mrf.mxu0  ;;  %v4556_v2 = vadd.f32 %v4522_v12, %v4278_v30  ;;  %v4801_v35 = vpop.f32.mrf.mxu3 }
 0x50a   : > { %v5495_v8 = vmax.f32 %v5463_v10, 0.0  ;;  %v5112_v60 = vadd.f32 %v5076_v33, %v4834_v38  ;;  %v5354_v1 = vpop.f32.mrf.mxu1 }
 0x50b   : > { %v4835_v27 = vadd.f32 %v4801_v35, %v4556_v2 }
 0x50c   : > { %5528 = vst.msk [vmem:[#allocation2 + $0x1e8] sm:$0xff] %vm380_vm0, %v5495_v8  ;;  %v5588_v58 = vsel %vm380_vm0, %v5495_v8, 0.0  ;;  %v5390_v19 = vadd.f32 %v5354_v1, %v5112_v60 }
 0x50d   : > { %v5589_v51 = vadd.f32 %v5588_v58, %v5587_v7 }
 0x50e   : > { %v5427_v15 = vmul.f32 %v10165_v44, %v5390_v19 }
 0x510   : > { %v5464_v42 = vadd.f32 %v10178_v54, %v5427_v15 }
 0x511   : > { %v5079_v22 = vpop.f32.mrf.mxu0 }
 0x512   : > { %v5496_v20 = vmax.f32 %v5464_v42, 0.0  ;;  %v5113_v14 = vadd.f32 %v5079_v22, %v4835_v27  ;;  %v5357_v21 = vpop.f32.mrf.mxu1  ;;  %v5711_v27 = vld [vmem:[#allocation2 + $0x10] sm:$0xff]  ;;  %v5775_v42 = vld [vmem:[#allocation2 + $0x100] sm:$0xff]  ;;  %v5776_v22 = vld [vmem:[#allocation2 + $0x108] sm:$0xff] }
 0x514   : > { %5529 = vst.msk [vmem:[#allocation2 + $0x1f0] sm:$0xff] %vm380_vm0, %v5496_v20  ;;  %v5590_v18 = vsel %vm380_vm0, %v5496_v20, 0.0  ;;  %v5391_v39 = vadd.f32 %v5357_v21, %v5113_v14  ;;  %v5777_v20 = vld [vmem:[#allocation2 + $0x110] sm:$0xff] }
 0x515   : > { %v5591_v17 = vadd.f32 %v5590_v18, %v5589_v51  ;;  %v5712_v18 = vld [vmem:[#allocation2 + $0x18] sm:$0xff] }
 0x516   : > { %v5428_v32 = vmul.f32 %v10165_v44, %v5391_v39  ;;  %v5778_v39 = vld [vmem:[#allocation2 + $0x118] sm:$0xff] }
 0x518   : > { %v5465_v3 = vadd.f32 %v10178_v54, %v5428_v32 }
 0x51a   : > { %v5497_v0 = vmax.f32 %v5465_v3, 0.0  ;;  %v5713_v3 = vld [vmem:[#allocation2 + $0x20] sm:$0xff] }
 0x51c   : > { %5530 = vst.msk [vmem:[#allocation2 + $0x1f8] sm:$0xff] %vm380_vm0, %v5497_v0  ;;  %v5592_v26 = vsel %vm380_vm0, %v5497_v0, 0.0 }
 0x51d   : > { %v5593_v50 = vadd.f32 %v5592_v26, %v5591_v17 }
 0x51f   : > { %v5594_v41 = vrot.slane %v5593_v50, 4 }
 0x521   : > { %v5595_v46 = vadd.f32 %v5594_v41, %v5593_v50  ;;  %v5715_v50 = vld [vmem:[#allocation2 + $0x30] sm:$0xff]  ;;  %v5780_v41 = vld [vmem:[#allocation2 + $0x128] sm:$0xff] }
 0x523   : > { %v5596_v63 = vrot.slane %v5595_v46, 2 }
 0x525   : > { %v5597_v4 = vadd.f32 %v5596_v63, %v5595_v46  ;;  %v5781_v63 = vld [vmem:[#allocation2 + $0x130] sm:$0xff] }
 0x527   : > { %v5598_v36 = vrot.slane %v5597_v4, 1 }
 0x529   : > { %v5599_v44 = vadd.f32 %v5598_v36, %v5597_v4 }
 0x52b   : > { %v5600_v61 = vadd.f32 %v5599_v44, %v2951_v5  ;;  %v5716_v5 = vld [vmem:[#allocation2 + $0x38] sm:$0xff] }
 0x52c   : > { %v5782_v44 = vld [vmem:[#allocation2 + $0x138] sm:$0xff] }
 0x52d   : > { %v5601_v54 = vmul.f32 0.00390625, %v5600_v61 }
 0x52f   : > { %7094 = vmatmul.msk.f32.vlgmr.msrb.gmra.mxu2 %vm380_vm0, %v5601_v54 }
 0x5b2   : > { %v5626_v16 = vpop.f32.mrf.mxu2 }
 0x5b3   : > { %v5630_v57 = vmul.f32 %v5629_v23, %v5626_v16  ;;  %v5783_v23 = vld [vmem:[#allocation2 + $0x140] sm:$0xff] }
 0x5b5   : > { %v5632_v28 = vadd.f32 %v5631_v9, %v5630_v57 }
 0x5b7   : > { %v5633_v45 = vmax.f32 %v5632_v28, 0.0  ;;  %v5718_v28 = vld [vmem:[#allocation2 + $0x48] sm:$0xff] }
 0x5b9   : > { %7095 = vmatmul.msk.f32.vlgmr.msrb.gmra.mxu3 %vm380_vm0, %v5633_v45  ;;  %7100 = vmatmul.msk.f32.vlgmr.msra.gmra.mxu2 %vm380_vm0, %v5633_v45  ;;  %v5784_v45 = vld [vmem:[#allocation2 + $0x148] sm:$0xff] }
 0x63c   : > { %v5658_v29 = vpop.f32.mrf.mxu3  ;;  %v5683_v13 = vpop.f32.mrf.mxu2 }
 0x63d   : > { %v5686_v25 = vmax.f32 %v5658_v29, %v5683_v13 }
 0x63f   : > { %v5687_v7 = vsub.f32 %v5658_v29, %v5686_v25  ;;  %v5690_v31 = vsub.f32 %v5683_v13, %v5686_v25 }
 0x641   : > { %v5688_v6 = vmul.f32 1.442695, %v5687_v7  ;;  %v5691_v55 = vmul.f32 1.442695, %v5690_v31  ;;  %v5719_v7 = vld [vmem:[#allocation2 + $0x50] sm:$0xff] }
 0x642   : > { %v5785_v31 = vld [vmem:[#allocation2 + $0x150] sm:$0xff] }
 0x643   : > { %7125 = vpow2.f32 %v5688_v6 }
 0x644   : > { %7127 = vpow2.f32 %v5691_v55 }
 0x649   : > { %v7126_v49 = vpop.eup %7125 }
 0x64a   : > { %v7128_v38 = vpop.eup %7127 }
 0x64b   : > { %v5693_v10 = vadd.f32 %v7128_v38, %v7126_v49 }
 0x64d   : > { %7129 = vrcp.f32 %v5693_v10  ;;  %v5705_v60 = vand.u32 2147483648, %v5693_v10  ;;  %vm5699_vm2 = vweird.f32 %v5693_v10  ;;  %v5703_v1 = vand.u32 2147483647, %v5693_v10 }
 0x64f   : > { %v5706_v2 = vor.u32 1.1754944e-38, %v5705_v60  ;;  %vm5704_vm4 = vcmp.eq.f32.partialorder %v5703_v1, 8.507059e+37 }
 0x653   : > { %v7130_v12 = vpop.eup %7129 }
 0x654   : > { %v5695_v33 = vmul.f32 %v7130_v12, %v5693_v10  ;;  %vm5700_vm1 = vweird.f32 %v7130_v12  ;;  %v5786_v10 = vld [vmem:[#allocation2 + $0x158] sm:$0xff] }
 0x655   : > { %vm5701_vm3 = vmor %vm5699_vm2, %vm5700_vm1 }
 0x656   : > { %v5696_v53 = vsub.f32 1.0, %v5695_v33 }
 0x658   : > { %v5697_v30 = vmul.f32 %v7130_v12, %v5696_v53 }
 0x65a   : > { %v5698_v8 = vadd.f32 %v7130_v12, %v5697_v30  ;;  %v5721_v30 = vld [vmem:[#allocation2 + $0x60] sm:$0xff] }
 0x65c   : > { %v5702_v58 = vsel %vm5701_vm3, %v7130_v12, %v5698_v8  ;;  %v5787_v8 = vld [vmem:[#allocation2 + $0x160] sm:$0xff] }
 0x65d   : > { %v5707_v19 = vsel %vm5704_vm4, %v5706_v2, %v5702_v58  ;;  %v5722_v2 = vld [vmem:[#allocation2 + $0x68] sm:$0xff] }
 0x65e   : > { %v5741_v51 = vmul.f32 %v7126_v49, %v5707_v19  ;;  %v5807_v35 = vmul.f32 %v7128_v38, %v5707_v19  ;;  %v5720_v38 = vld [vmem:[#allocation2 + $0x58] sm:$0xff]  ;;  %v5788_v19 = vld [vmem:[#allocation2 + $0x168] sm:$0xff] }
 0x660   : > { %v10235_v15 = vperm.slane %v5741_v51, 0  ;;  %v10237_v24 = vperm.slane %v5807_v35, 0 }
 0x662   : > { %v5743_v14 = vmul.f32 %v10235_v15, %v5709_v37  ;;  %v5744_v21 = vmul.f32 %v10235_v15, %v5710_v47  ;;  %v5745_v43 = vmul.f32 %v10235_v15, %v5711_v27  ;;  %v5809_v40 = vmul.f32 %v10237_v24, %v5775_v42  ;;  %v5723_v47 = vld [vmem:[#allocation2 + $0x70] sm:$0xff] }
 0x663   : > { %v5810_v17 = vmul.f32 %v10237_v24, %v5776_v22  ;;  %v5811_v32 = vmul.f32 %v10237_v24, %v5777_v20  ;;  %v5746_v0 = vmul.f32 %v10235_v15, %v5712_v18  ;;  %v5812_v26 = vmul.f32 %v10237_v24, %v5778_v39  ;;  %v5789_v27 = vld [vmem:[#allocation2 + $0x170] sm:$0xff] }
 0x664   : > { %v5747_v34 = vmul.f32 %v10235_v15, %v5713_v3  ;;  %v5813_v46 = vmul.f32 %v10237_v24, %v5779_v48  ;;  %v5748_v59 = vmul.f32 %v10235_v15, %v5714_v11  ;;  %v5749_v4 = vmul.f32 %v10235_v15, %v5715_v50 }
 0x665   : > { %v5814_v36 = vmul.f32 %v10237_v24, %v5780_v41  ;;  %v5815_v61 = vmul.f32 %v10237_v24, %v5781_v63  ;;  %v5841_v54 = vadd.f32 %v5809_v40, %v5743_v14  ;;  %v5842_v52 = vadd.f32 %v5810_v17, %v5744_v21  ;;  %v5724_v14 = vld [vmem:[#allocation2 + $0x78] sm:$0xff]  ;;  %v5725_v40 = vld [vmem:[#allocation2 + $0x80] sm:$0xff] }
 0x666   : > { %v5843_v56 = vadd.f32 %v5811_v32, %v5745_v43  ;;  %v5750_v16 = vmul.f32 %v10235_v15, %v5716_v5  ;;  %v5816_v9 = vmul.f32 %v10237_v24, %v5782_v44  ;;  %v5844_v57 = vadd.f32 %v5812_v26, %v5746_v0  ;;  %v5790_v21 = vld [vmem:[#allocation2 + $0x178] sm:$0xff]  ;;  %v5791_v17 = vld [vmem:[#allocation2 + $0x180] sm:$0xff]  ;;  %v5726_v0 = vld [vmem:[#allocation2 + $0x88] sm:$0xff] }
 0x667   : > { %v5751_v29 = vmul.f32 %v10235_v15, %v5717_v62  ;;  %v5817_v13 = vmul.f32 %v10237_v24, %v5783_v23  ;;  %v5845_v25 = vadd.f32 %v5813_v46, %v5747_v34  ;;  %5873 = vst.msk [vmem:[%s10253_s30] sm:$0xff] %vm380_vm0, %v5841_v54  ;;  %v5752_v6 = vmul.f32 %v10235_v15, %v5718_v28  ;;  %v5792_v26 = vld [vmem:[#allocation2 + $0x188] sm:$0xff]  ;;  %v5727_v34 = vld [vmem:[#allocation2 + $0x90] sm:$0xff]  ;;  %v5794_v5 = vld [vmem:[#allocation2 + $0x198] sm:$0xff] }
 0x668   : > { %v5818_v55 = vmul.f32 %v10237_v24, %v5784_v45  ;;  %v5846_v49 = vadd.f32 %v5814_v36, %v5748_v59  ;;  %5874 = vst.msk [vmem:[%s10253_s30 + $0x8] sm:$0xff] %vm380_vm0, %v5842_v52  ;;  %v5753_v12 = vmul.f32 %v10235_v15, %v5719_v7  ;;  %v5819_v33 = vmul.f32 %v10237_v24, %v5785_v31  ;;  %v5793_v46 = vld [vmem:[#allocation2 + $0x190] sm:$0xff]  ;;  %v5728_v36 = vld [vmem:[#allocation2 + $0x98] sm:$0xff]  ;;  %v5729_v52 = vld [vmem:[#allocation2 + $0xa0] sm:$0xff] }
 0x669   : > { %v5847_v53 = vadd.f32 %v5815_v61, %v5749_v4  ;;  %5875 = vst.msk [vmem:[%s10253_s30 + $0x10] sm:$0xff] %vm380_vm0, %v5843_v56  ;;  %v5754_v60 = vmul.f32 %v10235_v15, %v5720_v38  ;;  %v5820_v1 = vmul.f32 %v10237_v24, %v5786_v10  ;;  %v5848_v58 = vadd.f32 %v5816_v9, %v5750_v16  ;;  %v5795_v56 = vld [vmem:[#allocation2 + $0x1a0] sm:$0xff]  ;;  %v5730_v9 = vld [vmem:[#allocation2 + $0xa8] sm:$0xff] }
 0x66a   : > { %5876 = vst.msk [vmem:[%s10253_s30 + $0x18] sm:$0xff] %vm380_vm0, %v5844_v57  ;;  %v5755_v51 = vmul.f32 %v10235_v15, %v5721_v30  ;;  %v5821_v35 = vmul.f32 %v10237_v24, %v5787_v8  ;;  %v5849_v37 = vadd.f32 %v5817_v13, %v5751_v29  ;;  %v5756_v42 = vmul.f32 %v10235_v15, %v5722_v2  ;;  %v5796_v57 = vld [vmem:[#allocation2 + $0x1a8] sm:$0xff]  ;;  %v5731_v13 = vld [vmem:[#allocation2 + $0xb0] sm:$0xff] }
 0x66b   : > { %5877 = vst.msk [vmem:[%s10253_s30 + $0x20] sm:$0xff] %vm380_vm0, %v5845_v25  ;;  %v5822_v22 = vmul.f32 %v10237_v24, %v5788_v19  ;;  %v5850_v20 = vadd.f32 %v5818_v55, %v5752_v6  ;;  %v5757_v18 = vmul.f32 %v10235_v15, %v5723_v47  ;;  %v5823_v39 = vmul.f32 %v10237_v24, %v5789_v27  ;;  %v5797_v25 = vld [vmem:[#allocation2 + $0x1b0] sm:$0xff]  ;;  %v5732_v55 = vld [vmem:[#allocation2 + $0xb8] sm:$0xff] }
 0x66c   : > { %5878 = vst.msk [vmem:[%s10253_s30 + $0x28] sm:$0xff] %vm380_vm0, %v5846_v49  ;;  %v5851_v43 = vadd.f32 %v5819_v33, %v5753_v12  ;;  %v5758_v32 = vmul.f32 %v10235_v15, %v5724_v14  ;;  %v5824_v3 = vmul.f32 %v10237_v24, %v5790_v21  ;;  %v5852_v48 = vadd.f32 %v5820_v1, %v5754_v60  ;;  %v5798_v49 = vld [vmem:[#allocation2 + $0x1b8] sm:$0xff]  ;;  %v5733_v33 = vld [vmem:[#allocation2 + $0xc0] sm:$0xff]  ;;  %v5734_v1 = vld [vmem:[#allocation2 + $0xc8] sm:$0xff] }
 0x66d   : > { %5879 = vst.msk [vmem:[%s10253_s30 + $0x30] sm:$0xff] %vm380_vm0, %v5847_v53  ;;  %v5759_v11 = vmul.f32 %v10235_v15, %v5725_v40  ;;  %v5825_v50 = vmul.f32 %v10237_v24, %v5791_v17  ;;  %v5853_v41 = vadd.f32 %v5821_v35, %v5755_v51  ;;  %v5760_v63 = vmul.f32 %v10235_v15, %v5726_v0  ;;  %v5799_v53 = vld [vmem:[#allocation2 + $0x1c0] sm:$0xff]  ;;  %v5735_v35 = vld [vmem:[#allocation2 + $0xd0] sm:$0xff] }
 0x66e   : > { %5880 = vst.msk [vmem:[%s10253_s30 + $0x38] sm:$0xff] %vm380_vm0, %v5848_v58  ;;  %v5826_v59 = vmul.f32 %v10237_v24, %v5792_v26  ;;  %v5854_v4 = vadd.f32 %v5822_v22, %v5756_v42  ;;  %v5761_v44 = vmul.f32 %v10235_v15, %v5727_v34  ;;  %v5827_v61 = vmul.f32 %v10237_v24, %v5793_v46  ;;  %v5800_v58 = vld [vmem:[#allocation2 + $0x1c8] sm:$0xff]  ;;  %v5736_v22 = vld [vmem:[#allocation2 + $0xd8] sm:$0xff] }
 0x66f   : > { %5881 = vst.msk [vmem:[%s10253_s30 + $0x40] sm:$0xff] %vm380_vm0, %v5849_v37  ;;  %v5855_v54 = vadd.f32 %v5823_v39, %v5757_v18  ;;  %v5762_v62 = vmul.f32 %v10235_v15, %v5728_v36  ;;  %v5828_v23 = vmul.f32 %v10237_v24, %v5794_v5  ;;  %v5856_v16 = vadd.f32 %v5824_v3, %v5758_v32  ;;  %v5801_v37 = vld [vmem:[#allocation2 + $0x1d0] sm:$0xff]  ;;  %v5737_v39 = vld [vmem:[#allocation2 + $0xe0] sm:$0xff]  ;;  %v5738_v3 = vld [vmem:[#allocation2 + $0xe8] sm:$0xff] }
 0x670   : > { %5882 = vst.msk [vmem:[%s10253_s30 + $0x48] sm:$0xff] %vm380_vm0, %v5850_v20  ;;  %v5763_v28 = vmul.f32 %v10235_v15, %v5729_v52  ;;  %v5829_v45 = vmul.f32 %v10237_v24, %v5795_v56  ;;  %v5857_v29 = vadd.f32 %v5825_v50, %v5759_v11  ;;  %v5764_v7 = vmul.f32 %v10235_v15, %v5730_v9  ;;  %v5802_v20 = vld [vmem:[#allocation2 + $0x1d8] sm:$0xff]  ;;  %v5739_v50 = vld [vmem:[#allocation2 + $0xf0] sm:$0xff] }
 0x671   : > { %5883 = vst.msk [vmem:[%s10253_s30 + $0x50] sm:$0xff] %vm380_vm0, %v5851_v43  ;;  %v5830_v31 = vmul.f32 %v10237_v24, %v5796_v57  ;;  %v5858_v6 = vadd.f32 %v5826_v59, %v5760_v63  ;;  %v5765_v38 = vmul.f32 %v10235_v15, %v5731_v13  ;;  %v5831_v10 = vmul.f32 %v10237_v24, %v5797_v25  ;;  %v5803_v43 = vld [vmem:[#allocation2 + $0x1e0] sm:$0xff]  ;;  %v5740_v59 = vld [vmem:[#allocation2 + $0xf8] sm:$0xff] }
 0x672   : > { %5884 = vst.msk [vmem:[%s10253_s30 + $0x58] sm:$0xff] %vm380_vm0, %v5852_v48  ;;  %v5859_v12 = vadd.f32 %v5827_v61, %v5761_v44  ;;  %v5766_v30 = vmul.f32 %v10235_v15, %v5732_v55  ;;  %v5832_v8 = vmul.f32 %v10237_v24, %v5798_v49  ;;  %v5860_v60 = vadd.f32 %v5828_v23, %v5762_v62  ;;  %v5804_v48 = vld [vmem:[#allocation2 + $0x1e8] sm:$0xff] }
 0x673   : > { %5885 = vst.msk [vmem:[%s10253_s30 + $0x60] sm:$0xff] %vm380_vm0, %v5853_v41  ;;  %v5767_v2 = vmul.f32 %v10235_v15, %v5733_v33  ;;  %v5833_v19 = vmul.f32 %v10237_v24, %v5799_v53  ;;  %v5861_v51 = vadd.f32 %v5829_v45, %v5763_v28  ;;  %v5768_v47 = vmul.f32 %v10235_v15, %v5734_v1  ;;  %v5805_v41 = vld [vmem:[#allocation2 + $0x1f0] sm:$0xff] }
 0x674   : > { %5886 = vst.msk [vmem:[%s10253_s30 + $0x68] sm:$0xff] %vm380_vm0, %v5854_v4  ;;  %v5834_v27 = vmul.f32 %v10237_v24, %v5800_v58  ;;  %v5862_v42 = vadd.f32 %v5830_v31, %v5764_v7  ;;  %v5769_v14 = vmul.f32 %v10235_v15, %v5735_v35  ;;  %v5835_v21 = vmul.f32 %v10237_v24, %v5801_v37  ;;  %v5806_v4 = vld [vmem:[#allocation2 + $0x1f8] sm:$0xff] }
 0x675   : > { %5887 = vst.msk [vmem:[%s10253_s30 + $0x70] sm:$0xff] %vm380_vm0, %v5855_v54  ;;  %v5863_v18 = vadd.f32 %v5831_v10, %v5765_v38  ;;  %v5770_v40 = vmul.f32 %v10235_v15, %v5736_v22  ;;  %v5836_v17 = vmul.f32 %v10237_v24, %v5802_v20  ;;  %v5864_v32 = vadd.f32 %v5832_v8, %v5766_v30 }
 0x676   : > { %5888 = vst.msk [vmem:[%s10253_s30 + $0x78] sm:$0xff] %vm380_vm0, %v5856_v16  ;;  %v5771_v0 = vmul.f32 %v10235_v15, %v5737_v39  ;;  %v5837_v26 = vmul.f32 %v10237_v24, %v5803_v43  ;;  %v5865_v11 = vadd.f32 %v5833_v19, %v5767_v2  ;;  %v5772_v34 = vmul.f32 %v10235_v15, %v5738_v3 }
 0x677   : > { %5889 = vst.msk [vmem:[%s10253_s30 + $0x80] sm:$0xff] %vm380_vm0, %v5857_v29  ;;  %v5838_v46 = vmul.f32 %v10237_v24, %v5804_v48  ;;  %v5866_v63 = vadd.f32 %v5834_v27, %v5768_v47  ;;  %v5773_v36 = vmul.f32 %v10235_v15, %v5739_v50  ;;  %v5839_v5 = vmul.f32 %v10237_v24, %v5805_v41 }
 0x678   : > { %5890 = vst.msk [vmem:[%s10253_s30 + $0x88] sm:$0xff] %vm380_vm0, %v5858_v6  ;;  %v5867_v44 = vadd.f32 %v5835_v21, %v5769_v14  ;;  %v5774_v61 = vmul.f32 %v10235_v15, %v5740_v59  ;;  %v5840_v54 = vmul.f32 %v10237_v24, %v5806_v4  ;;  %v5868_v52 = vadd.f32 %v5836_v17, %v5770_v40 }
 0x679   : > { %5891 = vst.msk [vmem:[%s10253_s30 + $0x90] sm:$0xff] %vm380_vm0, %v5859_v12  ;;  %v5869_v56 = vadd.f32 %v5837_v26, %v5771_v0  ;;  %v5870_v62 = vadd.f32 %v5838_v46, %v5772_v34  ;;  %v5871_v23 = vadd.f32 %v5839_v5, %v5773_v36 }
 0x67a   : > { %5892 = vst.msk [vmem:[%s10253_s30 + $0x98] sm:$0xff] %vm380_vm0, %v5860_v60  ;;  %v5872_v16 = vadd.f32 %v5840_v54, %v5774_v61 }
 0x67b   : > { %5893 = vst.msk [vmem:[%s10253_s30 + $0xa0] sm:$0xff] %vm380_vm0, %v5861_v51 }
 0x67c   : > { %5894 = vst.msk [vmem:[%s10253_s30 + $0xa8] sm:$0xff] %vm380_vm0, %v5862_v42 }
 0x67d   : > { %5895 = vst.msk [vmem:[%s10253_s30 + $0xb0] sm:$0xff] %vm380_vm0, %v5863_v18 }
 0x67e   : > { %5896 = vst.msk [vmem:[%s10253_s30 + $0xb8] sm:$0xff] %vm380_vm0, %v5864_v32 }
 0x67f   : > { %5897 = vst.msk [vmem:[%s10253_s30 + $0xc0] sm:$0xff] %vm380_vm0, %v5865_v11 }
 0x680   : > { %5898 = vst.msk [vmem:[%s10253_s30 + $0xc8] sm:$0xff] %vm380_vm0, %v5866_v63 }
 0x681   : > { %5899 = vst.msk [vmem:[%s10253_s30 + $0xd0] sm:$0xff] %vm380_vm0, %v5867_v44 }
 0x682   : > { %5900 = vst.msk [vmem:[%s10253_s30 + $0xd8] sm:$0xff] %vm380_vm0, %v5868_v52 }
 0x683   : > { %5901 = vst.msk [vmem:[%s10253_s30 + $0xe0] sm:$0xff] %vm380_vm0, %v5869_v56 }
 0x684   : > { %5902 = vst.msk [vmem:[%s10253_s30 + $0xe8] sm:$0xff] %vm380_vm0, %v5870_v62 }
 0x685   : > { %5903 = vst.msk [vmem:[%s10253_s30 + $0xf0] sm:$0xff] %vm380_vm0, %v5871_v23 }
 0x686   : > { %5904 = vst.msk [vmem:[%s10253_s30 + $0xf8] sm:$0xff] %vm380_vm0, %v5872_v16 }
 0x687 PF: > { %s18_s27 = sadd.s32 1, %s7141_s27  }
 0x688   : > { %p15_p4 = scmp.ge.s32.totalorder %s18_s27, 4  }
 0x68a   :  { %17 = sbr.rel (!%p15_p4) target bundleno = 1 (0x1), region = 107 }

</bundles_post_ra>
